<compile_context>
chip_gen: v5e
topology: v5e:2x2
jax: 0.10.0
libtpu: 0.0.40
codegen_flags: <defaults>
</compile_context>

<pallas_src>
import math

import jax
import jax.numpy as jnp
from jax import lax
from jax.experimental import pallas as pl
from jax.experimental.pallas import tpu as pltpu

# ---------------- configuration (small synthetic shapes) ----------------
B, Q, C, NT = 2, 16, 8, 4            # batch, num_queries, num_classes, targets/image
ALPHA = 0.25                         # focal alpha (gamma=2 hard-coded as squares)
COST_CLASS, COST_BBOX, COST_GIOU = 2.0, 5.0, 2.0   # HungarianMatcher weights
EPS = 1e-7                           # guards GIoU divisions against degenerate boxes
NUM_BOXES = float(max(B * NT, 1))    # reference: sum of per-image target counts, clamp 1


# ======================= fused Pallas kernel =======================

def criterion_kernel(logits_ref, pbox_ref, lab_ref, tbox_ref, out_ref):
    """Per-image: matching cost -> greedy assignment -> focal / cardinality / box losses.

    Inputs (whole arrays, VMEM):
      logits_ref [B, C, Q]   logits transposed, queries on lanes
      pbox_ref   [B, 4, Q]   predicted boxes transposed (cx, cy, w, h rows)
      lab_ref    [B, NT, 1]  int32 target labels
      tbox_ref   [B, NT, 4]  target boxes (cx, cy, w, h), normalized
    Output (SMEM, 8 x f32):
      [loss_ce, class_error, cardinality_error, loss_bbox, loss_giou, 0, 0, 0]
    """
    lane_f = lax.broadcasted_iota(jnp.int32, (1, Q), 1).astype(jnp.float32)
    cls_i = lax.broadcasted_iota(jnp.int32, (C, Q), 0)
    cls_f = cls_i.astype(jnp.float32)
    row_i = lax.broadcasted_iota(jnp.int32, (NT, 1), 0)

    focal_sum = jnp.float32(0.0)
    card_abs = jnp.float32(0.0)
    l1_sum = jnp.float32(0.0)
    giou_sum = jnp.float32(0.0)
    n_correct = jnp.float32(0.0)

    for b in range(B):                           # batch folded into the block (B small)
        x = logits_ref[b]                        # [C, Q]
        pb = pbox_ref[b]                         # [4, Q]
        lab = lab_ref[b]                         # [NT, 1] int32
        tb = tbox_ref[b]                         # [NT, 4]
        lab_f = lab.astype(jnp.float32)

        # ---- shared transcendentals (used by both matcher cost and focal loss) ----
        e = jnp.exp(-jnp.abs(x))                 # exp(-|x|)
        lp1 = jnp.log(1.0 + e)                   # log(1 + exp(-|x|))
        neg_log_p = jnp.maximum(-x, 0.0) + lp1   # -log(sigmoid(x))   = softplus(-x)
        neg_log_1mp = jnp.maximum(x, 0.0) + lp1  # -log(1-sigmoid(x)) = softplus(x)

        # ---- matcher focal-style class cost (approx reciprocal is fine here) ----
        r = pl.reciprocal(1.0 + e, approx=True)  # sigmoid(|x|), approx
        pm_p = jnp.where(x >= 0.0, r, 1.0 - r)   # sigmoid(x)
        pm = (ALPHA * (1.0 - pm_p) * (1.0 - pm_p) * neg_log_p
              - (1.0 - ALPHA) * pm_p * pm_p * neg_log_1mp)          # [C, Q]

        # class cost via in-kernel label select (no HBM one-hot).
        # TODO(synk): at production C (~91) use a bf16 one-hot [NT,C]@[C,Q] MXU matmul.
        cost_class = jnp.zeros((NT, Q), jnp.float32)
        for c in range(C):                       # static unroll, C small
            cost_class = cost_class + (lab == c).astype(jnp.float32) * pm[c:c + 1, :]

        # pairwise L1 (cdist, p=1)
        cost_bbox = jnp.zeros((NT, Q), jnp.float32)
        for k in range(4):
            cost_bbox = cost_bbox + jnp.abs(tb[:, k:k + 1] - pb[k:k + 1, :])

        # pairwise GIoU (cxcywh -> xyxy)
        px0 = pb[0:1, :] - 0.5 * pb[2:3, :]; py0 = pb[1:2, :] - 0.5 * pb[3:4, :]
        px1 = pb[0:1, :] + 0.5 * pb[2:3, :]; py1 = pb[1:2, :] + 0.5 * pb[3:4, :]
        tx0 = tb[:, 0:1] - 0.5 * tb[:, 2:3]; ty0 = tb[:, 1:2] - 0.5 * tb[:, 3:4]
        tx1 = tb[:, 0:1] + 0.5 * tb[:, 2:3]; ty1 = tb[:, 1:2] + 0.5 * tb[:, 3:4]
        area_p = (px1 - px0) * (py1 - py0)       # [1, Q]
        area_t = (tx1 - tx0) * (ty1 - ty0)       # [NT, 1]
        iw = jnp.maximum(jnp.minimum(tx1, px1) - jnp.maximum(tx0, px0), 0.0)
        ih = jnp.maximum(jnp.minimum(ty1, py1) - jnp.maximum(ty0, py0), 0.0)
        inter = iw * ih                          # [NT, Q]
        union = area_t + area_p - inter
        iou = inter / jnp.maximum(union, EPS)
        cw = jnp.maximum(jnp.maximum(tx1, px1) - jnp.minimum(tx0, px0), 0.0)
        ch = jnp.maximum(jnp.maximum(ty1, py1) - jnp.minimum(ty0, py0), 0.0)
        area_c = cw * ch
        giou_pair = iou - (area_c - union) / jnp.maximum(area_c, EPS)

        cost = (COST_BBOX * cost_bbox + COST_CLASS * cost_class
                + COST_GIOU * (-giou_pair))      # [NT, Q]

        # ---- on-device greedy assignment, one-hot kept in registers ----
        # TODO(synk): not exact Hungarian; targets take the cheapest free query in order.
        taken = jnp.zeros((1, Q), jnp.bool_)
        onehot = jnp.zeros((NT, Q), jnp.float32)
        for j in range(NT):                      # static unroll, NT small
            row = jnp.where(taken, jnp.float32(1e30), cost[j:j + 1, :])
            m = jnp.min(row, axis=1, keepdims=True)
            idx_f = jnp.min(jnp.where(row <= m, lane_f, jnp.float32(Q)),
                            axis=1, keepdims=True)
            match = lane_f == idx_f              # [1, Q] bool, exactly one lane set
            taken = jnp.logical_or(taken, match)
            onehot = onehot + (row_i == j).astype(jnp.float32) * match.astype(jnp.float32)

        # ---- sigmoid focal loss (exact sigmoid), queries on lanes ----
        assigned = jnp.sum(onehot * lab_f, axis=0, keepdims=True)   # [1, Q]
        matched_q = jnp.sum(onehot, axis=0, keepdims=True)          # [1, Q]
        tcls = assigned + (1.0 - matched_q) * float(C)              # C == "no object"
        t = (cls_f == tcls).astype(jnp.float32)                     # [C, Q] one-hot

        inv = 1.0 / (1.0 + e)                    # exact sigmoid(|x|)
        p = jnp.where(x >= 0.0, inv, 1.0 - inv)  # exact sigmoid(x)
        ce = jnp.maximum(x, 0.0) - x * t + lp1   # stable BCE-with-logits
        p_t = p * t + (1.0 - p) * (1.0 - t)
        om = 1.0 - p_t
        alpha_t = ALPHA * t + (1.0 - ALPHA) * (1.0 - t)
        focal_sum = focal_sum + jnp.sum(alpha_t * ce * om * om)

        # ---- cardinality error: argmax over C != C-1 ----
        neg_big = jnp.float32(-1e30)
        full_max = jnp.max(x, axis=0, keepdims=True)                          # [1, Q]
        masked_max = jnp.max(jnp.where(cls_i < (C - 1), x, neg_big),
                             axis=0, keepdims=True)                           # [1, Q]
        card_pred = jnp.sum((masked_max >= full_max).astype(jnp.float32))
        card_abs = card_abs + jnp.abs(card_pred - float(NT))

        # ---- class_error: argmax over classes of matched logits vs label ----
        qam = jnp.min(jnp.where(x >= full_max, cls_f, jnp.float32(C)),
                      axis=0, keepdims=True)                                  # [1, Q]
        matched_cls = jnp.sum(onehot * qam, axis=1, keepdims=True)            # [NT, 1]
        n_correct = n_correct + jnp.sum((matched_cls == lab_f).astype(jnp.float32))

        # ---- matched-pair box losses (gather via one-hot lane sums) ----
        mpx = jnp.sum(onehot * pb[0:1, :], axis=1, keepdims=True)   # [NT, 1] cx
        mpy = jnp.sum(onehot * pb[1:2, :], axis=1, keepdims=True)   # cy
        mpw = jnp.sum(onehot * pb[2:3, :], axis=1, keepdims=True)   # w
        mph = jnp.sum(onehot * pb[3:4, :], axis=1, keepdims=True)   # h
        tcx, tcy, tw, th = tb[:, 0:1], tb[:, 1:2], tb[:, 2:3], tb[:, 3:4]

        l1_sum = l1_sum + jnp.sum(jnp.abs(mpx - tcx) + jnp.abs(mpy - tcy)
                                  + jnp.abs(mpw - tw) + jnp.abs(mph - th))

        sx0 = mpx - 0.5 * mpw; sy0 = mpy - 0.5 * mph
        sx1 = mpx + 0.5 * mpw; sy1 = mpy + 0.5 * mph
        gx0 = tcx - 0.5 * tw;  gy0 = tcy - 0.5 * th
        gx1 = tcx + 0.5 * tw;  gy1 = tcy + 0.5 * th
        area_s = (sx1 - sx0) * (sy1 - sy0)
        area_g = (gx1 - gx0) * (gy1 - gy0)
        iw2 = jnp.maximum(jnp.minimum(sx1, gx1) - jnp.maximum(sx0, gx0), 0.0)
        ih2 = jnp.maximum(jnp.minimum(sy1, gy1) - jnp.maximum(sy0, gy0), 0.0)
        inter2 = iw2 * ih2
        union2 = area_s + area_g - inter2
        iou2 = inter2 / jnp.maximum(union2, EPS)
        cw2 = jnp.maximum(jnp.maximum(sx1, gx1) - jnp.minimum(sx0, gx0), 0.0)
        ch2 = jnp.maximum(jnp.maximum(sy1, gy1) - jnp.minimum(sy0, gy0), 0.0)
        area_c2 = cw2 * ch2
        giou2 = iou2 - (area_c2 - union2) / jnp.maximum(area_c2, EPS)
        giou_sum = giou_sum + jnp.sum(1.0 - giou2)

    # ---- finalize: five scalars, one SMEM output ----
    out_ref[0] = focal_sum / NUM_BOXES                          # loss_ce (= sum/num_boxes)
    out_ref[1] = 100.0 - 100.0 * n_correct / float(B * NT)      # class_error
    out_ref[2] = card_abs / float(B)                            # cardinality_error (mean)
    out_ref[3] = l1_sum / NUM_BOXES                             # loss_bbox
    out_ref[4] = giou_sum / NUM_BOXES                           # loss_giou
    out_ref[5] = jnp.float32(0.0)
    out_ref[6] = jnp.float32(0.0)
    out_ref[7] = jnp.float32(0.0)


# ======================= forward (fully on device, single jit, single kernel) =======================

@jax.jit
def set_criterion_forward(pred_logits, pred_boxes, tgt_labels, tgt_boxes):
    """Equivalent of SetCriterion.forward with losses = ['labels','cardinality','boxes'],
    no aux_outputs / enc_outputs / rego / masks, single process (no all_reduce)."""
    # One layout pass: queries land on lanes for everything the kernel does.
    logits_t = jnp.transpose(pred_logits, (0, 2, 1))          # [B, C, Q]
    pboxes_t = jnp.transpose(pred_boxes, (0, 2, 1))           # [B, 4, Q]
    labels3 = tgt_labels[:, :, None].astype(jnp.int32)        # [B, NT, 1]

    out = pl.pallas_call(
        criterion_kernel,
        out_shape=jax.ShapeDtypeStruct((8,), jnp.float32),
        in_specs=[
            pl.BlockSpec(memory_space=pltpu.MemorySpace.VMEM),   # logits^T
            pl.BlockSpec(memory_space=pltpu.MemorySpace.VMEM),   # boxes^T
            pl.BlockSpec(memory_space=pltpu.MemorySpace.VMEM),   # labels
            pl.BlockSpec(memory_space=pltpu.MemorySpace.VMEM),   # target boxes
        ],
        out_specs=pl.BlockSpec(memory_space=pltpu.MemorySpace.SMEM),
    )(logits_t, pboxes_t, labels3, tgt_boxes)

    return {
        'loss_ce': out[0],
        'class_error': out[1],
        'cardinality_error': out[2],
        'loss_bbox': out[3],
        'loss_giou': out[4],
    }


# ======================= main =======================

if __name__ == "__main__":
    key = jax.random.PRNGKey(0)
    k1, k2, k3, k4 = jax.random.split(key, 4)

    pred_logits = jax.random.normal(k1, (B, Q, C), jnp.float32)
    pred_boxes = jax.nn.sigmoid(jax.random.normal(k2, (B, Q, 4), jnp.float32))
    tgt_labels = jax.random.randint(k3, (B, NT), 0, C, dtype=jnp.int32)
    tgt_boxes = jax.random.uniform(k4, (B, NT, 4), jnp.float32, 0.1, 0.9)

    losses = set_criterion_forward(pred_logits, pred_boxes, tgt_labels, tgt_boxes)
    losses = jax.block_until_ready(losses)

    for name, v in losses.items():
        val = float(v)
        if not math.isfinite(val):
            raise RuntimeError(f"non-finite loss {name}={val}")
    print("KERNEL_OK")
</pallas_src>

<mosaic_0001>
module attributes {stable_mosaic.version = 11 : i64} {
  func.func @criterion_kernel(%arg0: memref<2x8x16xf32, #tpu.memory_space<vmem>>, %arg1: memref<2x4x16xf32, #tpu.memory_space<vmem>>, %arg2: memref<2x4x1xi32, #tpu.memory_space<vmem>>, %arg3: memref<2x4x4xf32, #tpu.memory_space<vmem>>, %arg4: memref<8xf32, #tpu.memory_space<smem>>) attributes {dimension_semantics = [], scalar_prefetch = 0 : i64, scratch_operands = 0 : i64, tpu.core_type = #tpu.core_type<tc>} {
    %0 = tpu.iota {dimensions = array<i32: 1>} : vector<1x16xi32>
    %1 = arith.sitofp %0 : vector<1x16xi32> to vector<1x16xf32>
    %2 = tpu.iota {dimensions = array<i32: 0>} : vector<8x16xi32>
    %3 = arith.sitofp %2 : vector<8x16xi32> to vector<8x16xf32>
    %4 = tpu.iota {dimensions = array<i32: 0>} : vector<4x1xi32>
    %c0 = arith.constant 0 : index
    %c0_0 = arith.constant 0 : index
    %c0_1 = arith.constant 0 : index
    %5 = vector.load %arg0[%c0, %c0_0, %c0_1] : memref<2x8x16xf32, #tpu.memory_space<vmem>>, vector<1x8x16xf32>
    %6 = vector.shape_cast %5 : vector<1x8x16xf32> to vector<8x16xf32>
    %c0_2 = arith.constant 0 : index
    %c0_3 = arith.constant 0 : index
    %c0_4 = arith.constant 0 : index
    %7 = vector.load %arg1[%c0_2, %c0_3, %c0_4] : memref<2x4x16xf32, #tpu.memory_space<vmem>>, vector<1x4x16xf32>
    %8 = vector.shape_cast %7 : vector<1x4x16xf32> to vector<4x16xf32>
    %c0_5 = arith.constant 0 : index
    %c0_6 = arith.constant 0 : index
    %c0_7 = arith.constant 0 : index
    %9 = vector.load %arg2[%c0_5, %c0_6, %c0_7] : memref<2x4x1xi32, #tpu.memory_space<vmem>>, vector<1x4x1xi32>
    %10 = vector.shape_cast %9 : vector<1x4x1xi32> to vector<4x1xi32>
    %c0_8 = arith.constant 0 : index
    %c0_9 = arith.constant 0 : index
    %c0_10 = arith.constant 0 : index
    %11 = vector.load %arg3[%c0_8, %c0_9, %c0_10] : memref<2x4x4xf32, #tpu.memory_space<vmem>>, vector<1x4x4xf32>
    %12 = vector.shape_cast %11 : vector<1x4x4xf32> to vector<4x4xf32>
    %13 = arith.sitofp %10 : vector<4x1xi32> to vector<4x1xf32>
    %14 = math.absf %6 : vector<8x16xf32>
    %cst = arith.constant 0.000000e+00 : f32
    %15 = vector.broadcast %cst : f32 to vector<8x16xf32>
    %16 = arith.subf %15, %14 : vector<8x16xf32>
    %17 = math.exp %16 : vector<8x16xf32>
    %cst_11 = arith.constant 1.000000e+00 : f32
    %18 = vector.broadcast %cst_11 : f32 to vector<8x16xf32>
    %19 = arith.addf %18, %17 : vector<8x16xf32>
    %20 = math.log %19 : vector<8x16xf32>
    %cst_12 = arith.constant 0.000000e+00 : f32
    %21 = vector.broadcast %cst_12 : f32 to vector<8x16xf32>
    %22 = arith.subf %21, %6 : vector<8x16xf32>
    %cst_13 = arith.constant 0.000000e+00 : f32
    %23 = vector.broadcast %cst_13 : f32 to vector<8x16xf32>
    %24 = arith.maximumf %22, %23 : vector<8x16xf32>
    %25 = arith.addf %24, %20 : vector<8x16xf32>
    %cst_14 = arith.constant 0.000000e+00 : f32
    %26 = vector.broadcast %cst_14 : f32 to vector<8x16xf32>
    %27 = arith.maximumf %6, %26 : vector<8x16xf32>
    %28 = arith.addf %27, %20 : vector<8x16xf32>
    %cst_15 = arith.constant 1.000000e+00 : f32
    %29 = vector.broadcast %cst_15 : f32 to vector<8x16xf32>
    %30 = arith.addf %29, %17 : vector<8x16xf32>
    %31 = tpu.reciprocal %30 {approx = true} : vector<8x16xf32> -> vector<8x16xf32>
    %cst_16 = arith.constant 0.000000e+00 : f32
    %32 = vector.broadcast %cst_16 : f32 to vector<8x16xf32>
    %33 = arith.cmpf oge, %6, %32 : vector<8x16xf32>
    %cst_17 = arith.constant 1.000000e+00 : f32
    %34 = vector.broadcast %cst_17 : f32 to vector<8x16xf32>
    %35 = arith.subf %34, %31 : vector<8x16xf32>
    %36 = arith.select %33, %31, %35 : vector<8x16xi1>, vector<8x16xf32>
    %cst_18 = arith.constant 1.000000e+00 : f32
    %37 = vector.broadcast %cst_18 : f32 to vector<8x16xf32>
    %38 = arith.subf %37, %36 : vector<8x16xf32>
    %cst_19 = arith.constant 2.500000e-01 : f32
    %39 = vector.broadcast %cst_19 : f32 to vector<8x16xf32>
    %40 = arith.mulf %39, %38 : vector<8x16xf32>
    %cst_20 = arith.constant 1.000000e+00 : f32
    %41 = vector.broadcast %cst_20 : f32 to vector<8x16xf32>
    %42 = arith.subf %41, %36 : vector<8x16xf32>
    %43 = arith.mulf %40, %42 : vector<8x16xf32>
    %44 = arith.mulf %43, %25 : vector<8x16xf32>
    %cst_21 = arith.constant 7.500000e-01 : f32
    %45 = vector.broadcast %cst_21 : f32 to vector<8x16xf32>
    %46 = arith.mulf %45, %36 : vector<8x16xf32>
    %47 = arith.mulf %46, %36 : vector<8x16xf32>
    %48 = arith.mulf %47, %28 : vector<8x16xf32>
    %49 = arith.subf %44, %48 : vector<8x16xf32>
    %cst_22 = arith.constant 0.000000e+00 : f32
    %50 = vector.broadcast %cst_22 : f32 to vector<4x16xf32>
    %c0_i32 = arith.constant 0 : i32
    %51 = vector.broadcast %c0_i32 : i32 to vector<4x1xi32>
    %52 = arith.cmpi eq, %10, %51 : vector<4x1xi32>
    %53 = arith.extui %52 : vector<4x1xi1> to vector<4x1xi32>
    %54 = arith.sitofp %53 : vector<4x1xi32> to vector<4x1xf32>
    %55 = vector.extract_strided_slice %49 {offsets = [0, 0], sizes = [1, 16], strides = [1, 1]} : vector<8x16xf32> to vector<1x16xf32>
    %56 = vector.broadcast %54 : vector<4x1xf32> to vector<4x16xf32>
    %57 = vector.broadcast %55 : vector<1x16xf32> to vector<4x16xf32>
    %58 = arith.mulf %56, %57 : vector<4x16xf32>
    %59 = arith.addf %50, %58 : vector<4x16xf32>
    %c1_i32 = arith.constant 1 : i32
    %60 = vector.broadcast %c1_i32 : i32 to vector<4x1xi32>
    %61 = arith.cmpi eq, %10, %60 : vector<4x1xi32>
    %62 = arith.extui %61 : vector<4x1xi1> to vector<4x1xi32>
    %63 = arith.sitofp %62 : vector<4x1xi32> to vector<4x1xf32>
    %64 = vector.extract_strided_slice %49 {offsets = [1, 0], sizes = [1, 16], strides = [1, 1]} : vector<8x16xf32> to vector<1x16xf32>
    %65 = vector.broadcast %63 : vector<4x1xf32> to vector<4x16xf32>
    %66 = vector.broadcast %64 : vector<1x16xf32> to vector<4x16xf32>
    %67 = arith.mulf %65, %66 : vector<4x16xf32>
    %68 = arith.addf %59, %67 : vector<4x16xf32>
    %c2_i32 = arith.constant 2 : i32
    %69 = vector.broadcast %c2_i32 : i32 to vector<4x1xi32>
    %70 = arith.cmpi eq, %10, %69 : vector<4x1xi32>
    %71 = arith.extui %70 : vector<4x1xi1> to vector<4x1xi32>
    %72 = arith.sitofp %71 : vector<4x1xi32> to vector<4x1xf32>
    %73 = vector.extract_strided_slice %49 {offsets = [2, 0], sizes = [1, 16], strides = [1, 1]} : vector<8x16xf32> to vector<1x16xf32>
    %74 = vector.broadcast %72 : vector<4x1xf32> to vector<4x16xf32>
    %75 = vector.broadcast %73 : vector<1x16xf32> to vector<4x16xf32>
    %76 = arith.mulf %74, %75 : vector<4x16xf32>
    %77 = arith.addf %68, %76 : vector<4x16xf32>
    %c3_i32 = arith.constant 3 : i32
    %78 = vector.broadcast %c3_i32 : i32 to vector<4x1xi32>
    %79 = arith.cmpi eq, %10, %78 : vector<4x1xi32>
    %80 = arith.extui %79 : vector<4x1xi1> to vector<4x1xi32>
    %81 = arith.sitofp %80 : vector<4x1xi32> to vector<4x1xf32>
    %82 = vector.extract_strided_slice %49 {offsets = [3, 0], sizes = [1, 16], strides = [1, 1]} : vector<8x16xf32> to vector<1x16xf32>
    %83 = vector.broadcast %81 : vector<4x1xf32> to vector<4x16xf32>
    %84 = vector.broadcast %82 : vector<1x16xf32> to vector<4x16xf32>
    %85 = arith.mulf %83, %84 : vector<4x16xf32>
    %86 = arith.addf %77, %85 : vector<4x16xf32>
    %c4_i32 = arith.constant 4 : i32
    %87 = vector.broadcast %c4_i32 : i32 to vector<4x1xi32>
    %88 = arith.cmpi eq, %10, %87 : vector<4x1xi32>
    %89 = arith.extui %88 : vector<4x1xi1> to vector<4x1xi32>
    %90 = arith.sitofp %89 : vector<4x1xi32> to vector<4x1xf32>
    %91 = vector.extract_strided_slice %49 {offsets = [4, 0], sizes = [1, 16], strides = [1, 1]} : vector<8x16xf32> to vector<1x16xf32>
    %92 = vector.broadcast %90 : vector<4x1xf32> to vector<4x16xf32>
    %93 = vector.broadcast %91 : vector<1x16xf32> to vector<4x16xf32>
    %94 = arith.mulf %92, %93 : vector<4x16xf32>
    %95 = arith.addf %86, %94 : vector<4x16xf32>
    %c5_i32 = arith.constant 5 : i32
    %96 = vector.broadcast %c5_i32 : i32 to vector<4x1xi32>
    %97 = arith.cmpi eq, %10, %96 : vector<4x1xi32>
    %98 = arith.extui %97 : vector<4x1xi1> to vector<4x1xi32>
    %99 = arith.sitofp %98 : vector<4x1xi32> to vector<4x1xf32>
    %100 = vector.extract_strided_slice %49 {offsets = [5, 0], sizes = [1, 16], strides = [1, 1]} : vector<8x16xf32> to vector<1x16xf32>
    %101 = vector.broadcast %99 : vector<4x1xf32> to vector<4x16xf32>
    %102 = vector.broadcast %100 : vector<1x16xf32> to vector<4x16xf32>
    %103 = arith.mulf %101, %102 : vector<4x16xf32>
    %104 = arith.addf %95, %103 : vector<4x16xf32>
    %c6_i32 = arith.constant 6 : i32
    %105 = vector.broadcast %c6_i32 : i32 to vector<4x1xi32>
    %106 = arith.cmpi eq, %10, %105 : vector<4x1xi32>
    %107 = arith.extui %106 : vector<4x1xi1> to vector<4x1xi32>
    %108 = arith.sitofp %107 : vector<4x1xi32> to vector<4x1xf32>
    %109 = vector.extract_strided_slice %49 {offsets = [6, 0], sizes = [1, 16], strides = [1, 1]} : vector<8x16xf32> to vector<1x16xf32>
    %110 = vector.broadcast %108 : vector<4x1xf32> to vector<4x16xf32>
    %111 = vector.broadcast %109 : vector<1x16xf32> to vector<4x16xf32>
    %112 = arith.mulf %110, %111 : vector<4x16xf32>
    %113 = arith.addf %104, %112 : vector<4x16xf32>
    %c7_i32 = arith.constant 7 : i32
    %114 = vector.broadcast %c7_i32 : i32 to vector<4x1xi32>
    %115 = arith.cmpi eq, %10, %114 : vector<4x1xi32>
    %116 = arith.extui %115 : vector<4x1xi1> to vector<4x1xi32>
    %117 = arith.sitofp %116 : vector<4x1xi32> to vector<4x1xf32>
    %118 = vector.extract_strided_slice %49 {offsets = [7, 0], sizes = [1, 16], strides = [1, 1]} : vector<8x16xf32> to vector<1x16xf32>
    %119 = vector.broadcast %117 : vector<4x1xf32> to vector<4x16xf32>
    %120 = vector.broadcast %118 : vector<1x16xf32> to vector<4x16xf32>
    %121 = arith.mulf %119, %120 : vector<4x16xf32>
    %122 = arith.addf %113, %121 : vector<4x16xf32>
    %cst_23 = arith.constant 0.000000e+00 : f32
    %123 = vector.broadcast %cst_23 : f32 to vector<4x16xf32>
    %124 = vector.extract_strided_slice %12 {offsets = [0, 0], sizes = [4, 1], strides = [1, 1]} : vector<4x4xf32> to vector<4x1xf32>
    %125 = vector.extract_strided_slice %8 {offsets = [0, 0], sizes = [1, 16], strides = [1, 1]} : vector<4x16xf32> to vector<1x16xf32>
    %126 = vector.broadcast %124 : vector<4x1xf32> to vector<4x16xf32>
    %127 = vector.broadcast %125 : vector<1x16xf32> to vector<4x16xf32>
    %128 = arith.subf %126, %127 : vector<4x16xf32>
    %129 = math.absf %128 : vector<4x16xf32>
    %130 = arith.addf %123, %129 : vector<4x16xf32>
    %131 = vector.extract_strided_slice %12 {offsets = [0, 1], sizes = [4, 1], strides = [1, 1]} : vector<4x4xf32> to vector<4x1xf32>
    %132 = vector.extract_strided_slice %8 {offsets = [1, 0], sizes = [1, 16], strides = [1, 1]} : vector<4x16xf32> to vector<1x16xf32>
    %133 = vector.broadcast %131 : vector<4x1xf32> to vector<4x16xf32>
    %134 = vector.broadcast %132 : vector<1x16xf32> to vector<4x16xf32>
    %135 = arith.subf %133, %134 : vector<4x16xf32>
    %136 = math.absf %135 : vector<4x16xf32>
    %137 = arith.addf %130, %136 : vector<4x16xf32>
    %138 = vector.extract_strided_slice %12 {offsets = [0, 2], sizes = [4, 1], strides = [1, 1]} : vector<4x4xf32> to vector<4x1xf32>
    %139 = vector.extract_strided_slice %8 {offsets = [2, 0], sizes = [1, 16], strides = [1, 1]} : vector<4x16xf32> to vector<1x16xf32>
    %140 = vector.broadcast %138 : vector<4x1xf32> to vector<4x16xf32>
    %141 = vector.broadcast %139 : vector<1x16xf32> to vector<4x16xf32>
    %142 = arith.subf %140, %141 : vector<4x16xf32>
    %143 = math.absf %142 : vector<4x16xf32>
    %144 = arith.addf %137, %143 : vector<4x16xf32>
    %145 = vector.extract_strided_slice %12 {offsets = [0, 3], sizes = [4, 1], strides = [1, 1]} : vector<4x4xf32> to vector<4x1xf32>
    %146 = vector.extract_strided_slice %8 {offsets = [3, 0], sizes = [1, 16], strides = [1, 1]} : vector<4x16xf32> to vector<1x16xf32>
    %147 = vector.broadcast %145 : vector<4x1xf32> to vector<4x16xf32>
    %148 = vector.broadcast %146 : vector<1x16xf32> to vector<4x16xf32>
    %149 = arith.subf %147, %148 : vector<4x16xf32>
    %150 = math.absf %149 : vector<4x16xf32>
    %151 = arith.addf %144, %150 : vector<4x16xf32>
    %152 = vector.extract_strided_slice %8 {offsets = [0, 0], sizes = [1, 16], strides = [1, 1]} : vector<4x16xf32> to vector<1x16xf32>
    %153 = vector.extract_strided_slice %8 {offsets = [2, 0], sizes = [1, 16], strides = [1, 1]} : vector<4x16xf32> to vector<1x16xf32>
    %cst_24 = arith.constant 5.000000e-01 : f32
    %154 = vector.broadcast %cst_24 : f32 to vector<1x16xf32>
    %155 = arith.mulf %154, %153 : vector<1x16xf32>
    %156 = arith.subf %152, %155 : vector<1x16xf32>
    %157 = vector.extract_strided_slice %8 {offsets = [1, 0], sizes = [1, 16], strides = [1, 1]} : vector<4x16xf32> to vector<1x16xf32>
    %158 = vector.extract_strided_slice %8 {offsets = [3, 0], sizes = [1, 16], strides = [1, 1]} : vector<4x16xf32> to vector<1x16xf32>
    %cst_25 = arith.constant 5.000000e-01 : f32
    %159 = vector.broadcast %cst_25 : f32 to vector<1x16xf32>
    %160 = arith.mulf %159, %158 : vector<1x16xf32>
    %161 = arith.subf %157, %160 : vector<1x16xf32>
    %162 = vector.extract_strided_slice %8 {offsets = [0, 0], sizes = [1, 16], strides = [1, 1]} : vector<4x16xf32> to vector<1x16xf32>
    %163 = vector.extract_strided_slice %8 {offsets = [2, 0], sizes = [1, 16], strides = [1, 1]} : vector<4x16xf32> to vector<1x16xf32>
    %cst_26 = arith.constant 5.000000e-01 : f32
    %164 = vector.broadcast %cst_26 : f32 to vector<1x16xf32>
    %165 = arith.mulf %164, %163 : vector<1x16xf32>
    %166 = arith.addf %162, %165 : vector<1x16xf32>
    %167 = vector.extract_strided_slice %8 {offsets = [1, 0], sizes = [1, 16], strides = [1, 1]} : vector<4x16xf32> to vector<1x16xf32>
    %168 = vector.extract_strided_slice %8 {offsets = [3, 0], sizes = [1, 16], strides = [1, 1]} : vector<4x16xf32> to vector<1x16xf32>
    %cst_27 = arith.constant 5.000000e-01 : f32
    %169 = vector.broadcast %cst_27 : f32 to vector<1x16xf32>
    %170 = arith.mulf %169, %168 : vector<1x16xf32>
    %171 = arith.addf %167, %170 : vector<1x16xf32>
    %172 = vector.extract_strided_slice %12 {offsets = [0, 0], sizes = [4, 1], strides = [1, 1]} : vector<4x4xf32> to vector<4x1xf32>
    %173 = vector.extract_strided_slice %12 {offsets = [0, 2], sizes = [4, 1], strides = [1, 1]} : vector<4x4xf32> to vector<4x1xf32>
    %cst_28 = arith.constant 5.000000e-01 : f32
    %174 = vector.broadcast %cst_28 : f32 to vector<4x1xf32>
    %175 = arith.mulf %174, %173 : vector<4x1xf32>
    %176 = arith.subf %172, %175 : vector<4x1xf32>
    %177 = vector.extract_strided_slice %12 {offsets = [0, 1], sizes = [4, 1], strides = [1, 1]} : vector<4x4xf32> to vector<4x1xf32>
    %178 = vector.extract_strided_slice %12 {offsets = [0, 3], sizes = [4, 1], strides = [1, 1]} : vector<4x4xf32> to vector<4x1xf32>
    %cst_29 = arith.constant 5.000000e-01 : f32
    %179 = vector.broadcast %cst_29 : f32 to vector<4x1xf32>
    %180 = arith.mulf %179, %178 : vector<4x1xf32>
    %181 = arith.subf %177, %180 : vector<4x1xf32>
    %182 = vector.extract_strided_slice %12 {offsets = [0, 0], sizes = [4, 1], strides = [1, 1]} : vector<4x4xf32> to vector<4x1xf32>
    %183 = vector.extract_strided_slice %12 {offsets = [0, 2], sizes = [4, 1], strides = [1, 1]} : vector<4x4xf32> to vector<4x1xf32>
    %cst_30 = arith.constant 5.000000e-01 : f32
    %184 = vector.broadcast %cst_30 : f32 to vector<4x1xf32>
    %185 = arith.mulf %184, %183 : vector<4x1xf32>
    %186 = arith.addf %182, %185 : vector<4x1xf32>
    %187 = vector.extract_strided_slice %12 {offsets = [0, 1], sizes = [4, 1], strides = [1, 1]} : vector<4x4xf32> to vector<4x1xf32>
    %188 = vector.extract_strided_slice %12 {offsets = [0, 3], sizes = [4, 1], strides = [1, 1]} : vector<4x4xf32> to vector<4x1xf32>
    %cst_31 = arith.constant 5.000000e-01 : f32
    %189 = vector.broadcast %cst_31 : f32 to vector<4x1xf32>
    %190 = arith.mulf %189, %188 : vector<4x1xf32>
    %191 = arith.addf %187, %190 : vector<4x1xf32>
    %192 = arith.subf %166, %156 : vector<1x16xf32>
    %193 = arith.subf %171, %161 : vector<1x16xf32>
    %194 = arith.mulf %192, %193 : vector<1x16xf32>
    %195 = arith.subf %186, %176 : vector<4x1xf32>
    %196 = arith.subf %191, %181 : vector<4x1xf32>
    %197 = arith.mulf %195, %196 : vector<4x1xf32>
    %198 = vector.broadcast %186 : vector<4x1xf32> to vector<4x16xf32>
    %199 = vector.broadcast %166 : vector<1x16xf32> to vector<4x16xf32>
    %200 = arith.minimumf %198, %199 : vector<4x16xf32>
    %201 = vector.broadcast %176 : vector<4x1xf32> to vector<4x16xf32>
    %202 = vector.broadcast %156 : vector<1x16xf32> to vector<4x16xf32>
    %203 = arith.maximumf %201, %202 : vector<4x16xf32>
    %204 = arith.subf %200, %203 : vector<4x16xf32>
    %cst_32 = arith.constant 0.000000e+00 : f32
    %205 = vector.broadcast %cst_32 : f32 to vector<4x16xf32>
    %206 = arith.maximumf %204, %205 : vector<4x16xf32>
    %207 = vector.broadcast %191 : vector<4x1xf32> to vector<4x16xf32>
    %208 = vector.broadcast %171 : vector<1x16xf32> to vector<4x16xf32>
    %209 = arith.minimumf %207, %208 : vector<4x16xf32>
    %210 = vector.broadcast %181 : vector<4x1xf32> to vector<4x16xf32>
    %211 = vector.broadcast %161 : vector<1x16xf32> to vector<4x16xf32>
    %212 = arith.maximumf %210, %211 : vector<4x16xf32>
    %213 = arith.subf %209, %212 : vector<4x16xf32>
    %cst_33 = arith.constant 0.000000e+00 : f32
    %214 = vector.broadcast %cst_33 : f32 to vector<4x16xf32>
    %215 = arith.maximumf %213, %214 : vector<4x16xf32>
    %216 = arith.mulf %206, %215 : vector<4x16xf32>
    %217 = vector.broadcast %197 : vector<4x1xf32> to vector<4x16xf32>
    %218 = vector.broadcast %194 : vector<1x16xf32> to vector<4x16xf32>
    %219 = arith.addf %217, %218 : vector<4x16xf32>
    %220 = arith.subf %219, %216 : vector<4x16xf32>
    %cst_34 = arith.constant 1.000000e-07 : f32
    %221 = vector.broadcast %cst_34 : f32 to vector<4x16xf32>
    %222 = arith.maximumf %220, %221 : vector<4x16xf32>
    %223 = arith.divf %216, %222 : vector<4x16xf32>
    %224 = vector.broadcast %186 : vector<4x1xf32> to vector<4x16xf32>
    %225 = vector.broadcast %166 : vector<1x16xf32> to vector<4x16xf32>
    %226 = arith.maximumf %224, %225 : vector<4x16xf32>
    %227 = vector.broadcast %176 : vector<4x1xf32> to vector<4x16xf32>
    %228 = vector.broadcast %156 : vector<1x16xf32> to vector<4x16xf32>
    %229 = arith.minimumf %227, %228 : vector<4x16xf32>
    %230 = arith.subf %226, %229 : vector<4x16xf32>
    %cst_35 = arith.constant 0.000000e+00 : f32
    %231 = vector.broadcast %cst_35 : f32 to vector<4x16xf32>
    %232 = arith.maximumf %230, %231 : vector<4x16xf32>
    %233 = vector.broadcast %191 : vector<4x1xf32> to vector<4x16xf32>
    %234 = vector.broadcast %171 : vector<1x16xf32> to vector<4x16xf32>
    %235 = arith.maximumf %233, %234 : vector<4x16xf32>
    %236 = vector.broadcast %181 : vector<4x1xf32> to vector<4x16xf32>
    %237 = vector.broadcast %161 : vector<1x16xf32> to vector<4x16xf32>
    %238 = arith.minimumf %236, %237 : vector<4x16xf32>
    %239 = arith.subf %235, %238 : vector<4x16xf32>
    %cst_36 = arith.constant 0.000000e+00 : f32
    %240 = vector.broadcast %cst_36 : f32 to vector<4x16xf32>
    %241 = arith.maximumf %239, %240 : vector<4x16xf32>
    %242 = arith.mulf %232, %241 : vector<4x16xf32>
    %243 = arith.subf %242, %220 : vector<4x16xf32>
    %cst_37 = arith.constant 1.000000e-07 : f32
    %244 = vector.broadcast %cst_37 : f32 to vector<4x16xf32>
    %245 = arith.maximumf %242, %244 : vector<4x16xf32>
    %246 = arith.divf %243, %245 : vector<4x16xf32>
    %247 = arith.subf %223, %246 : vector<4x16xf32>
    %cst_38 = arith.constant 5.000000e+00 : f32
    %248 = vector.broadcast %cst_38 : f32 to vector<4x16xf32>
    %249 = arith.mulf %248, %151 : vector<4x16xf32>
    %cst_39 = arith.constant 2.000000e+00 : f32
    %250 = vector.broadcast %cst_39 : f32 to vector<4x16xf32>
    %251 = arith.mulf %250, %122 : vector<4x16xf32>
    %252 = arith.addf %249, %251 : vector<4x16xf32>
    %cst_40 = arith.constant 0.000000e+00 : f32
    %253 = vector.broadcast %cst_40 : f32 to vector<4x16xf32>
    %254 = arith.subf %253, %247 : vector<4x16xf32>
    %cst_41 = arith.constant 2.000000e+00 : f32
    %255 = vector.broadcast %cst_41 : f32 to vector<4x16xf32>
    %256 = arith.mulf %255, %254 : vector<4x16xf32>
    %257 = arith.addf %252, %256 : vector<4x16xf32>
    %false = arith.constant false
    %258 = vector.broadcast %false : i1 to vector<1x16xi1>
    %cst_42 = arith.constant 0.000000e+00 : f32
    %259 = vector.broadcast %cst_42 : f32 to vector<4x16xf32>
    %260 = vector.extract_strided_slice %257 {offsets = [0, 0], sizes = [1, 16], strides = [1, 1]} : vector<4x16xf32> to vector<1x16xf32>
    %cst_43 = arith.constant 1.000000e+30 : f32
    %261 = vector.broadcast %cst_43 : f32 to vector<1x16xf32>
    %262 = arith.select %258, %261, %260 : vector<1x16xi1>, vector<1x16xf32>
    %cst_44 = arith.constant dense<0x7F800000> : vector<1xf32>
    %263 = vector.multi_reduction <minimumf>, %262, %cst_44 [1] : vector<1x16xf32> to vector<1xf32>
    %264 = vector.shape_cast %263 : vector<1xf32> to vector<1x1xf32>
    %265 = vector.broadcast %264 : vector<1x1xf32> to vector<1x16xf32>
    %266 = arith.cmpf ole, %262, %265 : vector<1x16xf32>
    %cst_45 = arith.constant 1.600000e+01 : f32
    %267 = vector.broadcast %cst_45 : f32 to vector<1x16xf32>
    %268 = arith.select %266, %1, %267 : vector<1x16xi1>, vector<1x16xf32>
    %cst_46 = arith.constant dense<0x7F800000> : vector<1xf32>
    %269 = vector.multi_reduction <minimumf>, %268, %cst_46 [1] : vector<1x16xf32> to vector<1xf32>
    %270 = vector.shape_cast %269 : vector<1xf32> to vector<1x1xf32>
    %271 = vector.broadcast %270 : vector<1x1xf32> to vector<1x16xf32>
    %272 = arith.cmpf oeq, %1, %271 : vector<1x16xf32>
    %273 = arith.ori %258, %272 : vector<1x16xi1>
    %c0_i32_47 = arith.constant 0 : i32
    %274 = vector.broadcast %c0_i32_47 : i32 to vector<4x1xi32>
    %275 = arith.cmpi eq, %4, %274 : vector<4x1xi32>
    %276 = arith.extui %275 : vector<4x1xi1> to vector<4x1xi32>
    %277 = arith.sitofp %276 : vector<4x1xi32> to vector<4x1xf32>
    %278 = arith.extui %272 : vector<1x16xi1> to vector<1x16xi32>
    %279 = arith.sitofp %278 : vector<1x16xi32> to vector<1x16xf32>
    %280 = vector.broadcast %277 : vector<4x1xf32> to vector<4x16xf32>
    %281 = vector.broadcast %279 : vector<1x16xf32> to vector<4x16xf32>
    %282 = arith.mulf %280, %281 : vector<4x16xf32>
    %283 = arith.addf %259, %282 : vector<4x16xf32>
    %284 = vector.extract_strided_slice %257 {offsets = [1, 0], sizes = [1, 16], strides = [1, 1]} : vector<4x16xf32> to vector<1x16xf32>
    %cst_48 = arith.constant 1.000000e+30 : f32
    %285 = vector.broadcast %cst_48 : f32 to vector<1x16xf32>
    %286 = arith.select %273, %285, %284 : vector<1x16xi1>, vector<1x16xf32>
    %cst_49 = arith.constant dense<0x7F800000> : vector<1xf32>
    %287 = vector.multi_reduction <minimumf>, %286, %cst_49 [1] : vector<1x16xf32> to vector<1xf32>
    %288 = vector.shape_cast %287 : vector<1xf32> to vector<1x1xf32>
    %289 = vector.broadcast %288 : vector<1x1xf32> to vector<1x16xf32>
    %290 = arith.cmpf ole, %286, %289 : vector<1x16xf32>
    %cst_50 = arith.constant 1.600000e+01 : f32
    %291 = vector.broadcast %cst_50 : f32 to vector<1x16xf32>
    %292 = arith.select %290, %1, %291 : vector<1x16xi1>, vector<1x16xf32>
    %cst_51 = arith.constant dense<0x7F800000> : vector<1xf32>
    %293 = vector.multi_reduction <minimumf>, %292, %cst_51 [1] : vector<1x16xf32> to vector<1xf32>
    %294 = vector.shape_cast %293 : vector<1xf32> to vector<1x1xf32>
    %295 = vector.broadcast %294 : vector<1x1xf32> to vector<1x16xf32>
    %296 = arith.cmpf oeq, %1, %295 : vector<1x16xf32>
    %297 = arith.ori %273, %296 : vector<1x16xi1>
    %c1_i32_52 = arith.constant 1 : i32
    %298 = vector.broadcast %c1_i32_52 : i32 to vector<4x1xi32>
    %299 = arith.cmpi eq, %4, %298 : vector<4x1xi32>
    %300 = arith.extui %299 : vector<4x1xi1> to vector<4x1xi32>
    %301 = arith.sitofp %300 : vector<4x1xi32> to vector<4x1xf32>
    %302 = arith.extui %296 : vector<1x16xi1> to vector<1x16xi32>
    %303 = arith.sitofp %302 : vector<1x16xi32> to vector<1x16xf32>
    %304 = vector.broadcast %301 : vector<4x1xf32> to vector<4x16xf32>
    %305 = vector.broadcast %303 : vector<1x16xf32> to vector<4x16xf32>
    %306 = arith.mulf %304, %305 : vector<4x16xf32>
    %307 = arith.addf %283, %306 : vector<4x16xf32>
    %308 = vector.extract_strided_slice %257 {offsets = [2, 0], sizes = [1, 16], strides = [1, 1]} : vector<4x16xf32> to vector<1x16xf32>
    %cst_53 = arith.constant 1.000000e+30 : f32
    %309 = vector.broadcast %cst_53 : f32 to vector<1x16xf32>
    %310 = arith.select %297, %309, %308 : vector<1x16xi1>, vector<1x16xf32>
    %cst_54 = arith.constant dense<0x7F800000> : vector<1xf32>
    %311 = vector.multi_reduction <minimumf>, %310, %cst_54 [1] : vector<1x16xf32> to vector<1xf32>
    %312 = vector.shape_cast %311 : vector<1xf32> to vector<1x1xf32>
    %313 = vector.broadcast %312 : vector<1x1xf32> to vector<1x16xf32>
    %314 = arith.cmpf ole, %310, %313 : vector<1x16xf32>
    %cst_55 = arith.constant 1.600000e+01 : f32
    %315 = vector.broadcast %cst_55 : f32 to vector<1x16xf32>
    %316 = arith.select %314, %1, %315 : vector<1x16xi1>, vector<1x16xf32>
    %cst_56 = arith.constant dense<0x7F800000> : vector<1xf32>
    %317 = vector.multi_reduction <minimumf>, %316, %cst_56 [1] : vector<1x16xf32> to vector<1xf32>
    %318 = vector.shape_cast %317 : vector<1xf32> to vector<1x1xf32>
    %319 = vector.broadcast %318 : vector<1x1xf32> to vector<1x16xf32>
    %320 = arith.cmpf oeq, %1, %319 : vector<1x16xf32>
    %321 = arith.ori %297, %320 : vector<1x16xi1>
    %c2_i32_57 = arith.constant 2 : i32
    %322 = vector.broadcast %c2_i32_57 : i32 to vector<4x1xi32>
    %323 = arith.cmpi eq, %4, %322 : vector<4x1xi32>
    %324 = arith.extui %323 : vector<4x1xi1> to vector<4x1xi32>
    %325 = arith.sitofp %324 : vector<4x1xi32> to vector<4x1xf32>
    %326 = arith.extui %320 : vector<1x16xi1> to vector<1x16xi32>
    %327 = arith.sitofp %326 : vector<1x16xi32> to vector<1x16xf32>
    %328 = vector.broadcast %325 : vector<4x1xf32> to vector<4x16xf32>
    %329 = vector.broadcast %327 : vector<1x16xf32> to vector<4x16xf32>
    %330 = arith.mulf %328, %329 : vector<4x16xf32>
    %331 = arith.addf %307, %330 : vector<4x16xf32>
    %332 = vector.extract_strided_slice %257 {offsets = [3, 0], sizes = [1, 16], strides = [1, 1]} : vector<4x16xf32> to vector<1x16xf32>
    %cst_58 = arith.constant 1.000000e+30 : f32
    %333 = vector.broadcast %cst_58 : f32 to vector<1x16xf32>
    %334 = arith.select %321, %333, %332 : vector<1x16xi1>, vector<1x16xf32>
    %cst_59 = arith.constant dense<0x7F800000> : vector<1xf32>
    %335 = vector.multi_reduction <minimumf>, %334, %cst_59 [1] : vector<1x16xf32> to vector<1xf32>
    %336 = vector.shape_cast %335 : vector<1xf32> to vector<1x1xf32>
    %337 = vector.broadcast %336 : vector<1x1xf32> to vector<1x16xf32>
    %338 = arith.cmpf ole, %334, %337 : vector<1x16xf32>
    %cst_60 = arith.constant 1.600000e+01 : f32
    %339 = vector.broadcast %cst_60 : f32 to vector<1x16xf32>
    %340 = arith.select %338, %1, %339 : vector<1x16xi1>, vector<1x16xf32>
    %cst_61 = arith.constant dense<0x7F800000> : vector<1xf32>
    %341 = vector.multi_reduction <minimumf>, %340, %cst_61 [1] : vector<1x16xf32> to vector<1xf32>
    %342 = vector.shape_cast %341 : vector<1xf32> to vector<1x1xf32>
    %343 = vector.broadcast %342 : vector<1x1xf32> to vector<1x16xf32>
    %344 = arith.cmpf oeq, %1, %343 : vector<1x16xf32>
    %c3_i32_62 = arith.constant 3 : i32
    %345 = vector.broadcast %c3_i32_62 : i32 to vector<4x1xi32>
    %346 = arith.cmpi eq, %4, %345 : vector<4x1xi32>
    %347 = arith.extui %346 : vector<4x1xi1> to vector<4x1xi32>
    %348 = arith.sitofp %347 : vector<4x1xi32> to vector<4x1xf32>
    %349 = arith.extui %344 : vector<1x16xi1> to vector<1x16xi32>
    %350 = arith.sitofp %349 : vector<1x16xi32> to vector<1x16xf32>
    %351 = vector.broadcast %348 : vector<4x1xf32> to vector<4x16xf32>
    %352 = vector.broadcast %350 : vector<1x16xf32> to vector<4x16xf32>
    %353 = arith.mulf %351, %352 : vector<4x16xf32>
    %354 = arith.addf %331, %353 : vector<4x16xf32>
    %355 = vector.broadcast %13 : vector<4x1xf32> to vector<4x16xf32>
    %356 = arith.mulf %354, %355 : vector<4x16xf32>
    %cst_63 = arith.constant dense<0.000000e+00> : vector<16xf32>
    %357 = vector.multi_reduction <add>, %356, %cst_63 [0] : vector<4x16xf32> to vector<16xf32>
    %358 = vector.shape_cast %357 : vector<16xf32> to vector<1x16xf32>
    %cst_64 = arith.constant dense<0.000000e+00> : vector<16xf32>
    %359 = vector.multi_reduction <add>, %354, %cst_64 [0] : vector<4x16xf32> to vector<16xf32>
    %360 = vector.shape_cast %359 : vector<16xf32> to vector<1x16xf32>
    %cst_65 = arith.constant 1.000000e+00 : f32
    %361 = vector.broadcast %cst_65 : f32 to vector<1x16xf32>
    %362 = arith.subf %361, %360 : vector<1x16xf32>
    %cst_66 = arith.constant 8.000000e+00 : f32
    %363 = vector.broadcast %cst_66 : f32 to vector<1x16xf32>
    %364 = arith.mulf %362, %363 : vector<1x16xf32>
    %365 = arith.addf %358, %364 : vector<1x16xf32>
    %366 = vector.broadcast %365 : vector<1x16xf32> to vector<8x16xf32>
    %367 = arith.cmpf oeq, %3, %366 : vector<8x16xf32>
    %368 = arith.extui %367 : vector<8x16xi1> to vector<8x16xi32>
    %369 = arith.sitofp %368 : vector<8x16xi32> to vector<8x16xf32>
    %cst_67 = arith.constant 1.000000e+00 : f32
    %370 = vector.broadcast %cst_67 : f32 to vector<8x16xf32>
    %371 = arith.addf %370, %17 : vector<8x16xf32>
    %cst_68 = arith.constant 1.000000e+00 : f32
    %372 = vector.broadcast %cst_68 : f32 to vector<8x16xf32>
    %373 = arith.divf %372, %371 : vector<8x16xf32>
    %cst_69 = arith.constant 0.000000e+00 : f32
    %374 = vector.broadcast %cst_69 : f32 to vector<8x16xf32>
    %375 = arith.cmpf oge, %6, %374 : vector<8x16xf32>
    %cst_70 = arith.constant 1.000000e+00 : f32
    %376 = vector.broadcast %cst_70 : f32 to vector<8x16xf32>
    %377 = arith.subf %376, %373 : vector<8x16xf32>
    %378 = arith.select %375, %373, %377 : vector<8x16xi1>, vector<8x16xf32>
    %cst_71 = arith.constant 0.000000e+00 : f32
    %379 = vector.broadcast %cst_71 : f32 to vector<8x16xf32>
    %380 = arith.maximumf %6, %379 : vector<8x16xf32>
    %381 = arith.mulf %6, %369 : vector<8x16xf32>
    %382 = arith.subf %380, %381 : vector<8x16xf32>
    %383 = arith.addf %382, %20 : vector<8x16xf32>
    %384 = arith.mulf %378, %369 : vector<8x16xf32>
    %cst_72 = arith.constant 1.000000e+00 : f32
    %385 = vector.broadcast %cst_72 : f32 to vector<8x16xf32>
    %386 = arith.subf %385, %378 : vector<8x16xf32>
    %cst_73 = arith.constant 1.000000e+00 : f32
    %387 = vector.broadcast %cst_73 : f32 to vector<8x16xf32>
    %388 = arith.subf %387, %369 : vector<8x16xf32>
    %389 = arith.mulf %386, %388 : vector<8x16xf32>
    %390 = arith.addf %384, %389 : vector<8x16xf32>
    %cst_74 = arith.constant 1.000000e+00 : f32
    %391 = vector.broadcast %cst_74 : f32 to vector<8x16xf32>
    %392 = arith.subf %391, %390 : vector<8x16xf32>
    %cst_75 = arith.constant 2.500000e-01 : f32
    %393 = vector.broadcast %cst_75 : f32 to vector<8x16xf32>
    %394 = arith.mulf %393, %369 : vector<8x16xf32>
    %cst_76 = arith.constant 1.000000e+00 : f32
    %395 = vector.broadcast %cst_76 : f32 to vector<8x16xf32>
    %396 = arith.subf %395, %369 : vector<8x16xf32>
    %cst_77 = arith.constant 7.500000e-01 : f32
    %397 = vector.broadcast %cst_77 : f32 to vector<8x16xf32>
    %398 = arith.mulf %397, %396 : vector<8x16xf32>
    %399 = arith.addf %394, %398 : vector<8x16xf32>
    %400 = arith.mulf %399, %383 : vector<8x16xf32>
    %401 = arith.mulf %400, %392 : vector<8x16xf32>
    %402 = arith.mulf %401, %392 : vector<8x16xf32>
    %403 = vector.shape_cast %402 : vector<8x16xf32> to vector<1x8x16xf32>
    %cst_78 = arith.constant dense<0.000000e+00> : vector<1xf32>
    %404 = vector.multi_reduction <add>, %403, %cst_78 [1, 2] : vector<1x8x16xf32> to vector<1xf32>
    %405 = vector.shape_cast %404 : vector<1xf32> to vector<1x1x1xf32>
    %406 = vector.extract %405[0, 0, 0] : f32 from vector<1x1x1xf32>
    %cst_79 = arith.constant 0.000000e+00 : f32
    %407 = arith.addf %cst_79, %406 : f32
    %cst_80 = arith.constant dense<0xFF800000> : vector<16xf32>
    %408 = vector.multi_reduction <maximumf>, %6, %cst_80 [0] : vector<8x16xf32> to vector<16xf32>
    %409 = vector.shape_cast %408 : vector<16xf32> to vector<1x16xf32>
    %c7_i32_81 = arith.constant 7 : i32
    %410 = vector.broadcast %c7_i32_81 : i32 to vector<8x16xi32>
    %411 = arith.cmpi slt, %2, %410 : vector<8x16xi32>
    %cst_82 = arith.constant -1.000000e+30 : f32
    %412 = vector.broadcast %cst_82 : f32 to vector<8x16xf32>
    %413 = arith.select %411, %6, %412 : vector<8x16xi1>, vector<8x16xf32>
    %cst_83 = arith.constant dense<0xFF800000> : vector<16xf32>
    %414 = vector.multi_reduction <maximumf>, %413, %cst_83 [0] : vector<8x16xf32> to vector<16xf32>
    %415 = vector.shape_cast %414 : vector<16xf32> to vector<1x16xf32>
    %416 = arith.cmpf oge, %415, %409 : vector<1x16xf32>
    %417 = arith.extui %416 : vector<1x16xi1> to vector<1x16xi32>
    %418 = arith.sitofp %417 : vector<1x16xi32> to vector<1x16xf32>
    %419 = vector.shape_cast %418 : vector<1x16xf32> to vector<1x1x16xf32>
    %cst_84 = arith.constant dense<0.000000e+00> : vector<1xf32>
    %420 = vector.multi_reduction <add>, %419, %cst_84 [1, 2] : vector<1x1x16xf32> to vector<1xf32>
    %421 = vector.shape_cast %420 : vector<1xf32> to vector<1x1x1xf32>
    %422 = vector.extract %421[0, 0, 0] : f32 from vector<1x1x1xf32>
    %cst_85 = arith.constant 4.000000e+00 : f32
    %423 = arith.subf %422, %cst_85 : f32
    %424 = math.absf %423 : f32
    %cst_86 = arith.constant 0.000000e+00 : f32
    %425 = arith.addf %cst_86, %424 : f32
    %426 = vector.broadcast %409 : vector<1x16xf32> to vector<8x16xf32>
    %427 = arith.cmpf oge, %6, %426 : vector<8x16xf32>
    %cst_87 = arith.constant 8.000000e+00 : f32
    %428 = vector.broadcast %cst_87 : f32 to vector<8x16xf32>
    %429 = arith.select %427, %3, %428 : vector<8x16xi1>, vector<8x16xf32>
    %cst_88 = arith.constant dense<0x7F800000> : vector<16xf32>
    %430 = vector.multi_reduction <minimumf>, %429, %cst_88 [0] : vector<8x16xf32> to vector<16xf32>
    %431 = vector.shape_cast %430 : vector<16xf32> to vector<1x16xf32>
    %432 = vector.broadcast %431 : vector<1x16xf32> to vector<4x16xf32>
    %433 = arith.mulf %354, %432 : vector<4x16xf32>
    %cst_89 = arith.constant dense<0.000000e+00> : vector<4xf32>
    %434 = vector.multi_reduction <add>, %433, %cst_89 [1] : vector<4x16xf32> to vector<4xf32>
    %435 = vector.shape_cast %434 : vector<4xf32> to vector<4x1xf32>
    %436 = arith.cmpf oeq, %435, %13 : vector<4x1xf32>
    %437 = arith.extui %436 : vector<4x1xi1> to vector<4x1xi32>
    %438 = arith.sitofp %437 : vector<4x1xi32> to vector<4x1xf32>
    %439 = vector.shape_cast %438 : vector<4x1xf32> to vector<1x4x1xf32>
    %cst_90 = arith.constant dense<0.000000e+00> : vector<1xf32>
    %440 = vector.multi_reduction <add>, %439, %cst_90 [1, 2] : vector<1x4x1xf32> to vector<1xf32>
    %441 = vector.shape_cast %440 : vector<1xf32> to vector<1x1x1xf32>
    %442 = vector.extract %441[0, 0, 0] : f32 from vector<1x1x1xf32>
    %cst_91 = arith.constant 0.000000e+00 : f32
    %443 = arith.addf %cst_91, %442 : f32
    %444 = vector.extract_strided_slice %8 {offsets = [0, 0], sizes = [1, 16], strides = [1, 1]} : vector<4x16xf32> to vector<1x16xf32>
    %445 = vector.broadcast %444 : vector<1x16xf32> to vector<4x16xf32>
    %446 = arith.mulf %354, %445 : vector<4x16xf32>
    %cst_92 = arith.constant dense<0.000000e+00> : vector<4xf32>
    %447 = vector.multi_reduction <add>, %446, %cst_92 [1] : vector<4x16xf32> to vector<4xf32>
    %448 = vector.shape_cast %447 : vector<4xf32> to vector<4x1xf32>
    %449 = vector.extract_strided_slice %8 {offsets = [1, 0], sizes = [1, 16], strides = [1, 1]} : vector<4x16xf32> to vector<1x16xf32>
    %450 = vector.broadcast %449 : vector<1x16xf32> to vector<4x16xf32>
    %451 = arith.mulf %354, %450 : vector<4x16xf32>
    %cst_93 = arith.constant dense<0.000000e+00> : vector<4xf32>
    %452 = vector.multi_reduction <add>, %451, %cst_93 [1] : vector<4x16xf32> to vector<4xf32>
    %453 = vector.shape_cast %452 : vector<4xf32> to vector<4x1xf32>
    %454 = vector.extract_strided_slice %8 {offsets = [2, 0], sizes = [1, 16], strides = [1, 1]} : vector<4x16xf32> to vector<1x16xf32>
    %455 = vector.broadcast %454 : vector<1x16xf32> to vector<4x16xf32>
    %456 = arith.mulf %354, %455 : vector<4x16xf32>
    %cst_94 = arith.constant dense<0.000000e+00> : vector<4xf32>
    %457 = vector.multi_reduction <add>, %456, %cst_94 [1] : vector<4x16xf32> to vector<4xf32>
    %458 = vector.shape_cast %457 : vector<4xf32> to vector<4x1xf32>
    %459 = vector.extract_strided_slice %8 {offsets = [3, 0], sizes = [1, 16], strides = [1, 1]} : vector<4x16xf32> to vector<1x16xf32>
    %460 = vector.broadcast %459 : vector<1x16xf32> to vector<4x16xf32>
    %461 = arith.mulf %354, %460 : vector<4x16xf32>
    %cst_95 = arith.constant dense<0.000000e+00> : vector<4xf32>
    %462 = vector.multi_reduction <add>, %461, %cst_95 [1] : vector<4x16xf32> to vector<4xf32>
    %463 = vector.shape_cast %462 : vector<4xf32> to vector<4x1xf32>
    %464 = vector.extract_strided_slice %12 {offsets = [0, 0], sizes = [4, 1], strides = [1, 1]} : vector<4x4xf32> to vector<4x1xf32>
    %465 = vector.extract_strided_slice %12 {offsets = [0, 1], sizes = [4, 1], strides = [1, 1]} : vector<4x4xf32> to vector<4x1xf32>
    %466 = vector.extract_strided_slice %12 {offsets = [0, 2], sizes = [4, 1], strides = [1, 1]} : vector<4x4xf32> to vector<4x1xf32>
    %467 = vector.extract_strided_slice %12 {offsets = [0, 3], sizes = [4, 1], strides = [1, 1]} : vector<4x4xf32> to vector<4x1xf32>
    %468 = arith.subf %448, %464 : vector<4x1xf32>
    %469 = math.absf %468 : vector<4x1xf32>
    %470 = arith.subf %453, %465 : vector<4x1xf32>
    %471 = math.absf %470 : vector<4x1xf32>
    %472 = arith.addf %469, %471 : vector<4x1xf32>
    %473 = arith.subf %458, %466 : vector<4x1xf32>
    %474 = math.absf %473 : vector<4x1xf32>
    %475 = arith.addf %472, %474 : vector<4x1xf32>
    %476 = arith.subf %463, %467 : vector<4x1xf32>
    %477 = math.absf %476 : vector<4x1xf32>
    %478 = arith.addf %475, %477 : vector<4x1xf32>
    %479 = vector.shape_cast %478 : vector<4x1xf32> to vector<1x4x1xf32>
    %cst_96 = arith.constant dense<0.000000e+00> : vector<1xf32>
    %480 = vector.multi_reduction <add>, %479, %cst_96 [1, 2] : vector<1x4x1xf32> to vector<1xf32>
    %481 = vector.shape_cast %480 : vector<1xf32> to vector<1x1x1xf32>
    %482 = vector.extract %481[0, 0, 0] : f32 from vector<1x1x1xf32>
    %cst_97 = arith.constant 0.000000e+00 : f32
    %483 = arith.addf %cst_97, %482 : f32
    %cst_98 = arith.constant 5.000000e-01 : f32
    %484 = vector.broadcast %cst_98 : f32 to vector<4x1xf32>
    %485 = arith.mulf %484, %458 : vector<4x1xf32>
    %486 = arith.subf %448, %485 : vector<4x1xf32>
    %cst_99 = arith.constant 5.000000e-01 : f32
    %487 = vector.broadcast %cst_99 : f32 to vector<4x1xf32>
    %488 = arith.mulf %487, %463 : vector<4x1xf32>
    %489 = arith.subf %453, %488 : vector<4x1xf32>
    %cst_100 = arith.constant 5.000000e-01 : f32
    %490 = vector.broadcast %cst_100 : f32 to vector<4x1xf32>
    %491 = arith.mulf %490, %458 : vector<4x1xf32>
    %492 = arith.addf %448, %491 : vector<4x1xf32>
    %cst_101 = arith.constant 5.000000e-01 : f32
    %493 = vector.broadcast %cst_101 : f32 to vector<4x1xf32>
    %494 = arith.mulf %493, %463 : vector<4x1xf32>
    %495 = arith.addf %453, %494 : vector<4x1xf32>
    %cst_102 = arith.constant 5.000000e-01 : f32
    %496 = vector.broadcast %cst_102 : f32 to vector<4x1xf32>
    %497 = arith.mulf %496, %466 : vector<4x1xf32>
    %498 = arith.subf %464, %497 : vector<4x1xf32>
    %cst_103 = arith.constant 5.000000e-01 : f32
    %499 = vector.broadcast %cst_103 : f32 to vector<4x1xf32>
    %500 = arith.mulf %499, %467 : vector<4x1xf32>
    %501 = arith.subf %465, %500 : vector<4x1xf32>
    %cst_104 = arith.constant 5.000000e-01 : f32
    %502 = vector.broadcast %cst_104 : f32 to vector<4x1xf32>
    %503 = arith.mulf %502, %466 : vector<4x1xf32>
    %504 = arith.addf %464, %503 : vector<4x1xf32>
    %cst_105 = arith.constant 5.000000e-01 : f32
    %505 = vector.broadcast %cst_105 : f32 to vector<4x1xf32>
    %506 = arith.mulf %505, %467 : vector<4x1xf32>
    %507 = arith.addf %465, %506 : vector<4x1xf32>
    %508 = arith.subf %492, %486 : vector<4x1xf32>
    %509 = arith.subf %495, %489 : vector<4x1xf32>
    %510 = arith.mulf %508, %509 : vector<4x1xf32>
    %511 = arith.subf %504, %498 : vector<4x1xf32>
    %512 = arith.subf %507, %501 : vector<4x1xf32>
    %513 = arith.mulf %511, %512 : vector<4x1xf32>
    %514 = arith.minimumf %492, %504 : vector<4x1xf32>
    %515 = arith.maximumf %486, %498 : vector<4x1xf32>
    %516 = arith.subf %514, %515 : vector<4x1xf32>
    %cst_106 = arith.constant 0.000000e+00 : f32
    %517 = vector.broadcast %cst_106 : f32 to vector<4x1xf32>
    %518 = arith.maximumf %516, %517 : vector<4x1xf32>
    %519 = arith.minimumf %495, %507 : vector<4x1xf32>
    %520 = arith.maximumf %489, %501 : vector<4x1xf32>
    %521 = arith.subf %519, %520 : vector<4x1xf32>
    %cst_107 = arith.constant 0.000000e+00 : f32
    %522 = vector.broadcast %cst_107 : f32 to vector<4x1xf32>
    %523 = arith.maximumf %521, %522 : vector<4x1xf32>
    %524 = arith.mulf %518, %523 : vector<4x1xf32>
    %525 = arith.addf %510, %513 : vector<4x1xf32>
    %526 = arith.subf %525, %524 : vector<4x1xf32>
    %cst_108 = arith.constant 1.000000e-07 : f32
    %527 = vector.broadcast %cst_108 : f32 to vector<4x1xf32>
    %528 = arith.maximumf %526, %527 : vector<4x1xf32>
    %529 = arith.divf %524, %528 : vector<4x1xf32>
    %530 = arith.maximumf %492, %504 : vector<4x1xf32>
    %531 = arith.minimumf %486, %498 : vector<4x1xf32>
    %532 = arith.subf %530, %531 : vector<4x1xf32>
    %cst_109 = arith.constant 0.000000e+00 : f32
    %533 = vector.broadcast %cst_109 : f32 to vector<4x1xf32>
    %534 = arith.maximumf %532, %533 : vector<4x1xf32>
    %535 = arith.maximumf %495, %507 : vector<4x1xf32>
    %536 = arith.minimumf %489, %501 : vector<4x1xf32>
    %537 = arith.subf %535, %536 : vector<4x1xf32>
    %cst_110 = arith.constant 0.000000e+00 : f32
    %538 = vector.broadcast %cst_110 : f32 to vector<4x1xf32>
    %539 = arith.maximumf %537, %538 : vector<4x1xf32>
    %540 = arith.mulf %534, %539 : vector<4x1xf32>
    %541 = arith.subf %540, %526 : vector<4x1xf32>
    %cst_111 = arith.constant 1.000000e-07 : f32
    %542 = vector.broadcast %cst_111 : f32 to vector<4x1xf32>
    %543 = arith.maximumf %540, %542 : vector<4x1xf32>
    %544 = arith.divf %541, %543 : vector<4x1xf32>
    %545 = arith.subf %529, %544 : vector<4x1xf32>
    %cst_112 = arith.constant 1.000000e+00 : f32
    %546 = vector.broadcast %cst_112 : f32 to vector<4x1xf32>
    %547 = arith.subf %546, %545 : vector<4x1xf32>
    %548 = vector.shape_cast %547 : vector<4x1xf32> to vector<1x4x1xf32>
    %cst_113 = arith.constant dense<0.000000e+00> : vector<1xf32>
    %549 = vector.multi_reduction <add>, %548, %cst_113 [1, 2] : vector<1x4x1xf32> to vector<1xf32>
    %550 = vector.shape_cast %549 : vector<1xf32> to vector<1x1x1xf32>
    %551 = vector.extract %550[0, 0, 0] : f32 from vector<1x1x1xf32>
    %cst_114 = arith.constant 0.000000e+00 : f32
    %552 = arith.addf %cst_114, %551 : f32
    %c1 = arith.constant 1 : index
    %c0_115 = arith.constant 0 : index
    %c0_116 = arith.constant 0 : index
    %553 = vector.load %arg0[%c1, %c0_115, %c0_116] : memref<2x8x16xf32, #tpu.memory_space<vmem>>, vector<1x8x16xf32>
    %554 = vector.shape_cast %553 : vector<1x8x16xf32> to vector<8x16xf32>
    %c1_117 = arith.constant 1 : index
    %c0_118 = arith.constant 0 : index
    %c0_119 = arith.constant 0 : index
    %555 = vector.load %arg1[%c1_117, %c0_118, %c0_119] : memref<2x4x16xf32, #tpu.memory_space<vmem>>, vector<1x4x16xf32>
    %556 = vector.shape_cast %555 : vector<1x4x16xf32> to vector<4x16xf32>
    %c1_120 = arith.constant 1 : index
    %c0_121 = arith.constant 0 : index
    %c0_122 = arith.constant 0 : index
    %557 = vector.load %arg2[%c1_120, %c0_121, %c0_122] : memref<2x4x1xi32, #tpu.memory_space<vmem>>, vector<1x4x1xi32>
    %558 = vector.shape_cast %557 : vector<1x4x1xi32> to vector<4x1xi32>
    %c1_123 = arith.constant 1 : index
    %c0_124 = arith.constant 0 : index
    %c0_125 = arith.constant 0 : index
    %559 = vector.load %arg3[%c1_123, %c0_124, %c0_125] : memref<2x4x4xf32, #tpu.memory_space<vmem>>, vector<1x4x4xf32>
    %560 = vector.shape_cast %559 : vector<1x4x4xf32> to vector<4x4xf32>
    %561 = arith.sitofp %558 : vector<4x1xi32> to vector<4x1xf32>
    %562 = math.absf %554 : vector<8x16xf32>
    %cst_126 = arith.constant 0.000000e+00 : f32
    %563 = vector.broadcast %cst_126 : f32 to vector<8x16xf32>
    %564 = arith.subf %563, %562 : vector<8x16xf32>
    %565 = math.exp %564 : vector<8x16xf32>
    %cst_127 = arith.constant 1.000000e+00 : f32
    %566 = vector.broadcast %cst_127 : f32 to vector<8x16xf32>
    %567 = arith.addf %566, %565 : vector<8x16xf32>
    %568 = math.log %567 : vector<8x16xf32>
    %cst_128 = arith.constant 0.000000e+00 : f32
    %569 = vector.broadcast %cst_128 : f32 to vector<8x16xf32>
    %570 = arith.subf %569, %554 : vector<8x16xf32>
    %cst_129 = arith.constant 0.000000e+00 : f32
    %571 = vector.broadcast %cst_129 : f32 to vector<8x16xf32>
    %572 = arith.maximumf %570, %571 : vector<8x16xf32>
    %573 = arith.addf %572, %568 : vector<8x16xf32>
    %cst_130 = arith.constant 0.000000e+00 : f32
    %574 = vector.broadcast %cst_130 : f32 to vector<8x16xf32>
    %575 = arith.maximumf %554, %574 : vector<8x16xf32>
    %576 = arith.addf %575, %568 : vector<8x16xf32>
    %cst_131 = arith.constant 1.000000e+00 : f32
    %577 = vector.broadcast %cst_131 : f32 to vector<8x16xf32>
    %578 = arith.addf %577, %565 : vector<8x16xf32>
    %579 = tpu.reciprocal %578 {approx = true} : vector<8x16xf32> -> vector<8x16xf32>
    %cst_132 = arith.constant 0.000000e+00 : f32
    %580 = vector.broadcast %cst_132 : f32 to vector<8x16xf32>
    %581 = arith.cmpf oge, %554, %580 : vector<8x16xf32>
    %cst_133 = arith.constant 1.000000e+00 : f32
    %582 = vector.broadcast %cst_133 : f32 to vector<8x16xf32>
    %583 = arith.subf %582, %579 : vector<8x16xf32>
    %584 = arith.select %581, %579, %583 : vector<8x16xi1>, vector<8x16xf32>
    %cst_134 = arith.constant 1.000000e+00 : f32
    %585 = vector.broadcast %cst_134 : f32 to vector<8x16xf32>
    %586 = arith.subf %585, %584 : vector<8x16xf32>
    %cst_135 = arith.constant 2.500000e-01 : f32
    %587 = vector.broadcast %cst_135 : f32 to vector<8x16xf32>
    %588 = arith.mulf %587, %586 : vector<8x16xf32>
    %cst_136 = arith.constant 1.000000e+00 : f32
    %589 = vector.broadcast %cst_136 : f32 to vector<8x16xf32>
    %590 = arith.subf %589, %584 : vector<8x16xf32>
    %591 = arith.mulf %588, %590 : vector<8x16xf32>
    %592 = arith.mulf %591, %573 : vector<8x16xf32>
    %cst_137 = arith.constant 7.500000e-01 : f32
    %593 = vector.broadcast %cst_137 : f32 to vector<8x16xf32>
    %594 = arith.mulf %593, %584 : vector<8x16xf32>
    %595 = arith.mulf %594, %584 : vector<8x16xf32>
    %596 = arith.mulf %595, %576 : vector<8x16xf32>
    %597 = arith.subf %592, %596 : vector<8x16xf32>
    %cst_138 = arith.constant 0.000000e+00 : f32
    %598 = vector.broadcast %cst_138 : f32 to vector<4x16xf32>
    %c0_i32_139 = arith.constant 0 : i32
    %599 = vector.broadcast %c0_i32_139 : i32 to vector<4x1xi32>
    %600 = arith.cmpi eq, %558, %599 : vector<4x1xi32>
    %601 = arith.extui %600 : vector<4x1xi1> to vector<4x1xi32>
    %602 = arith.sitofp %601 : vector<4x1xi32> to vector<4x1xf32>
    %603 = vector.extract_strided_slice %597 {offsets = [0, 0], sizes = [1, 16], strides = [1, 1]} : vector<8x16xf32> to vector<1x16xf32>
    %604 = vector.broadcast %602 : vector<4x1xf32> to vector<4x16xf32>
    %605 = vector.broadcast %603 : vector<1x16xf32> to vector<4x16xf32>
    %606 = arith.mulf %604, %605 : vector<4x16xf32>
    %607 = arith.addf %598, %606 : vector<4x16xf32>
    %c1_i32_140 = arith.constant 1 : i32
    %608 = vector.broadcast %c1_i32_140 : i32 to vector<4x1xi32>
    %609 = arith.cmpi eq, %558, %608 : vector<4x1xi32>
    %610 = arith.extui %609 : vector<4x1xi1> to vector<4x1xi32>
    %611 = arith.sitofp %610 : vector<4x1xi32> to vector<4x1xf32>
    %612 = vector.extract_strided_slice %597 {offsets = [1, 0], sizes = [1, 16], strides = [1, 1]} : vector<8x16xf32> to vector<1x16xf32>
    %613 = vector.broadcast %611 : vector<4x1xf32> to vector<4x16xf32>
    %614 = vector.broadcast %612 : vector<1x16xf32> to vector<4x16xf32>
    %615 = arith.mulf %613, %614 : vector<4x16xf32>
    %616 = arith.addf %607, %615 : vector<4x16xf32>
    %c2_i32_141 = arith.constant 2 : i32
    %617 = vector.broadcast %c2_i32_141 : i32 to vector<4x1xi32>
    %618 = arith.cmpi eq, %558, %617 : vector<4x1xi32>
    %619 = arith.extui %618 : vector<4x1xi1> to vector<4x1xi32>
    %620 = arith.sitofp %619 : vector<4x1xi32> to vector<4x1xf32>
    %621 = vector.extract_strided_slice %597 {offsets = [2, 0], sizes = [1, 16], strides = [1, 1]} : vector<8x16xf32> to vector<1x16xf32>
    %622 = vector.broadcast %620 : vector<4x1xf32> to vector<4x16xf32>
    %623 = vector.broadcast %621 : vector<1x16xf32> to vector<4x16xf32>
    %624 = arith.mulf %622, %623 : vector<4x16xf32>
    %625 = arith.addf %616, %624 : vector<4x16xf32>
    %c3_i32_142 = arith.constant 3 : i32
    %626 = vector.broadcast %c3_i32_142 : i32 to vector<4x1xi32>
    %627 = arith.cmpi eq, %558, %626 : vector<4x1xi32>
    %628 = arith.extui %627 : vector<4x1xi1> to vector<4x1xi32>
    %629 = arith.sitofp %628 : vector<4x1xi32> to vector<4x1xf32>
    %630 = vector.extract_strided_slice %597 {offsets = [3, 0], sizes = [1, 16], strides = [1, 1]} : vector<8x16xf32> to vector<1x16xf32>
    %631 = vector.broadcast %629 : vector<4x1xf32> to vector<4x16xf32>
    %632 = vector.broadcast %630 : vector<1x16xf32> to vector<4x16xf32>
    %633 = arith.mulf %631, %632 : vector<4x16xf32>
    %634 = arith.addf %625, %633 : vector<4x16xf32>
    %c4_i32_143 = arith.constant 4 : i32
    %635 = vector.broadcast %c4_i32_143 : i32 to vector<4x1xi32>
    %636 = arith.cmpi eq, %558, %635 : vector<4x1xi32>
    %637 = arith.extui %636 : vector<4x1xi1> to vector<4x1xi32>
    %638 = arith.sitofp %637 : vector<4x1xi32> to vector<4x1xf32>
    %639 = vector.extract_strided_slice %597 {offsets = [4, 0], sizes = [1, 16], strides = [1, 1]} : vector<8x16xf32> to vector<1x16xf32>
    %640 = vector.broadcast %638 : vector<4x1xf32> to vector<4x16xf32>
    %641 = vector.broadcast %639 : vector<1x16xf32> to vector<4x16xf32>
    %642 = arith.mulf %640, %641 : vector<4x16xf32>
    %643 = arith.addf %634, %642 : vector<4x16xf32>
    %c5_i32_144 = arith.constant 5 : i32
    %644 = vector.broadcast %c5_i32_144 : i32 to vector<4x1xi32>
    %645 = arith.cmpi eq, %558, %644 : vector<4x1xi32>
    %646 = arith.extui %645 : vector<4x1xi1> to vector<4x1xi32>
    %647 = arith.sitofp %646 : vector<4x1xi32> to vector<4x1xf32>
    %648 = vector.extract_strided_slice %597 {offsets = [5, 0], sizes = [1, 16], strides = [1, 1]} : vector<8x16xf32> to vector<1x16xf32>
    %649 = vector.broadcast %647 : vector<4x1xf32> to vector<4x16xf32>
    %650 = vector.broadcast %648 : vector<1x16xf32> to vector<4x16xf32>
    %651 = arith.mulf %649, %650 : vector<4x16xf32>
    %652 = arith.addf %643, %651 : vector<4x16xf32>
    %c6_i32_145 = arith.constant 6 : i32
    %653 = vector.broadcast %c6_i32_145 : i32 to vector<4x1xi32>
    %654 = arith.cmpi eq, %558, %653 : vector<4x1xi32>
    %655 = arith.extui %654 : vector<4x1xi1> to vector<4x1xi32>
    %656 = arith.sitofp %655 : vector<4x1xi32> to vector<4x1xf32>
    %657 = vector.extract_strided_slice %597 {offsets = [6, 0], sizes = [1, 16], strides = [1, 1]} : vector<8x16xf32> to vector<1x16xf32>
    %658 = vector.broadcast %656 : vector<4x1xf32> to vector<4x16xf32>
    %659 = vector.broadcast %657 : vector<1x16xf32> to vector<4x16xf32>
    %660 = arith.mulf %658, %659 : vector<4x16xf32>
    %661 = arith.addf %652, %660 : vector<4x16xf32>
    %c7_i32_146 = arith.constant 7 : i32
    %662 = vector.broadcast %c7_i32_146 : i32 to vector<4x1xi32>
    %663 = arith.cmpi eq, %558, %662 : vector<4x1xi32>
    %664 = arith.extui %663 : vector<4x1xi1> to vector<4x1xi32>
    %665 = arith.sitofp %664 : vector<4x1xi32> to vector<4x1xf32>
    %666 = vector.extract_strided_slice %597 {offsets = [7, 0], sizes = [1, 16], strides = [1, 1]} : vector<8x16xf32> to vector<1x16xf32>
    %667 = vector.broadcast %665 : vector<4x1xf32> to vector<4x16xf32>
    %668 = vector.broadcast %666 : vector<1x16xf32> to vector<4x16xf32>
    %669 = arith.mulf %667, %668 : vector<4x16xf32>
    %670 = arith.addf %661, %669 : vector<4x16xf32>
    %cst_147 = arith.constant 0.000000e+00 : f32
    %671 = vector.broadcast %cst_147 : f32 to vector<4x16xf32>
    %672 = vector.extract_strided_slice %560 {offsets = [0, 0], sizes = [4, 1], strides = [1, 1]} : vector<4x4xf32> to vector<4x1xf32>
    %673 = vector.extract_strided_slice %556 {offsets = [0, 0], sizes = [1, 16], strides = [1, 1]} : vector<4x16xf32> to vector<1x16xf32>
    %674 = vector.broadcast %672 : vector<4x1xf32> to vector<4x16xf32>
    %675 = vector.broadcast %673 : vector<1x16xf32> to vector<4x16xf32>
    %676 = arith.subf %674, %675 : vector<4x16xf32>
    %677 = math.absf %676 : vector<4x16xf32>
    %678 = arith.addf %671, %677 : vector<4x16xf32>
    %679 = vector.extract_strided_slice %560 {offsets = [0, 1], sizes = [4, 1], strides = [1, 1]} : vector<4x4xf32> to vector<4x1xf32>
    %680 = vector.extract_strided_slice %556 {offsets = [1, 0], sizes = [1, 16], strides = [1, 1]} : vector<4x16xf32> to vector<1x16xf32>
    %681 = vector.broadcast %679 : vector<4x1xf32> to vector<4x16xf32>
    %682 = vector.broadcast %680 : vector<1x16xf32> to vector<4x16xf32>
    %683 = arith.subf %681, %682 : vector<4x16xf32>
    %684 = math.absf %683 : vector<4x16xf32>
    %685 = arith.addf %678, %684 : vector<4x16xf32>
    %686 = vector.extract_strided_slice %560 {offsets = [0, 2], sizes = [4, 1], strides = [1, 1]} : vector<4x4xf32> to vector<4x1xf32>
    %687 = vector.extract_strided_slice %556 {offsets = [2, 0], sizes = [1, 16], strides = [1, 1]} : vector<4x16xf32> to vector<1x16xf32>
    %688 = vector.broadcast %686 : vector<4x1xf32> to vector<4x16xf32>
    %689 = vector.broadcast %687 : vector<1x16xf32> to vector<4x16xf32>
    %690 = arith.subf %688, %689 : vector<4x16xf32>
    %691 = math.absf %690 : vector<4x16xf32>
    %692 = arith.addf %685, %691 : vector<4x16xf32>
    %693 = vector.extract_strided_slice %560 {offsets = [0, 3], sizes = [4, 1], strides = [1, 1]} : vector<4x4xf32> to vector<4x1xf32>
    %694 = vector.extract_strided_slice %556 {offsets = [3, 0], sizes = [1, 16], strides = [1, 1]} : vector<4x16xf32> to vector<1x16xf32>
    %695 = vector.broadcast %693 : vector<4x1xf32> to vector<4x16xf32>
    %696 = vector.broadcast %694 : vector<1x16xf32> to vector<4x16xf32>
    %697 = arith.subf %695, %696 : vector<4x16xf32>
    %698 = math.absf %697 : vector<4x16xf32>
    %699 = arith.addf %692, %698 : vector<4x16xf32>
    %700 = vector.extract_strided_slice %556 {offsets = [0, 0], sizes = [1, 16], strides = [1, 1]} : vector<4x16xf32> to vector<1x16xf32>
    %701 = vector.extract_strided_slice %556 {offsets = [2, 0], sizes = [1, 16], strides = [1, 1]} : vector<4x16xf32> to vector<1x16xf32>
    %cst_148 = arith.constant 5.000000e-01 : f32
    %702 = vector.broadcast %cst_148 : f32 to vector<1x16xf32>
    %703 = arith.mulf %702, %701 : vector<1x16xf32>
    %704 = arith.subf %700, %703 : vector<1x16xf32>
    %705 = vector.extract_strided_slice %556 {offsets = [1, 0], sizes = [1, 16], strides = [1, 1]} : vector<4x16xf32> to vector<1x16xf32>
    %706 = vector.extract_strided_slice %556 {offsets = [3, 0], sizes = [1, 16], strides = [1, 1]} : vector<4x16xf32> to vector<1x16xf32>
    %cst_149 = arith.constant 5.000000e-01 : f32
    %707 = vector.broadcast %cst_149 : f32 to vector<1x16xf32>
    %708 = arith.mulf %707, %706 : vector<1x16xf32>
    %709 = arith.subf %705, %708 : vector<1x16xf32>
    %710 = vector.extract_strided_slice %556 {offsets = [0, 0], sizes = [1, 16], strides = [1, 1]} : vector<4x16xf32> to vector<1x16xf32>
    %711 = vector.extract_strided_slice %556 {offsets = [2, 0], sizes = [1, 16], strides = [1, 1]} : vector<4x16xf32> to vector<1x16xf32>
    %cst_150 = arith.constant 5.000000e-01 : f32
    %712 = vector.broadcast %cst_150 : f32 to vector<1x16xf32>
    %713 = arith.mulf %712, %711 : vector<1x16xf32>
    %714 = arith.addf %710, %713 : vector<1x16xf32>
    %715 = vector.extract_strided_slice %556 {offsets = [1, 0], sizes = [1, 16], strides = [1, 1]} : vector<4x16xf32> to vector<1x16xf32>
    %716 = vector.extract_strided_slice %556 {offsets = [3, 0], sizes = [1, 16], strides = [1, 1]} : vector<4x16xf32> to vector<1x16xf32>
    %cst_151 = arith.constant 5.000000e-01 : f32
    %717 = vector.broadcast %cst_151 : f32 to vector<1x16xf32>
    %718 = arith.mulf %717, %716 : vector<1x16xf32>
    %719 = arith.addf %715, %718 : vector<1x16xf32>
    %720 = vector.extract_strided_slice %560 {offsets = [0, 0], sizes = [4, 1], strides = [1, 1]} : vector<4x4xf32> to vector<4x1xf32>
    %721 = vector.extract_strided_slice %560 {offsets = [0, 2], sizes = [4, 1], strides = [1, 1]} : vector<4x4xf32> to vector<4x1xf32>
    %cst_152 = arith.constant 5.000000e-01 : f32
    %722 = vector.broadcast %cst_152 : f32 to vector<4x1xf32>
    %723 = arith.mulf %722, %721 : vector<4x1xf32>
    %724 = arith.subf %720, %723 : vector<4x1xf32>
    %725 = vector.extract_strided_slice %560 {offsets = [0, 1], sizes = [4, 1], strides = [1, 1]} : vector<4x4xf32> to vector<4x1xf32>
    %726 = vector.extract_strided_slice %560 {offsets = [0, 3], sizes = [4, 1], strides = [1, 1]} : vector<4x4xf32> to vector<4x1xf32>
    %cst_153 = arith.constant 5.000000e-01 : f32
    %727 = vector.broadcast %cst_153 : f32 to vector<4x1xf32>
    %728 = arith.mulf %727, %726 : vector<4x1xf32>
    %729 = arith.subf %725, %728 : vector<4x1xf32>
    %730 = vector.extract_strided_slice %560 {offsets = [0, 0], sizes = [4, 1], strides = [1, 1]} : vector<4x4xf32> to vector<4x1xf32>
    %731 = vector.extract_strided_slice %560 {offsets = [0, 2], sizes = [4, 1], strides = [1, 1]} : vector<4x4xf32> to vector<4x1xf32>
    %cst_154 = arith.constant 5.000000e-01 : f32
    %732 = vector.broadcast %cst_154 : f32 to vector<4x1xf32>
    %733 = arith.mulf %732, %731 : vector<4x1xf32>
    %734 = arith.addf %730, %733 : vector<4x1xf32>
    %735 = vector.extract_strided_slice %560 {offsets = [0, 1], sizes = [4, 1], strides = [1, 1]} : vector<4x4xf32> to vector<4x1xf32>
    %736 = vector.extract_strided_slice %560 {offsets = [0, 3], sizes = [4, 1], strides = [1, 1]} : vector<4x4xf32> to vector<4x1xf32>
    %cst_155 = arith.constant 5.000000e-01 : f32
    %737 = vector.broadcast %cst_155 : f32 to vector<4x1xf32>
    %738 = arith.mulf %737, %736 : vector<4x1xf32>
    %739 = arith.addf %735, %738 : vector<4x1xf32>
    %740 = arith.subf %714, %704 : vector<1x16xf32>
    %741 = arith.subf %719, %709 : vector<1x16xf32>
    %742 = arith.mulf %740, %741 : vector<1x16xf32>
    %743 = arith.subf %734, %724 : vector<4x1xf32>
    %744 = arith.subf %739, %729 : vector<4x1xf32>
    %745 = arith.mulf %743, %744 : vector<4x1xf32>
    %746 = vector.broadcast %734 : vector<4x1xf32> to vector<4x16xf32>
    %747 = vector.broadcast %714 : vector<1x16xf32> to vector<4x16xf32>
    %748 = arith.minimumf %746, %747 : vector<4x16xf32>
    %749 = vector.broadcast %724 : vector<4x1xf32> to vector<4x16xf32>
    %750 = vector.broadcast %704 : vector<1x16xf32> to vector<4x16xf32>
    %751 = arith.maximumf %749, %750 : vector<4x16xf32>
    %752 = arith.subf %748, %751 : vector<4x16xf32>
    %cst_156 = arith.constant 0.000000e+00 : f32
    %753 = vector.broadcast %cst_156 : f32 to vector<4x16xf32>
    %754 = arith.maximumf %752, %753 : vector<4x16xf32>
    %755 = vector.broadcast %739 : vector<4x1xf32> to vector<4x16xf32>
    %756 = vector.broadcast %719 : vector<1x16xf32> to vector<4x16xf32>
    %757 = arith.minimumf %755, %756 : vector<4x16xf32>
    %758 = vector.broadcast %729 : vector<4x1xf32> to vector<4x16xf32>
    %759 = vector.broadcast %709 : vector<1x16xf32> to vector<4x16xf32>
    %760 = arith.maximumf %758, %759 : vector<4x16xf32>
    %761 = arith.subf %757, %760 : vector<4x16xf32>
    %cst_157 = arith.constant 0.000000e+00 : f32
    %762 = vector.broadcast %cst_157 : f32 to vector<4x16xf32>
    %763 = arith.maximumf %761, %762 : vector<4x16xf32>
    %764 = arith.mulf %754, %763 : vector<4x16xf32>
    %765 = vector.broadcast %745 : vector<4x1xf32> to vector<4x16xf32>
    %766 = vector.broadcast %742 : vector<1x16xf32> to vector<4x16xf32>
    %767 = arith.addf %765, %766 : vector<4x16xf32>
    %768 = arith.subf %767, %764 : vector<4x16xf32>
    %cst_158 = arith.constant 1.000000e-07 : f32
    %769 = vector.broadcast %cst_158 : f32 to vector<4x16xf32>
    %770 = arith.maximumf %768, %769 : vector<4x16xf32>
    %771 = arith.divf %764, %770 : vector<4x16xf32>
    %772 = vector.broadcast %734 : vector<4x1xf32> to vector<4x16xf32>
    %773 = vector.broadcast %714 : vector<1x16xf32> to vector<4x16xf32>
    %774 = arith.maximumf %772, %773 : vector<4x16xf32>
    %775 = vector.broadcast %724 : vector<4x1xf32> to vector<4x16xf32>
    %776 = vector.broadcast %704 : vector<1x16xf32> to vector<4x16xf32>
    %777 = arith.minimumf %775, %776 : vector<4x16xf32>
    %778 = arith.subf %774, %777 : vector<4x16xf32>
    %cst_159 = arith.constant 0.000000e+00 : f32
    %779 = vector.broadcast %cst_159 : f32 to vector<4x16xf32>
    %780 = arith.maximumf %778, %779 : vector<4x16xf32>
    %781 = vector.broadcast %739 : vector<4x1xf32> to vector<4x16xf32>
    %782 = vector.broadcast %719 : vector<1x16xf32> to vector<4x16xf32>
    %783 = arith.maximumf %781, %782 : vector<4x16xf32>
    %784 = vector.broadcast %729 : vector<4x1xf32> to vector<4x16xf32>
    %785 = vector.broadcast %709 : vector<1x16xf32> to vector<4x16xf32>
    %786 = arith.minimumf %784, %785 : vector<4x16xf32>
    %787 = arith.subf %783, %786 : vector<4x16xf32>
    %cst_160 = arith.constant 0.000000e+00 : f32
    %788 = vector.broadcast %cst_160 : f32 to vector<4x16xf32>
    %789 = arith.maximumf %787, %788 : vector<4x16xf32>
    %790 = arith.mulf %780, %789 : vector<4x16xf32>
    %791 = arith.subf %790, %768 : vector<4x16xf32>
    %cst_161 = arith.constant 1.000000e-07 : f32
    %792 = vector.broadcast %cst_161 : f32 to vector<4x16xf32>
    %793 = arith.maximumf %790, %792 : vector<4x16xf32>
    %794 = arith.divf %791, %793 : vector<4x16xf32>
    %795 = arith.subf %771, %794 : vector<4x16xf32>
    %cst_162 = arith.constant 5.000000e+00 : f32
    %796 = vector.broadcast %cst_162 : f32 to vector<4x16xf32>
    %797 = arith.mulf %796, %699 : vector<4x16xf32>
    %cst_163 = arith.constant 2.000000e+00 : f32
    %798 = vector.broadcast %cst_163 : f32 to vector<4x16xf32>
    %799 = arith.mulf %798, %670 : vector<4x16xf32>
    %800 = arith.addf %797, %799 : vector<4x16xf32>
    %cst_164 = arith.constant 0.000000e+00 : f32
    %801 = vector.broadcast %cst_164 : f32 to vector<4x16xf32>
    %802 = arith.subf %801, %795 : vector<4x16xf32>
    %cst_165 = arith.constant 2.000000e+00 : f32
    %803 = vector.broadcast %cst_165 : f32 to vector<4x16xf32>
    %804 = arith.mulf %803, %802 : vector<4x16xf32>
    %805 = arith.addf %800, %804 : vector<4x16xf32>
    %false_166 = arith.constant false
    %806 = vector.broadcast %false_166 : i1 to vector<1x16xi1>
    %cst_167 = arith.constant 0.000000e+00 : f32
    %807 = vector.broadcast %cst_167 : f32 to vector<4x16xf32>
    %808 = vector.extract_strided_slice %805 {offsets = [0, 0], sizes = [1, 16], strides = [1, 1]} : vector<4x16xf32> to vector<1x16xf32>
    %cst_168 = arith.constant 1.000000e+30 : f32
    %809 = vector.broadcast %cst_168 : f32 to vector<1x16xf32>
    %810 = arith.select %806, %809, %808 : vector<1x16xi1>, vector<1x16xf32>
    %cst_169 = arith.constant dense<0x7F800000> : vector<1xf32>
    %811 = vector.multi_reduction <minimumf>, %810, %cst_169 [1] : vector<1x16xf32> to vector<1xf32>
    %812 = vector.shape_cast %811 : vector<1xf32> to vector<1x1xf32>
    %813 = vector.broadcast %812 : vector<1x1xf32> to vector<1x16xf32>
    %814 = arith.cmpf ole, %810, %813 : vector<1x16xf32>
    %cst_170 = arith.constant 1.600000e+01 : f32
    %815 = vector.broadcast %cst_170 : f32 to vector<1x16xf32>
    %816 = arith.select %814, %1, %815 : vector<1x16xi1>, vector<1x16xf32>
    %cst_171 = arith.constant dense<0x7F800000> : vector<1xf32>
    %817 = vector.multi_reduction <minimumf>, %816, %cst_171 [1] : vector<1x16xf32> to vector<1xf32>
    %818 = vector.shape_cast %817 : vector<1xf32> to vector<1x1xf32>
    %819 = vector.broadcast %818 : vector<1x1xf32> to vector<1x16xf32>
    %820 = arith.cmpf oeq, %1, %819 : vector<1x16xf32>
    %821 = arith.ori %806, %820 : vector<1x16xi1>
    %c0_i32_172 = arith.constant 0 : i32
    %822 = vector.broadcast %c0_i32_172 : i32 to vector<4x1xi32>
    %823 = arith.cmpi eq, %4, %822 : vector<4x1xi32>
    %824 = arith.extui %823 : vector<4x1xi1> to vector<4x1xi32>
    %825 = arith.sitofp %824 : vector<4x1xi32> to vector<4x1xf32>
    %826 = arith.extui %820 : vector<1x16xi1> to vector<1x16xi32>
    %827 = arith.sitofp %826 : vector<1x16xi32> to vector<1x16xf32>
    %828 = vector.broadcast %825 : vector<4x1xf32> to vector<4x16xf32>
    %829 = vector.broadcast %827 : vector<1x16xf32> to vector<4x16xf32>
    %830 = arith.mulf %828, %829 : vector<4x16xf32>
    %831 = arith.addf %807, %830 : vector<4x16xf32>
    %832 = vector.extract_strided_slice %805 {offsets = [1, 0], sizes = [1, 16], strides = [1, 1]} : vector<4x16xf32> to vector<1x16xf32>
    %cst_173 = arith.constant 1.000000e+30 : f32
    %833 = vector.broadcast %cst_173 : f32 to vector<1x16xf32>
    %834 = arith.select %821, %833, %832 : vector<1x16xi1>, vector<1x16xf32>
    %cst_174 = arith.constant dense<0x7F800000> : vector<1xf32>
    %835 = vector.multi_reduction <minimumf>, %834, %cst_174 [1] : vector<1x16xf32> to vector<1xf32>
    %836 = vector.shape_cast %835 : vector<1xf32> to vector<1x1xf32>
    %837 = vector.broadcast %836 : vector<1x1xf32> to vector<1x16xf32>
    %838 = arith.cmpf ole, %834, %837 : vector<1x16xf32>
    %cst_175 = arith.constant 1.600000e+01 : f32
    %839 = vector.broadcast %cst_175 : f32 to vector<1x16xf32>
    %840 = arith.select %838, %1, %839 : vector<1x16xi1>, vector<1x16xf32>
    %cst_176 = arith.constant dense<0x7F800000> : vector<1xf32>
    %841 = vector.multi_reduction <minimumf>, %840, %cst_176 [1] : vector<1x16xf32> to vector<1xf32>
    %842 = vector.shape_cast %841 : vector<1xf32> to vector<1x1xf32>
    %843 = vector.broadcast %842 : vector<1x1xf32> to vector<1x16xf32>
    %844 = arith.cmpf oeq, %1, %843 : vector<1x16xf32>
    %845 = arith.ori %821, %844 : vector<1x16xi1>
    %c1_i32_177 = arith.constant 1 : i32
    %846 = vector.broadcast %c1_i32_177 : i32 to vector<4x1xi32>
    %847 = arith.cmpi eq, %4, %846 : vector<4x1xi32>
    %848 = arith.extui %847 : vector<4x1xi1> to vector<4x1xi32>
    %849 = arith.sitofp %848 : vector<4x1xi32> to vector<4x1xf32>
    %850 = arith.extui %844 : vector<1x16xi1> to vector<1x16xi32>
    %851 = arith.sitofp %850 : vector<1x16xi32> to vector<1x16xf32>
    %852 = vector.broadcast %849 : vector<4x1xf32> to vector<4x16xf32>
    %853 = vector.broadcast %851 : vector<1x16xf32> to vector<4x16xf32>
    %854 = arith.mulf %852, %853 : vector<4x16xf32>
    %855 = arith.addf %831, %854 : vector<4x16xf32>
    %856 = vector.extract_strided_slice %805 {offsets = [2, 0], sizes = [1, 16], strides = [1, 1]} : vector<4x16xf32> to vector<1x16xf32>
    %cst_178 = arith.constant 1.000000e+30 : f32
    %857 = vector.broadcast %cst_178 : f32 to vector<1x16xf32>
    %858 = arith.select %845, %857, %856 : vector<1x16xi1>, vector<1x16xf32>
    %cst_179 = arith.constant dense<0x7F800000> : vector<1xf32>
    %859 = vector.multi_reduction <minimumf>, %858, %cst_179 [1] : vector<1x16xf32> to vector<1xf32>
    %860 = vector.shape_cast %859 : vector<1xf32> to vector<1x1xf32>
    %861 = vector.broadcast %860 : vector<1x1xf32> to vector<1x16xf32>
    %862 = arith.cmpf ole, %858, %861 : vector<1x16xf32>
    %cst_180 = arith.constant 1.600000e+01 : f32
    %863 = vector.broadcast %cst_180 : f32 to vector<1x16xf32>
    %864 = arith.select %862, %1, %863 : vector<1x16xi1>, vector<1x16xf32>
    %cst_181 = arith.constant dense<0x7F800000> : vector<1xf32>
    %865 = vector.multi_reduction <minimumf>, %864, %cst_181 [1] : vector<1x16xf32> to vector<1xf32>
    %866 = vector.shape_cast %865 : vector<1xf32> to vector<1x1xf32>
    %867 = vector.broadcast %866 : vector<1x1xf32> to vector<1x16xf32>
    %868 = arith.cmpf oeq, %1, %867 : vector<1x16xf32>
    %869 = arith.ori %845, %868 : vector<1x16xi1>
    %c2_i32_182 = arith.constant 2 : i32
    %870 = vector.broadcast %c2_i32_182 : i32 to vector<4x1xi32>
    %871 = arith.cmpi eq, %4, %870 : vector<4x1xi32>
    %872 = arith.extui %871 : vector<4x1xi1> to vector<4x1xi32>
    %873 = arith.sitofp %872 : vector<4x1xi32> to vector<4x1xf32>
    %874 = arith.extui %868 : vector<1x16xi1> to vector<1x16xi32>
    %875 = arith.sitofp %874 : vector<1x16xi32> to vector<1x16xf32>
    %876 = vector.broadcast %873 : vector<4x1xf32> to vector<4x16xf32>
    %877 = vector.broadcast %875 : vector<1x16xf32> to vector<4x16xf32>
    %878 = arith.mulf %876, %877 : vector<4x16xf32>
    %879 = arith.addf %855, %878 : vector<4x16xf32>
    %880 = vector.extract_strided_slice %805 {offsets = [3, 0], sizes = [1, 16], strides = [1, 1]} : vector<4x16xf32> to vector<1x16xf32>
    %cst_183 = arith.constant 1.000000e+30 : f32
    %881 = vector.broadcast %cst_183 : f32 to vector<1x16xf32>
    %882 = arith.select %869, %881, %880 : vector<1x16xi1>, vector<1x16xf32>
    %cst_184 = arith.constant dense<0x7F800000> : vector<1xf32>
    %883 = vector.multi_reduction <minimumf>, %882, %cst_184 [1] : vector<1x16xf32> to vector<1xf32>
    %884 = vector.shape_cast %883 : vector<1xf32> to vector<1x1xf32>
    %885 = vector.broadcast %884 : vector<1x1xf32> to vector<1x16xf32>
    %886 = arith.cmpf ole, %882, %885 : vector<1x16xf32>
    %cst_185 = arith.constant 1.600000e+01 : f32
    %887 = vector.broadcast %cst_185 : f32 to vector<1x16xf32>
    %888 = arith.select %886, %1, %887 : vector<1x16xi1>, vector<1x16xf32>
    %cst_186 = arith.constant dense<0x7F800000> : vector<1xf32>
    %889 = vector.multi_reduction <minimumf>, %888, %cst_186 [1] : vector<1x16xf32> to vector<1xf32>
    %890 = vector.shape_cast %889 : vector<1xf32> to vector<1x1xf32>
    %891 = vector.broadcast %890 : vector<1x1xf32> to vector<1x16xf32>
    %892 = arith.cmpf oeq, %1, %891 : vector<1x16xf32>
    %c3_i32_187 = arith.constant 3 : i32
    %893 = vector.broadcast %c3_i32_187 : i32 to vector<4x1xi32>
    %894 = arith.cmpi eq, %4, %893 : vector<4x1xi32>
    %895 = arith.extui %894 : vector<4x1xi1> to vector<4x1xi32>
    %896 = arith.sitofp %895 : vector<4x1xi32> to vector<4x1xf32>
    %897 = arith.extui %892 : vector<1x16xi1> to vector<1x16xi32>
    %898 = arith.sitofp %897 : vector<1x16xi32> to vector<1x16xf32>
    %899 = vector.broadcast %896 : vector<4x1xf32> to vector<4x16xf32>
    %900 = vector.broadcast %898 : vector<1x16xf32> to vector<4x16xf32>
    %901 = arith.mulf %899, %900 : vector<4x16xf32>
    %902 = arith.addf %879, %901 : vector<4x16xf32>
    %903 = vector.broadcast %561 : vector<4x1xf32> to vector<4x16xf32>
    %904 = arith.mulf %902, %903 : vector<4x16xf32>
    %cst_188 = arith.constant dense<0.000000e+00> : vector<16xf32>
    %905 = vector.multi_reduction <add>, %904, %cst_188 [0] : vector<4x16xf32> to vector<16xf32>
    %906 = vector.shape_cast %905 : vector<16xf32> to vector<1x16xf32>
    %cst_189 = arith.constant dense<0.000000e+00> : vector<16xf32>
    %907 = vector.multi_reduction <add>, %902, %cst_189 [0] : vector<4x16xf32> to vector<16xf32>
    %908 = vector.shape_cast %907 : vector<16xf32> to vector<1x16xf32>
    %cst_190 = arith.constant 1.000000e+00 : f32
    %909 = vector.broadcast %cst_190 : f32 to vector<1x16xf32>
    %910 = arith.subf %909, %908 : vector<1x16xf32>
    %cst_191 = arith.constant 8.000000e+00 : f32
    %911 = vector.broadcast %cst_191 : f32 to vector<1x16xf32>
    %912 = arith.mulf %910, %911 : vector<1x16xf32>
    %913 = arith.addf %906, %912 : vector<1x16xf32>
    %914 = vector.broadcast %913 : vector<1x16xf32> to vector<8x16xf32>
    %915 = arith.cmpf oeq, %3, %914 : vector<8x16xf32>
    %916 = arith.extui %915 : vector<8x16xi1> to vector<8x16xi32>
    %917 = arith.sitofp %916 : vector<8x16xi32> to vector<8x16xf32>
    %cst_192 = arith.constant 1.000000e+00 : f32
    %918 = vector.broadcast %cst_192 : f32 to vector<8x16xf32>
    %919 = arith.addf %918, %565 : vector<8x16xf32>
    %cst_193 = arith.constant 1.000000e+00 : f32
    %920 = vector.broadcast %cst_193 : f32 to vector<8x16xf32>
    %921 = arith.divf %920, %919 : vector<8x16xf32>
    %cst_194 = arith.constant 0.000000e+00 : f32
    %922 = vector.broadcast %cst_194 : f32 to vector<8x16xf32>
    %923 = arith.cmpf oge, %554, %922 : vector<8x16xf32>
    %cst_195 = arith.constant 1.000000e+00 : f32
    %924 = vector.broadcast %cst_195 : f32 to vector<8x16xf32>
    %925 = arith.subf %924, %921 : vector<8x16xf32>
    %926 = arith.select %923, %921, %925 : vector<8x16xi1>, vector<8x16xf32>
    %cst_196 = arith.constant 0.000000e+00 : f32
    %927 = vector.broadcast %cst_196 : f32 to vector<8x16xf32>
    %928 = arith.maximumf %554, %927 : vector<8x16xf32>
    %929 = arith.mulf %554, %917 : vector<8x16xf32>
    %930 = arith.subf %928, %929 : vector<8x16xf32>
    %931 = arith.addf %930, %568 : vector<8x16xf32>
    %932 = arith.mulf %926, %917 : vector<8x16xf32>
    %cst_197 = arith.constant 1.000000e+00 : f32
    %933 = vector.broadcast %cst_197 : f32 to vector<8x16xf32>
    %934 = arith.subf %933, %926 : vector<8x16xf32>
    %cst_198 = arith.constant 1.000000e+00 : f32
    %935 = vector.broadcast %cst_198 : f32 to vector<8x16xf32>
    %936 = arith.subf %935, %917 : vector<8x16xf32>
    %937 = arith.mulf %934, %936 : vector<8x16xf32>
    %938 = arith.addf %932, %937 : vector<8x16xf32>
    %cst_199 = arith.constant 1.000000e+00 : f32
    %939 = vector.broadcast %cst_199 : f32 to vector<8x16xf32>
    %940 = arith.subf %939, %938 : vector<8x16xf32>
    %cst_200 = arith.constant 2.500000e-01 : f32
    %941 = vector.broadcast %cst_200 : f32 to vector<8x16xf32>
    %942 = arith.mulf %941, %917 : vector<8x16xf32>
    %cst_201 = arith.constant 1.000000e+00 : f32
    %943 = vector.broadcast %cst_201 : f32 to vector<8x16xf32>
    %944 = arith.subf %943, %917 : vector<8x16xf32>
    %cst_202 = arith.constant 7.500000e-01 : f32
    %945 = vector.broadcast %cst_202 : f32 to vector<8x16xf32>
    %946 = arith.mulf %945, %944 : vector<8x16xf32>
    %947 = arith.addf %942, %946 : vector<8x16xf32>
    %948 = arith.mulf %947, %931 : vector<8x16xf32>
    %949 = arith.mulf %948, %940 : vector<8x16xf32>
    %950 = arith.mulf %949, %940 : vector<8x16xf32>
    %951 = vector.shape_cast %950 : vector<8x16xf32> to vector<1x8x16xf32>
    %cst_203 = arith.constant dense<0.000000e+00> : vector<1xf32>
    %952 = vector.multi_reduction <add>, %951, %cst_203 [1, 2] : vector<1x8x16xf32> to vector<1xf32>
    %953 = vector.shape_cast %952 : vector<1xf32> to vector<1x1x1xf32>
    %954 = vector.extract %953[0, 0, 0] : f32 from vector<1x1x1xf32>
    %955 = arith.addf %407, %954 : f32
    %cst_204 = arith.constant dense<0xFF800000> : vector<16xf32>
    %956 = vector.multi_reduction <maximumf>, %554, %cst_204 [0] : vector<8x16xf32> to vector<16xf32>
    %957 = vector.shape_cast %956 : vector<16xf32> to vector<1x16xf32>
    %c7_i32_205 = arith.constant 7 : i32
    %958 = vector.broadcast %c7_i32_205 : i32 to vector<8x16xi32>
    %959 = arith.cmpi slt, %2, %958 : vector<8x16xi32>
    %cst_206 = arith.constant -1.000000e+30 : f32
    %960 = vector.broadcast %cst_206 : f32 to vector<8x16xf32>
    %961 = arith.select %959, %554, %960 : vector<8x16xi1>, vector<8x16xf32>
    %cst_207 = arith.constant dense<0xFF800000> : vector<16xf32>
    %962 = vector.multi_reduction <maximumf>, %961, %cst_207 [0] : vector<8x16xf32> to vector<16xf32>
    %963 = vector.shape_cast %962 : vector<16xf32> to vector<1x16xf32>
    %964 = arith.cmpf oge, %963, %957 : vector<1x16xf32>
    %965 = arith.extui %964 : vector<1x16xi1> to vector<1x16xi32>
    %966 = arith.sitofp %965 : vector<1x16xi32> to vector<1x16xf32>
    %967 = vector.shape_cast %966 : vector<1x16xf32> to vector<1x1x16xf32>
    %cst_208 = arith.constant dense<0.000000e+00> : vector<1xf32>
    %968 = vector.multi_reduction <add>, %967, %cst_208 [1, 2] : vector<1x1x16xf32> to vector<1xf32>
    %969 = vector.shape_cast %968 : vector<1xf32> to vector<1x1x1xf32>
    %970 = vector.extract %969[0, 0, 0] : f32 from vector<1x1x1xf32>
    %cst_209 = arith.constant 4.000000e+00 : f32
    %971 = arith.subf %970, %cst_209 : f32
    %972 = math.absf %971 : f32
    %973 = arith.addf %425, %972 : f32
    %974 = vector.broadcast %957 : vector<1x16xf32> to vector<8x16xf32>
    %975 = arith.cmpf oge, %554, %974 : vector<8x16xf32>
    %cst_210 = arith.constant 8.000000e+00 : f32
    %976 = vector.broadcast %cst_210 : f32 to vector<8x16xf32>
    %977 = arith.select %975, %3, %976 : vector<8x16xi1>, vector<8x16xf32>
    %cst_211 = arith.constant dense<0x7F800000> : vector<16xf32>
    %978 = vector.multi_reduction <minimumf>, %977, %cst_211 [0] : vector<8x16xf32> to vector<16xf32>
    %979 = vector.shape_cast %978 : vector<16xf32> to vector<1x16xf32>
    %980 = vector.broadcast %979 : vector<1x16xf32> to vector<4x16xf32>
    %981 = arith.mulf %902, %980 : vector<4x16xf32>
    %cst_212 = arith.constant dense<0.000000e+00> : vector<4xf32>
    %982 = vector.multi_reduction <add>, %981, %cst_212 [1] : vector<4x16xf32> to vector<4xf32>
    %983 = vector.shape_cast %982 : vector<4xf32> to vector<4x1xf32>
    %984 = arith.cmpf oeq, %983, %561 : vector<4x1xf32>
    %985 = arith.extui %984 : vector<4x1xi1> to vector<4x1xi32>
    %986 = arith.sitofp %985 : vector<4x1xi32> to vector<4x1xf32>
    %987 = vector.shape_cast %986 : vector<4x1xf32> to vector<1x4x1xf32>
    %cst_213 = arith.constant dense<0.000000e+00> : vector<1xf32>
    %988 = vector.multi_reduction <add>, %987, %cst_213 [1, 2] : vector<1x4x1xf32> to vector<1xf32>
    %989 = vector.shape_cast %988 : vector<1xf32> to vector<1x1x1xf32>
    %990 = vector.extract %989[0, 0, 0] : f32 from vector<1x1x1xf32>
    %991 = arith.addf %443, %990 : f32
    %992 = vector.extract_strided_slice %556 {offsets = [0, 0], sizes = [1, 16], strides = [1, 1]} : vector<4x16xf32> to vector<1x16xf32>
    %993 = vector.broadcast %992 : vector<1x16xf32> to vector<4x16xf32>
    %994 = arith.mulf %902, %993 : vector<4x16xf32>
    %cst_214 = arith.constant dense<0.000000e+00> : vector<4xf32>
    %995 = vector.multi_reduction <add>, %994, %cst_214 [1] : vector<4x16xf32> to vector<4xf32>
    %996 = vector.shape_cast %995 : vector<4xf32> to vector<4x1xf32>
    %997 = vector.extract_strided_slice %556 {offsets = [1, 0], sizes = [1, 16], strides = [1, 1]} : vector<4x16xf32> to vector<1x16xf32>
    %998 = vector.broadcast %997 : vector<1x16xf32> to vector<4x16xf32>
    %999 = arith.mulf %902, %998 : vector<4x16xf32>
    %cst_215 = arith.constant dense<0.000000e+00> : vector<4xf32>
    %1000 = vector.multi_reduction <add>, %999, %cst_215 [1] : vector<4x16xf32> to vector<4xf32>
    %1001 = vector.shape_cast %1000 : vector<4xf32> to vector<4x1xf32>
    %1002 = vector.extract_strided_slice %556 {offsets = [2, 0], sizes = [1, 16], strides = [1, 1]} : vector<4x16xf32> to vector<1x16xf32>
    %1003 = vector.broadcast %1002 : vector<1x16xf32> to vector<4x16xf32>
    %1004 = arith.mulf %902, %1003 : vector<4x16xf32>
    %cst_216 = arith.constant dense<0.000000e+00> : vector<4xf32>
    %1005 = vector.multi_reduction <add>, %1004, %cst_216 [1] : vector<4x16xf32> to vector<4xf32>
    %1006 = vector.shape_cast %1005 : vector<4xf32> to vector<4x1xf32>
    %1007 = vector.extract_strided_slice %556 {offsets = [3, 0], sizes = [1, 16], strides = [1, 1]} : vector<4x16xf32> to vector<1x16xf32>
    %1008 = vector.broadcast %1007 : vector<1x16xf32> to vector<4x16xf32>
    %1009 = arith.mulf %902, %1008 : vector<4x16xf32>
    %cst_217 = arith.constant dense<0.000000e+00> : vector<4xf32>
    %1010 = vector.multi_reduction <add>, %1009, %cst_217 [1] : vector<4x16xf32> to vector<4xf32>
    %1011 = vector.shape_cast %1010 : vector<4xf32> to vector<4x1xf32>
    %1012 = vector.extract_strided_slice %560 {offsets = [0, 0], sizes = [4, 1], strides = [1, 1]} : vector<4x4xf32> to vector<4x1xf32>
    %1013 = vector.extract_strided_slice %560 {offsets = [0, 1], sizes = [4, 1], strides = [1, 1]} : vector<4x4xf32> to vector<4x1xf32>
    %1014 = vector.extract_strided_slice %560 {offsets = [0, 2], sizes = [4, 1], strides = [1, 1]} : vector<4x4xf32> to vector<4x1xf32>
    %1015 = vector.extract_strided_slice %560 {offsets = [0, 3], sizes = [4, 1], strides = [1, 1]} : vector<4x4xf32> to vector<4x1xf32>
    %1016 = arith.subf %996, %1012 : vector<4x1xf32>
    %1017 = math.absf %1016 : vector<4x1xf32>
    %1018 = arith.subf %1001, %1013 : vector<4x1xf32>
    %1019 = math.absf %1018 : vector<4x1xf32>
    %1020 = arith.addf %1017, %1019 : vector<4x1xf32>
    %1021 = arith.subf %1006, %1014 : vector<4x1xf32>
    %1022 = math.absf %1021 : vector<4x1xf32>
    %1023 = arith.addf %1020, %1022 : vector<4x1xf32>
    %1024 = arith.subf %1011, %1015 : vector<4x1xf32>
    %1025 = math.absf %1024 : vector<4x1xf32>
    %1026 = arith.addf %1023, %1025 : vector<4x1xf32>
    %1027 = vector.shape_cast %1026 : vector<4x1xf32> to vector<1x4x1xf32>
    %cst_218 = arith.constant dense<0.000000e+00> : vector<1xf32>
    %1028 = vector.multi_reduction <add>, %1027, %cst_218 [1, 2] : vector<1x4x1xf32> to vector<1xf32>
    %1029 = vector.shape_cast %1028 : vector<1xf32> to vector<1x1x1xf32>
    %1030 = vector.extract %1029[0, 0, 0] : f32 from vector<1x1x1xf32>
    %1031 = arith.addf %483, %1030 : f32
    %cst_219 = arith.constant 5.000000e-01 : f32
    %1032 = vector.broadcast %cst_219 : f32 to vector<4x1xf32>
    %1033 = arith.mulf %1032, %1006 : vector<4x1xf32>
    %1034 = arith.subf %996, %1033 : vector<4x1xf32>
    %cst_220 = arith.constant 5.000000e-01 : f32
    %1035 = vector.broadcast %cst_220 : f32 to vector<4x1xf32>
    %1036 = arith.mulf %1035, %1011 : vector<4x1xf32>
    %1037 = arith.subf %1001, %1036 : vector<4x1xf32>
    %cst_221 = arith.constant 5.000000e-01 : f32
    %1038 = vector.broadcast %cst_221 : f32 to vector<4x1xf32>
    %1039 = arith.mulf %1038, %1006 : vector<4x1xf32>
    %1040 = arith.addf %996, %1039 : vector<4x1xf32>
    %cst_222 = arith.constant 5.000000e-01 : f32
    %1041 = vector.broadcast %cst_222 : f32 to vector<4x1xf32>
    %1042 = arith.mulf %1041, %1011 : vector<4x1xf32>
    %1043 = arith.addf %1001, %1042 : vector<4x1xf32>
    %cst_223 = arith.constant 5.000000e-01 : f32
    %1044 = vector.broadcast %cst_223 : f32 to vector<4x1xf32>
    %1045 = arith.mulf %1044, %1014 : vector<4x1xf32>
    %1046 = arith.subf %1012, %1045 : vector<4x1xf32>
    %cst_224 = arith.constant 5.000000e-01 : f32
    %1047 = vector.broadcast %cst_224 : f32 to vector<4x1xf32>
    %1048 = arith.mulf %1047, %1015 : vector<4x1xf32>
    %1049 = arith.subf %1013, %1048 : vector<4x1xf32>
    %cst_225 = arith.constant 5.000000e-01 : f32
    %1050 = vector.broadcast %cst_225 : f32 to vector<4x1xf32>
    %1051 = arith.mulf %1050, %1014 : vector<4x1xf32>
    %1052 = arith.addf %1012, %1051 : vector<4x1xf32>
    %cst_226 = arith.constant 5.000000e-01 : f32
    %1053 = vector.broadcast %cst_226 : f32 to vector<4x1xf32>
    %1054 = arith.mulf %1053, %1015 : vector<4x1xf32>
    %1055 = arith.addf %1013, %1054 : vector<4x1xf32>
    %1056 = arith.subf %1040, %1034 : vector<4x1xf32>
    %1057 = arith.subf %1043, %1037 : vector<4x1xf32>
    %1058 = arith.mulf %1056, %1057 : vector<4x1xf32>
    %1059 = arith.subf %1052, %1046 : vector<4x1xf32>
    %1060 = arith.subf %1055, %1049 : vector<4x1xf32>
    %1061 = arith.mulf %1059, %1060 : vector<4x1xf32>
    %1062 = arith.minimumf %1040, %1052 : vector<4x1xf32>
    %1063 = arith.maximumf %1034, %1046 : vector<4x1xf32>
    %1064 = arith.subf %1062, %1063 : vector<4x1xf32>
    %cst_227 = arith.constant 0.000000e+00 : f32
    %1065 = vector.broadcast %cst_227 : f32 to vector<4x1xf32>
    %1066 = arith.maximumf %1064, %1065 : vector<4x1xf32>
    %1067 = arith.minimumf %1043, %1055 : vector<4x1xf32>
    %1068 = arith.maximumf %1037, %1049 : vector<4x1xf32>
    %1069 = arith.subf %1067, %1068 : vector<4x1xf32>
    %cst_228 = arith.constant 0.000000e+00 : f32
    %1070 = vector.broadcast %cst_228 : f32 to vector<4x1xf32>
    %1071 = arith.maximumf %1069, %1070 : vector<4x1xf32>
    %1072 = arith.mulf %1066, %1071 : vector<4x1xf32>
    %1073 = arith.addf %1058, %1061 : vector<4x1xf32>
    %1074 = arith.subf %1073, %1072 : vector<4x1xf32>
    %cst_229 = arith.constant 1.000000e-07 : f32
    %1075 = vector.broadcast %cst_229 : f32 to vector<4x1xf32>
    %1076 = arith.maximumf %1074, %1075 : vector<4x1xf32>
    %1077 = arith.divf %1072, %1076 : vector<4x1xf32>
    %1078 = arith.maximumf %1040, %1052 : vector<4x1xf32>
    %1079 = arith.minimumf %1034, %1046 : vector<4x1xf32>
    %1080 = arith.subf %1078, %1079 : vector<4x1xf32>
    %cst_230 = arith.constant 0.000000e+00 : f32
    %1081 = vector.broadcast %cst_230 : f32 to vector<4x1xf32>
    %1082 = arith.maximumf %1080, %1081 : vector<4x1xf32>
    %1083 = arith.maximumf %1043, %1055 : vector<4x1xf32>
    %1084 = arith.minimumf %1037, %1049 : vector<4x1xf32>
    %1085 = arith.subf %1083, %1084 : vector<4x1xf32>
    %cst_231 = arith.constant 0.000000e+00 : f32
    %1086 = vector.broadcast %cst_231 : f32 to vector<4x1xf32>
    %1087 = arith.maximumf %1085, %1086 : vector<4x1xf32>
    %1088 = arith.mulf %1082, %1087 : vector<4x1xf32>
    %1089 = arith.subf %1088, %1074 : vector<4x1xf32>
    %cst_232 = arith.constant 1.000000e-07 : f32
    %1090 = vector.broadcast %cst_232 : f32 to vector<4x1xf32>
    %1091 = arith.maximumf %1088, %1090 : vector<4x1xf32>
    %1092 = arith.divf %1089, %1091 : vector<4x1xf32>
    %1093 = arith.subf %1077, %1092 : vector<4x1xf32>
    %cst_233 = arith.constant 1.000000e+00 : f32
    %1094 = vector.broadcast %cst_233 : f32 to vector<4x1xf32>
    %1095 = arith.subf %1094, %1093 : vector<4x1xf32>
    %1096 = vector.shape_cast %1095 : vector<4x1xf32> to vector<1x4x1xf32>
    %cst_234 = arith.constant dense<0.000000e+00> : vector<1xf32>
    %1097 = vector.multi_reduction <add>, %1096, %cst_234 [1, 2] : vector<1x4x1xf32> to vector<1xf32>
    %1098 = vector.shape_cast %1097 : vector<1xf32> to vector<1x1x1xf32>
    %1099 = vector.extract %1098[0, 0, 0] : f32 from vector<1x1x1xf32>
    %1100 = arith.addf %552, %1099 : f32
    %cst_235 = arith.constant 8.000000e+00 : f32
    %1101 = arith.divf %955, %cst_235 : f32
    %c0_236 = arith.constant 0 : index
    %1102 = memref.load %arg4[%c0_236] : memref<8xf32, #tpu.memory_space<smem>>
    memref.store %1101, %arg4[%c0_236] : memref<8xf32, #tpu.memory_space<smem>>
    %cst_237 = arith.constant 1.000000e+02 : f32
    %1103 = arith.mulf %cst_237, %991 : f32
    %cst_238 = arith.constant 8.000000e+00 : f32
    %1104 = arith.divf %1103, %cst_238 : f32
    %cst_239 = arith.constant 1.000000e+02 : f32
    %1105 = arith.subf %cst_239, %1104 : f32
    %c1_240 = arith.constant 1 : index
    %1106 = memref.load %arg4[%c1_240] : memref<8xf32, #tpu.memory_space<smem>>
    memref.store %1105, %arg4[%c1_240] : memref<8xf32, #tpu.memory_space<smem>>
    %cst_241 = arith.constant 2.000000e+00 : f32
    %1107 = arith.divf %973, %cst_241 : f32
    %c2 = arith.constant 2 : index
    %1108 = memref.load %arg4[%c2] : memref<8xf32, #tpu.memory_space<smem>>
    memref.store %1107, %arg4[%c2] : memref<8xf32, #tpu.memory_space<smem>>
    %cst_242 = arith.constant 8.000000e+00 : f32
    %1109 = arith.divf %1031, %cst_242 : f32
    %c3 = arith.constant 3 : index
    %1110 = memref.load %arg4[%c3] : memref<8xf32, #tpu.memory_space<smem>>
    memref.store %1109, %arg4[%c3] : memref<8xf32, #tpu.memory_space<smem>>
    %cst_243 = arith.constant 8.000000e+00 : f32
    %1111 = arith.divf %1100, %cst_243 : f32
    %c4 = arith.constant 4 : index
    %1112 = memref.load %arg4[%c4] : memref<8xf32, #tpu.memory_space<smem>>
    memref.store %1111, %arg4[%c4] : memref<8xf32, #tpu.memory_space<smem>>
    %cst_244 = arith.constant 0.000000e+00 : f32
    %c5 = arith.constant 5 : index
    %1113 = memref.load %arg4[%c5] : memref<8xf32, #tpu.memory_space<smem>>
    memref.store %cst_244, %arg4[%c5] : memref<8xf32, #tpu.memory_space<smem>>
    %cst_245 = arith.constant 0.000000e+00 : f32
    %c6 = arith.constant 6 : index
    %1114 = memref.load %arg4[%c6] : memref<8xf32, #tpu.memory_space<smem>>
    memref.store %cst_245, %arg4[%c6] : memref<8xf32, #tpu.memory_space<smem>>
    %cst_246 = arith.constant 0.000000e+00 : f32
    %c7 = arith.constant 7 : index
    %1115 = memref.load %arg4[%c7] : memref<8xf32, #tpu.memory_space<smem>>
    memref.store %cst_246, %arg4[%c7] : memref<8xf32, #tpu.memory_space<smem>>
    return
  }
}

</mosaic_0001>

<bundles_post_ra>
// kernel: set_criterion_forward.1
= control target key start
LH: loop header
LB: loop body
LE: loop exit
PB: predicated region body
PF: predicated region fallthrough
CT: control target
= control target key end

     0   :  { %9 = vsyncpa [#allocation3], 0  ;;  %s2404_s0 = inlined_call_operand.hbm [shape: f32[2,8,16], index: 0, kind: input, shape index: {}]   ;;  %s2405_s1 = inlined_call_operand.vmem [shape: f32[2,4,16], index: 1, kind: input, shape index: {}]   ;;  %s2406_s2 = inlined_call_operand.vmem [shape: s32[2,4,1], index: 2, kind: input, shape index: {}]   ;;  %s2407_s3 = inlined_call_operand.hbm [shape: f32[2,4,4], index: 3, kind: input, shape index: {}]   ;;  %s2408_s4 = inlined_call_operand.vmem [shape: f32[8], index: 4, kind: output, shape index: {}]  }
   0x1   :  { %10 = vsyncpa [#allocation6], 0 }
   0x2   :  { %11 = vsyncpa [#allocation4], 0  ;;  %s16_s17 = sshll.u32 %s2404_s0, 4  ;;  %s1576_s18 = smov [#allocation2]   ;;  %s17_s17 = int_to_ptr.hbm [resolvable:$true] %s16_s17 }
   0x3   :  { %s18_s19 = sshll.u32 %s1576_s18, 4  ;;  %s33_s22 = sshll.u32 %s2407_s3, 4  ;;  %s19_s19 = int_to_ptr.vmem [resolvable:$true] %s18_s19  ;;  %s34_s22 = int_to_ptr.hbm [resolvable:$true] %s33_s22 }
   0x4   :  { %s1577_s23 = smov 128   ;;  %s1578_s24 = smov 8  }
   0x5   :  { %24 = dma.hbm_to_vmem [thread:$0]  %s17_s17, 256, %s19_s19, [#allocation3], %s1577_s23, %s1577_s23, %s1578_s24  }
   0x6   :  { %s1579_s25 = smov [#allocation5]   ;;  %s1580_s27 = smov 64  }
   0x7   :  { %s35_s26 = sshll.u32 %s1579_s25, 4  ;;  %s1581_s28 = smov 4   ;;  %s36_s26 = int_to_ptr.vmem [resolvable:$true] %s35_s26 }
   0x8   :  { %41 = dma.hbm_to_vmem [thread:$0]  %s34_s22, 128, %s36_s26, [#allocation6], %s1580_s27, %s1580_s27, %s1581_s28  }
   0x9   :  { %1570 = dma.done.wait [#allocation3], 256  }
   0xa   :  { %1571 = vsyncadd [#allocation3], 4294967040 }
   0xb   :  { %1572 = dma.done.wait [#allocation6], 128  }
   0xc   :  { %1573 = vsyncadd [#allocation6], 4294967168  ;;  %v1625_v0 = vld [vmem:[#allocation5] sm:$0xf]  ;;  %s1582_s0 = smov 126   ;;  %v1583_v4 = vmov 1  }
   0xd   :  { %v212_v1 = vmul.f32 0.5, %v1625_v0  ;;  %v1629_v2 = vld [vmem:[#allocation5 + $0x4] sm:$0xf]  ;;  %1419 = vset.pattern.permute.xlu1 %v1583_v4  ;;  %1418 = vset.pattern.permute.xlu0 %v1583_v4  ;;  %v1584_v5 = vmov 0   ;;  %s1585_s3 = smov 127   ;;  %v2415_v15 = vmov 0.0  }
   0xe   :  { %v823_v3 = vmul.f32 0.5, %v1629_v2  ;;  %1417 = vset.pattern.permute.xlu2 %v1584_v5  ;;  %v1662_v14 = vld [vmem:[%s2406_s2] sm:$0xf]  ;;  %v1682_v21 = vld [vmem:[%s2406_s2 + $0x4] sm:$0xf]  ;;  %v1587_v32 = vmov 2  }
   0xf   :  { %214 = vrot.lane.b32.xlu0 %v212_v1, %s1582_s0  ;;  %vm85_vm0 = vcmp.eq.s32.totalorder %v1662_v14, 0  ;;  %vm96_vm1 = vcmp.eq.s32.totalorder %v1662_v14, 1  ;;  %vm107_vm2 = vcmp.eq.s32.totalorder %v1662_v14, 2  ;;  %vm118_vm3 = vcmp.eq.s32.totalorder %v1662_v14, 3  ;;  %v1731_v49 = vld [vmem:[#allocation2] sm:$0xff]  ;;  %v1736_v53 = vld [vmem:[#allocation2 + $0x8] sm:$0xff] }
  0x10   :  { %v1337_v16 = vsel %vm85_vm0, 1.0, %v2415_v15  ;;  %v1338_v17 = vsel %vm96_vm1, 1.0, %v2415_v15  ;;  %v1339_v19 = vsel %vm107_vm2, 1.0, %v2415_v15  ;;  %v1340_v20 = vsel %vm118_vm3, 1.0, %v2415_v15  ;;  %v1744_v59 = vld [vmem:[%s2405_s1] sm:$0xf] }
  0x11   :  { %v1439_v18 = vpack.i.bf16 %v1338_v17, %v1337_v16  ;;  %v1422_v22 = vpack.i.bf16 %v1340_v20, %v1339_v19  ;;  %vm129_vm4 = vcmp.eq.s32.totalorder %v1662_v14, 4  ;;  %vm718_vm5 = vcmp.eq.s32.totalorder %v1682_v21, 2  ;;  %v1750_v62 = vld [vmem:[%s2405_s1 + $0x4] sm:$0xf]  ;;  %s1590_s12 = smov 0.0   ;;  %s1325_s21 = sshll.u32 %s2408_s4, 4  ;;  %s1326_s21 = int_to_ptr.vmem [resolvable:$true] %s1325_s21 }
  0x12   :  { %v1341_v23 = vsel %vm129_vm4, 1.0, %v2415_v15  ;;  %v1361_v24 = vsel %vm718_vm5, 1.0, %v2415_v15  ;;  %vm140_vm6 = vcmp.eq.s32.totalorder %v1662_v14, 5  ;;  %vm729_vm7 = vcmp.eq.s32.totalorder %v1682_v21, 3  ;;  %1315 = sst [smem:[#allocation7 + $0x5]] %s1590_s12 }
  0x13   :  { %v1433_v25 = vpack.i.bf16 %v1361_v24, %v1341_v23  ;;  %v1342_v26 = vsel %vm140_vm6, 1.0, %v2415_v15  ;;  %v1362_v27 = vsel %vm729_vm7, 1.0, %v2415_v15  ;;  %vm696_vm8 = vcmp.eq.s32.totalorder %v1682_v21, 0  ;;  %1317 = sst [smem:[#allocation7 + $0x6]] %s1590_s12 }
  0x14   :  { %v1444_v28 = vpack.i.bf16 %v1362_v27, %v1342_v26  ;;  %vm707_vm9 = vcmp.eq.s32.totalorder %v1682_v21, 1  ;;  %v1359_v29 = vsel %vm696_vm8, 1.0, %v2415_v15  ;;  %v1588_v33 = vmov 3   ;;  %1319 = sst [smem:[#allocation7 + $0x7]] %s1590_s12 }
  0x15   :  { %v1360_v30 = vsel %vm707_vm9, 1.0, %v2415_v15  ;;  %vm151_vm10 = vcmp.eq.s32.totalorder %v1662_v14, 6  ;;  %vm740_vm11 = vcmp.eq.s32.totalorder %v1682_v21, 4  ;;  %vm162_vm12 = vcmp.eq.s32.totalorder %v1662_v14, 7 }
  0x16   :  { %v1428_v31 = vpack.i.bf16 %v1360_v30, %v1359_v29  ;;  %v1343_v37 = vsel %vm151_vm10, 1.0, %v2415_v15  ;;  %v1363_v38 = vsel %vm740_vm11, 1.0, %v2415_v15  ;;  %vm751_vm13 = vcmp.eq.s32.totalorder %v1682_v21, 5 }
  0x17   :  { %825 = vrot.lane.b32.xlu0 %v823_v3, %s1582_s0  ;;  %v1450_v39 = vpack.i.bf16 %v1363_v38, %v1343_v37  ;;  %v1344_v42 = vsel %vm162_vm12, 1.0, %v2415_v15  ;;  %v1364_v43 = vsel %vm751_vm13, 1.0, %v2415_v15  ;;  %vm762_vm14 = vcmp.eq.s32.totalorder %v1682_v21, 6 }
  0x18   :  { %v1459_v44 = vpack.i.bf16 %v1364_v43, %v1344_v42  ;;  %vm773_vm15 = vcmp.eq.s32.totalorder %v1682_v21, 7  ;;  %v1365_v45 = vsel %vm762_vm14, 1.0, %v2415_v15  ;;  %v61_v50 = vand.u32 2147483647, %v1731_v49 }
  0x19   :  { %v1366_v46 = vsel %vm773_vm15, 1.0, %v2415_v15  ;;  %v672_v55 = vand.u32 2147483647, %v1736_v53  ;;  %v206_v61 = vmul.f32 0.5, %v1744_v59  ;;  %vm74_vm0 = vcmp.ge.f32.partialorder %v1731_v49, 0.0 }
  0x1a   :  { %v1465_v47 = vpack.i.bf16 %v1366_v46, %v1365_v45  ;;  %v62_v52 = vsub.f32 0.0, %v61_v50  ;;  %v68_v46 = vsub.f32 0.0, %v1731_v49  ;;  %vm685_vm1 = vcmp.ge.f32.partialorder %v1736_v53, 0.0 }
  0x1b   :  { %v673_v57 = vsub.f32 0.0, %v672_v55  ;;  %v208_v1 = vrot.slane %v206_v61, 2 }
  0x1c   :  { %v63_v54 = vmul.f32 1.442695, %v62_v52  ;;  %v69_v61 = vmax.f32 %v68_v46, 0.0 }
  0x1d   :  { %v674_v58 = vmul.f32 1.442695, %v673_v57 }
  0x1e   :  { %1473 = vpow2.f32 %v63_v54 }
  0x1f   :  { %1475 = vpow2.f32 %v674_v58 }
  0x24   :  { %v1474_v60 = vpop.eup %1473 }
  0x25   :  { %v1476_v3 = vpop.eup %1475 }
  0x81   :  { %v215_v6 = vpop.permute.xlu0 %214 }
  0x82   :  { %v1637_v7 = vsub.f32 %v1625_v0, %v215_v6  ;;  %v1640_v8 = vadd.f32 %v215_v6, %v1625_v0  ;;  %v1762_v6 = vadd.f32 %v208_v1, %v1744_v59 }
  0x84   :  { %247 = vperm.xlu0 %1418, %v1640_v8   ;;  %232 = vperm.xlu2 %1417, %v1640_v8   ;;  %v224_v11 = vsub.f32 %v1640_v8, %v1637_v7  ;;  %v250_v16 = vperm.slane %v1762_v6, 1 }
  0x85   :  { %253 = vperm.xlu1 %1419, %v1637_v7  }
  0x89   :  { %v826_v9 = vpop.permute.xlu0 %825 }
  0x8a   :  { %v1646_v10 = vsub.f32 %v1629_v2, %v826_v9  ;;  %v1653_v12 = vadd.f32 %v826_v9, %v1629_v2 }
  0x8c   :  { %239 = vperm.xlu2 %1417, %v1637_v7   ;;  %864 = vperm.xlu0 %1418, %v1646_v10   ;;  %v835_v13 = vsub.f32 %v1653_v12, %v1646_v10 }
  0x8d   :  { %226 = vrot.lane.b32.xlu1 %v224_v11, %s1585_s3 }
  0x8e   :  { %1420 = vset.pattern.permute.xlu1 %v1584_v5 }
  0x94   :  { %843 = vperm.xlu2 %1417, %v1653_v12   ;;  %183 = vperm.xlu0 %1418, %v1625_v0  }
  0x95   :  { %837 = vrot.lane.b32.xlu1 %v835_v13, %s1585_s3 }
  0x9c   :  { %1421 = vset.pattern.permute.xlu2 %v1583_v4  ;;  %1438 = vset.pattern.permute.xlu0 %v1584_v5 }
  0x9d   :  { %850 = vperm.xlu1 %1420, %v1646_v10   ;;  %858 = vperm.xlu2 %1421, %v1653_v12  }
  0x9e   :  { %1440 = vperm.xlu0 %1438, %v1439_v18  }
  0xa5   :  { %1423 = vperm.xlu1 %1420, %v1422_v22   ;;  %1427 = vset.pattern.permute.xlu2 %v1584_v5  ;;  %v235_v22 = vperm.slane %v1762_v6, 0 }
  0xa6   :  { %786 = vperm.xlu0 %1438, %v1629_v2   ;;  %1429 = vperm.xlu2 %1427, %v1428_v31  }
  0xad   :  { %1434 = vperm.xlu1 %1420, %v1433_v25  }
  0xae   :  { %175 = vperm.xlu2 %1427, %v1625_v0   ;;  %1470 = vset.pattern.permute.xlu0 %v1588_v33 }
  0xaf   :  { %810 = vperm.xlu0 %1470, %v1629_v2  }
  0xb5   :  { %1445 = vperm.xlu1 %1420, %v1444_v28  }
  0xb6   :  { %1449 = vset.pattern.permute.xlu2 %v1587_v32 }
  0xb7   :  { %191 = vperm.xlu2 %1449, %v1625_v0   ;;  %1471 = vset.pattern.permute.xlu0 %v1584_v5 }
  0xbf   :  { %1455 = vset.pattern.permute.xlu2 %v1584_v5 }
  0xde   :  { %v1728_v48 = vpop.permute.xlu2 %232 }
  0xe6   :  { %v1734_v51 = vpop.permute.xlu2 %239 }
  0xee   :  { %v1739_v56 = vpop.permute.xlu2 %843 }
  0xf7   :  { %v1702_v34 = vpop.permute.xlu1 %253  ;;  %v859_v63 = vpop.permute.xlu2 %858 }
  0xff   :  { %v227_v35 = vpop.permute.xlu1 %226 }
 0x100   :  { %v1705_v36 = vmul.f32 %v227_v35, %v224_v11  ;;  %v1764_v11 = vadd.f32 1.0, %v1476_v3 }
 0x102   :  { %263 = vperm.xlu1 %1420, %v1705_v36  }
 0x107   :  { %v838_v40 = vpop.permute.xlu1 %837 }
 0x108   :  { %v1712_v41 = vmul.f32 %v838_v40, %v835_v13  ;;  %v1766_v13 = vpop.permute.xlu2 %1429 }
 0x10a   :  { %874 = vperm.xlu2 %1455, %v1712_v41   ;;  %1451 = vperm.xlu1 %1420, %v1450_v39  }
 0x10f   :  { %v851_v28 = vpop.permute.xlu1 %850 }
 0x110   :  { %v1797_v42 = vpop.permute.xlu2 %175 }
 0x112   :  { %1456 = vset.pattern.permute.xlu2 %v1588_v33  ;;  %1457 = vset.pattern.permute.xlu1 %v1583_v4  ;;  %v1757_v4 = vsub.f32 %v1744_v59, %v208_v1 }
 0x113   :  { %199 = vperm.xlu2 %1456, %v1625_v0   ;;  %794 = vperm.xlu1 %1457, %v1629_v2   ;;  %v1752_v0 = vadd.f32 1.0, %v1474_v60 }
 0x114   :  { %v256_v14 = vperm.slane %v1757_v4, 1  ;;  %v242_v18 = vperm.slane %v1757_v4, 0 }
 0x115   :  { %1477 = vrcp.f32 %v1752_v0 }
 0x116   :  { %1479 = vrcp.f32 %v1764_v11  ;;  %v290_v23 = vmin.f32 %v1702_v34, %v256_v14  ;;  %v286_v27 = vmin.f32 %v1734_v51, %v242_v18 }
 0x117   :  { %1481 = vlog2.f32 %v1752_v0 }
 0x118   :  { %1483 = vlog2.f32 %v1764_v11 }
 0x11b   :  { %1464 = vset.pattern.permute.xlu1 %v1587_v32  ;;  %1458 = vset.pattern.permute.xlu2 %v1584_v5  ;;  %v1770_v17 = vpop.eup %1477  ;;  %v285_v32 = vmax.f32 %v1728_v48, %v235_v22 }
 0x11c   :  { %802 = vperm.xlu1 %1464, %v1629_v2   ;;  %1460 = vperm.xlu2 %1458, %v1459_v44   ;;  %v817_v2 = vmul.f32 0.5, %v1750_v62  ;;  %v75_v26 = vsub.f32 1.0, %v1770_v17  ;;  %v1795_v39 = vpop.eup %1479 }
 0x11d   :  { %v287_v40 = vsub.f32 %v285_v32, %v286_v27  ;;  %v686_v55 = vsub.f32 1.0, %v1795_v39 }
 0x11e   :  { %v819_v9 = vrot.slane %v817_v2, 2  ;;  %v76_v38 = vsel %vm74_vm0, %v1770_v17, %v75_v26  ;;  %v2409_v2 = vmax.f32 %v1731_v49, 0.0 }
 0x11f   :  { %v77_v50 = vsub.f32 1.0, %v76_v38  ;;  %v288_v57 = vmax.f32 %v287_v40, 0.0  ;;  %v687_v26 = vsel %vm685_vm1, %v1795_v39, %v686_v55  ;;  %v2410_v55 = vmax.f32 %v1736_v53, 0.0 }
 0x120   :  { %v822_v19 = vadd.f32 %v1750_v62, %v819_v9  ;;  %v821_v20 = vsub.f32 %v1750_v62, %v819_v9  ;;  %v81_v9 = vmul.f32 0.75, %v76_v38 }
 0x121   :  { %v78_v3 = vmul.f32 0.25, %v77_v50 }
 0x122   :  { %v853_v25 = vperm.slane %v821_v20, 0  ;;  %v846_v29 = vperm.slane %v822_v19, 0  ;;  %v861_v30 = vperm.slane %v822_v19, 1  ;;  %v867_v31 = vperm.slane %v821_v20, 1 }
 0x123   :  { %v830_v1 = vsub.f32 %v822_v19, %v821_v20 }
 0x124   :  { %1466 = vperm.xlu2 %1458, %v1465_v47   ;;  %1472 = vset.pattern.permute.xlu1 %v1584_v5  ;;  %v1759_v5 = vpop.permute.xlu0 %247  ;;  %v897_v37 = vmin.f32 %v851_v28, %v853_v25  ;;  %v896_v43 = vmax.f32 %v1739_v56, %v846_v29  ;;  %v900_v44 = vmax.f32 %v859_v63, %v861_v30  ;;  %v1482_v47 = vpop.eup %1481 }
 0x125   :  { %v289_v24 = vmax.f32 %v1759_v5, %v250_v16  ;;  %v1804_v60 = vmul.f32 0.6931472, %v1482_v47  ;;  %v847_v27 = vmin.f32 %v1739_v56, %v846_v29  ;;  %v862_v32 = vmin.f32 %v859_v63, %v861_v30  ;;  %v1484_v46 = vpop.eup %1483  ;;  %v1822_v29 = vpop.permute.xlu2 %191 }
 0x126   :  { %v898_v54 = vsub.f32 %v896_v43, %v897_v37  ;;  %v854_v37 = vmax.f32 %v851_v28, %v853_v25  ;;  %v1815_v43 = vpop.permute.xlu1 %1423  ;;  %v82_v56 = vmul.f32 %v81_v9, %v76_v38  ;;  %v688_v63 = vsub.f32 1.0, %v687_v26 }
 0x127   :  { %v291_v35 = vsub.f32 %v289_v24, %v290_v23  ;;  %v70_v20 = vadd.f32 %v69_v61, %v1804_v60  ;;  %v72_v47 = vadd.f32 %v2409_v2, %v1804_v60  ;;  %v692_v38 = vmul.f32 0.75, %v687_v26 }
 0x128   :  { %v899_v24 = vmax.f32 %v898_v54, 0.0 }
 0x129   :  { %v292_v52 = vmax.f32 %v291_v35, 0.0  ;;  %v83_v61 = vmul.f32 %v82_v56, %v72_v47  ;;  %v251_v47 = vmin.f32 %v1759_v5, %v250_v16 }
 0x12b   :  { %v1807_v23 = vmul.f32 %v292_v52, %v288_v57  ;;  %v79_v52 = vmul.f32 %v78_v3, %v77_v50  ;;  %v689_v50 = vmul.f32 0.25, %v688_v63 }
 0x12c   :  { %v865_v33 = vpop.permute.xlu0 %864 }
 0x12d   :  { %v901_v45 = vmin.f32 %v865_v33, %v867_v31  ;;  %v868_v35 = vmax.f32 %v865_v33, %v867_v31  ;;  %v1825_v25 = vmax.f32 %v1807_v23, 1e-07  ;;  %v855_v31 = vsub.f32 %v847_v27, %v854_v37 }
 0x12e   :  { %v1829_v33 = vmul.f32 0.6931472, %v1484_v46  ;;  %v690_v37 = vmul.f32 %v689_v50, %v688_v63  ;;  %v257_v46 = vmax.f32 %v1702_v34, %v256_v14  ;;  %v219_v34 = vsub.f32 %v1762_v6, %v1757_v4 }
 0x12f   :  { %v902_v58 = vsub.f32 %v900_v44, %v901_v45  ;;  %v679_v44 = vsub.f32 0.0, %v1736_v53  ;;  %v832_v45 = vrot.slane %v830_v1, 1  ;;  %v869_v30 = vsub.f32 %v862_v32, %v868_v35 }
 0x130   :  { %1485 = vrcp.f32 %v1825_v25  ;;  %v856_v9 = vmax.f32 %v855_v31, 0.0  ;;  %v221_v6 = vrot.slane %v219_v34, 1  ;;  %vm301_vm2 = vweird.f32 %v1825_v25 }
 0x131   :  { %v903_v19 = vmax.f32 %v902_v58, 0.0  ;;  %v680_v54 = vmax.f32 %v679_v44, 0.0  ;;  %v834_v57 = vmul.f32 %v832_v45, %v830_v1  ;;  %v80_v58 = vmul.f32 %v79_v52, %v70_v20  ;;  %v1842_v20 = vpop.permute.xlu1 %1434 }
 0x132   :  { %v683_v1 = vadd.f32 %v2410_v55, %v1829_v33  ;;  %v243_v45 = vmax.f32 %v1734_v51, %v242_v18 }
 0x133   :  { %v1827_v28 = vmul.f32 %v903_v19, %v899_v24  ;;  %v870_v24 = vmax.f32 %v869_v30, 0.0  ;;  %v681_v32 = vadd.f32 %v680_v54, %v1829_v33  ;;  %v877_v27 = vperm.slane %v834_v57, 0 }
 0x134   :  { %v1813_v40 = vpop.permute.xlu0 %183  ;;  %v1837_v35 = vsub.f32 %v80_v58, %v83_v61  ;;  %v693_v19 = vmul.f32 %v692_v38, %v687_v26  ;;  %v236_v26 = vmin.f32 %v1728_v48, %v235_v22  ;;  %v258_v57 = vsub.f32 %v251_v47, %v257_v46 }
 0x135   :  { %v1834_v3 = vmax.f32 %v1827_v28, 1e-07  ;;  %v1857_v56 = vmul.f32 %v870_v24, %v856_v9  ;;  %v691_v14 = vmul.f32 %v690_v37, %v681_v32  ;;  %v1425_v61 = vunpack.i.l.bf16 %v1815_v43 }
 0x136   :  { %v1859_v63 = vpop.eup %1485  ;;  %v694_v31 = vmul.f32 %v693_v19, %v683_v1  ;;  %v93_v5 = vperm.slane %v1837_v35, 0  ;;  %v104_v16 = vperm.slane %v1837_v35, 1  ;;  %v244_v54 = vsub.f32 %v236_v26, %v243_v45 }
 0x137   :  { %1487 = vrcp.f32 %v1834_v3  ;;  %v297_v22 = vmul.f32 %v1859_v63, %v1825_v25  ;;  %v115_v4 = vperm.slane %v1837_v35, 2  ;;  %v2414_v1 = vperm.slane %v1744_v59, 1 }
 0x138   :  { %v1874_v50 = vsub.f32 %v691_v14, %v694_v31  ;;  %v245_v32 = vmax.f32 %v244_v54, 0.0  ;;  %v1426_v37 = vunpack.i.h.bf16 %v1815_v43  ;;  %v126_v19 = vperm.slane %v1837_v35, 3 }
 0x139   :  { %v298_v46 = vsub.f32 1.0, %v297_v22  ;;  %v116_v47 = vmul.f32 %v1425_v61, %v115_v4  ;;  %v1432_v26 = vunpack.i.h.bf16 %v1766_v13  ;;  %v187_v43 = vsub.f32 %v1813_v40, %v2414_v1 }
 0x13a   :  { %v2411_v31 = vperm.slane %v1744_v59, 0  ;;  %v1437_v22 = vunpack.i.h.bf16 %v1842_v20  ;;  %v127_v4 = vmul.f32 %v1426_v37, %v126_v19  ;;  %vm302_vm3 = vweird.f32 %v1859_v63 }
 0x13b   :  { %v299_v54 = vmul.f32 %v1859_v63, %v298_v46  ;;  %v307_v46 = vand.u32 2147483648, %v1825_v25  ;;  %vm1925_vm4 = vmor %vm301_vm2, %vm302_vm3  ;;  %vm912_vm5 = vweird.f32 %v1834_v3 }
 0x13c   :  { %v1441_v44 = vpop.permute.xlu0 %1440 }
 0x13d   :  { %v1443_v51 = vunpack.i.h.bf16 %v1441_v44  ;;  %v1442_v18 = vunpack.i.l.bf16 %v1441_v44  ;;  %v1870_v58 = vpop.eup %1487  ;;  %v1446_v44 = vpop.permute.xlu1 %1445  ;;  %v300_v19 = vadd.f32 %v1859_v63, %v299_v54  ;;  %v2417_v54 = vperm.slane %v1744_v59, 3 }
 0x13e   :  { %v908_v45 = vmul.f32 %v1870_v58, %v1834_v3  ;;  %vm913_vm6 = vweird.f32 %v1870_v58 }
 0x13f   :  { %v94_v38 = vmul.f32 %v1442_v18, %v93_v5  ;;  %v105_v9 = vmul.f32 %v1443_v51, %v104_v16  ;;  %v223_v51 = vmul.f32 %v221_v6, %v219_v34  ;;  %v704_v18 = vperm.slane %v1874_v50, 0  ;;  %vm1942_vm7 = vmor %vm912_vm5, %vm913_vm6 }
 0x140   :  { %v1436_v16 = vunpack.i.l.bf16 %v1842_v20  ;;  %v909_v34 = vsub.f32 1.0, %v908_v45  ;;  %v2413_v45 = vperm.slane %v1744_v59, 2 }
 0x141   :  { %v106_v14 = vadd.f32 %v105_v9, %v94_v38  ;;  %v266_v61 = vperm.slane %v223_v51, 0 }
 0x142   :  { %v910_v51 = vmul.f32 %v1870_v58, %v909_v34 }
 0x143   :  { %v117_v38 = vadd.f32 %v116_v47, %v106_v14  ;;  %v1447_v14 = vunpack.i.l.bf16 %v1446_v44 }
 0x164   :  { %v875_v52 = vpop.permute.xlu2 %874 }
 0x165   :  { %v878_v30 = vadd.f32 %v877_v27, %v875_v52  ;;  %v259_v27 = vmax.f32 %v258_v57, 0.0  ;;  %v1431_v52 = vunpack.i.l.bf16 %v1766_v13  ;;  %v137_v13 = vperm.slane %v1837_v35, 4 }
 0x166   :  { %v726_v57 = vperm.slane %v1874_v50, 2 }
 0x167   :  { %v1866_v48 = vsub.f32 %v878_v30, %v1857_v56  ;;  %v715_v30 = vperm.slane %v1874_v50, 1  ;;  %v1893_v5 = vmul.f32 %v259_v27, %v245_v32  ;;  %v705_v6 = vmul.f32 %v1431_v52, %v704_v18 }
 0x168   :  { %v188_v32 = vand.u32 2147483647, %v187_v43  ;;  %v179_v27 = vsub.f32 %v1797_v42, %v2411_v31  ;;  %v138_v20 = vmul.f32 %v1436_v16, %v137_v13  ;;  %v727_v47 = vmul.f32 %v1437_v22, %v726_v57 }
 0x169   :  { %v1877_v24 = vmax.f32 %v1866_v48, 1e-07  ;;  %v716_v40 = vmul.f32 %v1432_v26, %v715_v30  ;;  %v737_v26 = vperm.slane %v1874_v50, 3  ;;  %v148_v52 = vperm.slane %v1837_v35, 5 }
 0x16a   :  { %v1448_v30 = vunpack.i.h.bf16 %v1446_v44  ;;  %v128_v43 = vadd.f32 %v127_v4, %v117_v38  ;;  %v180_v55 = vand.u32 2147483647, %v179_v27  ;;  %v195_v16 = vsub.f32 %v1822_v29, %v2413_v45 }
 0x16b   :  { %1489 = vrcp.f32 %v1877_v24  ;;  %v717_v18 = vadd.f32 %v716_v40, %v705_v6  ;;  %v304_v44 = vsel %vm1925_vm4, %v1859_v63, %v300_v19  ;;  %v305_v57 = vand.u32 2147483647, %v1825_v25 }
 0x16c   :  { %v308_v22 = vor.u32 1.1754944e-38, %v307_v46  ;;  %v1934_v29 = vadd.f32 %v1870_v58, %v910_v51  ;;  %v738_v40 = vmul.f32 %v1448_v30, %v737_v26  ;;  %v139_v6 = vadd.f32 %v138_v20, %v128_v43  ;;  %v787_v26 = vpop.permute.xlu0 %786 }
 0x16d   :  { %v1901_v9 = vpop.permute.xlu2 %199  ;;  %v728_v4 = vadd.f32 %v727_v47, %v717_v18  ;;  %v149_v38 = vmul.f32 %v1447_v14, %v148_v52  ;;  %v196_v63 = vand.u32 2147483647, %v195_v16  ;;  %vm306_vm8 = vcmp.eq.f32.partialorder %v305_v57, 8.507059e+37 }
 0x16e   :  { %v2412_v51 = vperm.slane %v1750_v62, 0  ;;  %v916_v47 = vand.u32 2147483647, %v1834_v3  ;;  %v159_v30 = vperm.slane %v1837_v35, 6  ;;  %v748_v16 = vperm.slane %v1874_v50, 4 }
 0x16f   :  { %v150_v52 = vadd.f32 %v149_v38, %v139_v6  ;;  %v759_v57 = vperm.slane %v1874_v50, 5  ;;  %v170_v31 = vperm.slane %v1837_v35, 7  ;;  %v770_v38 = vperm.slane %v1874_v50, 6 }
 0x170   :  { %vm886_vm10 = vweird.f32 %v1877_v24  ;;  %v905_v45 = vsub.f32 %v1827_v28, %v1866_v48  ;;  %v203_v1 = vsub.f32 %v1901_v9, %v2417_v54  ;;  %vm917_vm3 = vcmp.eq.f32.partialorder %v916_v47, 8.507059e+37 }
 0x171   :  { %v1908_v2 = vpop.eup %1489  ;;  %vm318_vm4 = vcmask 122880  }
 0x172   :  { %v882_v13 = vmul.f32 %v1908_v2, %v1877_v24  ;;  %vm887_vm9 = vweird.f32 %v1908_v2  ;;  %v204_v54 = vand.u32 2147483647, %v203_v1 }
 0x173   :  { %vm1984_vm12 = vmor %vm886_vm10, %vm887_vm9 }
 0x174   :  { %v264_v37 = vpop.permute.xlu1 %263  ;;  %v883_v19 = vsub.f32 1.0, %v882_v13 }
 0x175   :  { %v267_v42 = vadd.f32 %v266_v61, %v264_v37  ;;  %v189_v37 = vadd.f32 %v188_v32, %v180_v55  ;;  %v918_v55 = vand.u32 2147483648, %v1834_v3  ;;  %v1953_v32 = vsel %vm306_vm8, %v308_v22, %v304_v44 }
 0x176   :  { %v1461_v27 = vpop.permute.xlu2 %1460  ;;  %v884_v43 = vmul.f32 %v1908_v2, %v883_v19  ;;  %v1963_v44 = vsub.f32 %v787_v26, %v2412_v51  ;;  %v781_v19 = vperm.slane %v1874_v50, 7 }
 0x177   :  { %v1921_v34 = vsub.f32 %v267_v42, %v1893_v5  ;;  %v739_v42 = vadd.f32 %v738_v40, %v728_v4  ;;  %v197_v14 = vadd.f32 %v196_v63, %v189_v37  ;;  %v890_v4 = vand.u32 2147483647, %v1877_v24 }
 0x178   :  { %v892_v40 = vand.u32 2147483648, %v1877_v24  ;;  %v1462_v6 = vunpack.i.l.bf16 %v1461_v27  ;;  %v885_v35 = vadd.f32 %v1908_v2, %v884_v43  ;;  %v1463_v26 = vunpack.i.h.bf16 %v1461_v27 }
 0x179   :  { %v1939_v61 = vmax.f32 %v1921_v34, 1e-07  ;;  %vm1979_vm11 = vcmp.eq.f32.partialorder %v890_v4, 8.507059e+37 }
 0x17a   :  { %v893_v43 = vor.u32 1.1754944e-38, %v892_v40  ;;  %v171_v27 = vmul.f32 %v1462_v6, %v170_v31  ;;  %v760_v4 = vmul.f32 %v1463_v26, %v759_v57  ;;  %v294_v31 = vsub.f32 %v1807_v23, %v1921_v34 }
 0x17b   :  { %1491 = vrcp.f32 %v1939_v61  ;;  %v281_v15 = vand.u32 2147483648, %v1939_v61  ;;  %v279_v48 = vand.u32 2147483647, %v1939_v61  ;;  %vm275_vm14 = vweird.f32 %v1939_v61 }
 0x17c   :  { %v1452_v46 = vpop.permute.xlu1 %1451  ;;  %v205_v34 = vadd.f32 %v204_v54, %v197_v14 }
 0x17d   :  { %v1453_v18 = vunpack.i.l.bf16 %v1452_v46  ;;  %v1454_v13 = vunpack.i.h.bf16 %v1452_v46  ;;  %v797_v46 = vperm.slane %v1750_v62, 1  ;;  %v282_v6 = vor.u32 1.1754944e-38, %v281_v15 }
 0x17e   :  { %vm280_vm2 = vcmp.eq.f32.partialorder %v279_v48, 8.507059e+37  ;;  %v919_v15 = vor.u32 1.1754944e-38, %v918_v55  ;;  %v312_v47 = vmul.f32 5.0, %v205_v34 }
 0x17f   :  { %v160_v63 = vmul.f32 %v1453_v18, %v159_v30  ;;  %v749_v51 = vmul.f32 %v1454_v13, %v748_v16  ;;  %v1467_v30 = vpop.permute.xlu2 %1466  ;;  %v889_v13 = vsel %vm1984_vm12, %v1908_v2, %v885_v35 }
 0x180   :  { %v1468_v40 = vunpack.i.l.bf16 %v1467_v30  ;;  %v894_v2 = vsel %vm1979_vm11, %v893_v43, %v889_v13  ;;  %v1469_v57 = vunpack.i.h.bf16 %v1467_v30 }
 0x181   :  { %v1492_v22 = vpop.eup %1491  ;;  %v161_v9 = vadd.f32 %v160_v63, %v150_v52  ;;  %v805_v52 = vperm.slane %v1750_v62, 2  ;;  %v813_v63 = vperm.slane %v1750_v62, 3  ;;  %v895_v24 = vmul.f32 %v894_v2, %v1857_v56 }
 0x182   :  { %v271_v37 = vmul.f32 %v1492_v22, %v1939_v61  ;;  %vm276_vm13 = vweird.f32 %v1492_v22  ;;  %v771_v23 = vmul.f32 %v1468_v40, %v770_v38  ;;  %v2429_v38 = vsel %vm1942_vm7, %v1870_v58, %v1934_v29 }
 0x183   :  { %vm277_vm15 = vmor %vm275_vm14, %vm276_vm13  ;;  %v172_v1 = vadd.f32 %v171_v27, %v161_v9  ;;  %v920_v55 = vsel %vm917_vm3, %v919_v15, %v2429_v38  ;;  %v782_v56 = vmul.f32 %v1469_v57, %v781_v19 }
 0x184   :  { %v272_v18 = vsub.f32 1.0, %v271_v37  ;;  %v750_v37 = vadd.f32 %v749_v51, %v739_v42  ;;  %v811_v42 = vpop.permute.xlu0 %810  ;;  %v921_v30 = vmul.f32 %v920_v55, %v905_v45 }
 0x185   :  { %v795_v16 = vpop.permute.xlu1 %794  ;;  %v313_v54 = vmul.f32 2.0, %v172_v1 }
 0x186   :  { %v273_v28 = vmul.f32 %v1492_v22, %v272_v18  ;;  %v798_v18 = vsub.f32 %v795_v16, %v797_v46  ;;  %v761_v35 = vadd.f32 %v760_v4, %v750_v37  ;;  %v310_v16 = vmul.f32 %v1953_v32, %v294_v31 }
 0x187   :  { %v922_v27 = vsub.f32 %v895_v24, %v921_v30  ;;  %v314_v58 = vadd.f32 %v313_v54, %v312_v47 }
 0x188   :  { %v274_v20 = vadd.f32 %v1492_v22, %v273_v28  ;;  %v772_v50 = vadd.f32 %v771_v23, %v761_v35 }
 0x18a   :  { %v278_v51 = vsel %vm277_vm15, %v1492_v22, %v274_v20  ;;  %v799_v20 = vand.u32 2147483647, %v798_v18  ;;  %v814_v22 = vsub.f32 %v811_v42, %v813_v63  ;;  %v783_v29 = vadd.f32 %v782_v56, %v772_v50 }
 0x18b   :  { %v283_v61 = vsel %vm280_vm2, %v282_v6, %v278_v51  ;;  %v50_v51 = vlaneseq }
 0x18c   :  { %v284_v26 = vmul.f32 %v283_v61, %v1893_v5  ;;  %v791_v5 = vand.u32 2147483647, %v1963_v44  ;;  %v815_v48 = vand.u32 2147483647, %v814_v22  ;;  %v926_v44 = vsub.f32 0.0, %v922_v27 }
 0x18d   :  { %v924_v37 = vmul.f32 2.0, %v783_v29  ;;  %v51_v1 = vand.u32 127, %v50_v51 }
 0x18e   :  { %v311_v14 = vsub.f32 %v284_v26, %v310_v16  ;;  %v803_v32 = vpop.permute.xlu1 %802  ;;  %v800_v28 = vadd.f32 %v799_v20, %v791_v5  ;;  %v927_v31 = vmul.f32 2.0, %v926_v44 }
 0x18f   :  { %v806_v3 = vsub.f32 %v803_v32, %v805_v52  ;;  %v2026_v42 = vcvt.s32.f32 %v51_v1 }
 0x190   :  { %v315_v43 = vsub.f32 0.0, %v311_v14 }
 0x191   :  { %v807_v25 = vand.u32 2147483647, %v806_v3 }
 0x192   :  { %v316_v9 = vmul.f32 2.0, %v315_v43 }
 0x193   :  { %v808_v13 = vadd.f32 %v807_v25, %v800_v28 }
 0x194   :  { %v2018_v4 = vadd.f32 %v316_v9, %v314_v58 }
 0x195   :  { %v816_v45 = vadd.f32 %v815_v48, %v808_v13 }
 0x196   :  { %v319_v19 = vsel %vm318_vm4, %v2018_v4, inf  ;;  %v337_v16 = vrot.slane %v2018_v4, 1  ;;  %v358_v47 = vrot.slane %v2018_v4, 2 }
 0x197   :  { %v923_v40 = vmul.f32 5.0, %v816_v45  ;;  %320 = vmin.xlane.f32.xlu1 %v319_v19 }
 0x199   :  { %v925_v6 = vadd.f32 %v924_v37, %v923_v40 }
 0x19b   :  { %v2022_v18 = vadd.f32 %v927_v31, %v925_v6  ;;  %v2078_v31 = vshrl.u32 %v50_v51, 7  ;;  %v2434_v6 = vmov 0.0  }
 0x19d   :  { %v929_v2 = vsel %vm318_vm4, %v2022_v18, inf  ;;  %v944_v38 = vrot.slane %v2022_v18, 1  ;;  %v962_v48 = vrot.slane %v2022_v18, 2  ;;  %vm350_vm3 = vcmp.eq.s32.totalorder %v2078_v31, 1 }
 0x19e   :  { %930 = vmin.xlane.f32.xlu2 %v929_v2 }
 0x20a   :  { %v321_v61 = vpop.xlane.xlu1 %320 }
 0x20b   :  { %vm322_vm5 = vcmp.le.f32.partialorder %v2018_v4, %v321_v61 }
 0x20c   :  { %v323_v57 = vsel %vm322_vm5, %v2026_v42, 16.0  ;;  %vm328_vm5 = vcmp.eq.s32.totalorder %v2078_v31, 0 }
 0x20d   :  { %v324_v35 = vsel %vm318_vm4, %v323_v57, inf  ;;  %v1347_v57 = vsel %vm350_vm3, 1.0, %v2434_v6  ;;  %v1345_v51 = vsel %vm328_vm5, 1.0, %v2434_v6  ;;  %vm458_vm3 = vcmask 130048  }
 0x20e   :  { %325 = vmin.xlane.f32.xlu0 %v324_v35 }
 0x211   :  { %v931_v23 = vpop.xlane.xlu2 %930 }
 0x212   :  { %vm932_vm6 = vcmp.le.f32.partialorder %v2022_v18, %v931_v23 }
 0x213   :  { %v933_v15 = vsel %vm932_vm6, %v2026_v42, 16.0  ;;  %vm371_vm6 = vcmp.eq.s32.totalorder %v2078_v31, 2 }
 0x214   :  { %v934_v34 = vsel %vm318_vm4, %v933_v15, inf }
 0x215   :  { %935 = vmin.xlane.f32.xlu2 %v934_v34 }
 0x281   :  { %v326_v26 = vpop.xlane.xlu0 %325 }
 0x282   :  { %vm327_vm7 = vcmp.eq.f32.partialorder %v2026_v42, %v326_v26  ;;  %v379_v26 = vrot.slane %v2018_v4, 3 }
 0x283   :  { %v339_v24 = vsel %vm327_vm7, 1e+30, %v337_v16  ;;  %v1346_v1 = vsel %vm327_vm7, 1.0, %v2434_v6  ;;  %v1349_v16 = vsel %vm371_vm6, 1.0, %v2434_v6 }
 0x284   :  { %v340_v20 = vsel %vm318_vm4, %v339_v24, inf  ;;  %v333_v35 = vperm.slane %v1346_v1, 0 }
 0x285   :  { %341 = vmin.xlane.f32.xlu1 %v340_v20 }
 0x286   :  { %v334_v20 = vmul.f32 %v1345_v51, %v333_v35 }
 0x288   :  { %v936_v22 = vpop.xlane.xlu2 %935 }
 0x289   :  { %vm937_vm8 = vcmp.eq.f32.partialorder %v2026_v42, %v936_v22 }
 0x28a   :  { %v946_v55 = vsel %vm937_vm8, 1e+30, %v944_v38  ;;  %v1367_v38 = vsel %vm937_vm8, 1.0, %v2434_v6 }
 0x28b   :  { %v947_v14 = vsel %vm318_vm4, %v946_v55, inf  ;;  %v940_v4 = vperm.slane %v1367_v38, 0 }
 0x28c   :  { %948 = vmin.xlane.f32.xlu2 %v947_v14 }
 0x28d   :  { %v941_v43 = vmul.f32 %v1345_v51, %v940_v4 }
 0x2f8   :  { %v342_v54 = vpop.xlane.xlu1 %341 }
 0x2f9   :  { %vm343_vm9 = vcmp.le.f32.partialorder %v339_v24, %v342_v54 }
 0x2fa   :  { %v344_v5 = vsel %vm343_vm9, %v2026_v42, 16.0 }
 0x2fb   :  { %v345_v32 = vsel %vm318_vm4, %v344_v5, inf }
 0x2fc   :  { %346 = vmin.xlane.f32.xlu1 %v345_v32 }
 0x2ff   :  { %v949_v30 = vpop.xlane.xlu2 %948 }
 0x300   :  { %vm950_vm10 = vcmp.le.f32.partialorder %v946_v55, %v949_v30 }
 0x301   :  { %v951_v56 = vsel %vm950_vm10, %v2026_v42, 16.0 }
 0x302   :  { %v952_v50 = vsel %vm318_vm4, %v951_v56, inf }
 0x303   :  { %953 = vmin.xlane.f32.xlu2 %v952_v50 }
 0x36f   :  { %v347_v3 = vpop.xlane.xlu1 %346 }
 0x370   :  { %vm348_vm11 = vcmp.eq.f32.partialorder %v2026_v42, %v347_v3 }
 0x371   :  { %vm2054_vm12 = vmor %vm327_vm7, %vm348_vm11  ;;  %v1348_v2 = vsel %vm348_vm11, 1.0, %v2434_v6 }
 0x372   :  { %v360_v27 = vsel %vm2054_vm12, 1e+30, %v358_v47  ;;  %v355_v61 = vperm.slane %v1348_v2, 0  ;;  %v980_v47 = vrot.slane %v2022_v18, 3 }
 0x373   :  { %v361_v28 = vsel %vm318_vm4, %v360_v27, inf }
 0x374   :  { %362 = vmin.xlane.f32.xlu0 %v361_v28  ;;  %v356_v15 = vmul.f32 %v1347_v57, %v355_v61 }
 0x376   :  { %v954_v25 = vpop.xlane.xlu2 %953  ;;  %v357_v32 = vadd.f32 %v356_v15, %v334_v20  ;;  %v2435_v15 = vperm.slane %v1744_v59, 3 }
 0x377   :  { %vm955_vm13 = vcmp.eq.f32.partialorder %v2026_v42, %v954_v25 }
 0x378   :  { %vm2067_vm14 = vmor %vm937_vm8, %vm955_vm13  ;;  %v1368_v34 = vsel %vm955_vm13, 1.0, %v2434_v6  ;;  %vm391_vm13 = vcmp.eq.s32.totalorder %v2078_v31, 3 }
 0x379   :  { %v964_v58 = vsel %vm2067_vm14, 1e+30, %v962_v48  ;;  %v959_v54 = vperm.slane %v1368_v34, 0  ;;  %v1351_v2 = vsel %vm391_vm13, 1.0, %v2434_v6  ;;  %vm432_vm13 = vweird.f32 %v1770_v17 }
 0x37a   :  { %v965_v29 = vsel %vm318_vm4, %v964_v58, inf }
 0x37b   :  { %966 = vmin.xlane.f32.xlu1 %v965_v29  ;;  %v960_v3 = vmul.f32 %v1347_v57, %v959_v54 }
 0x37d   :  { %v961_v48 = vadd.f32 %v960_v3, %v941_v43  ;;  %v2439_v43 = vperm.slane %v1750_v62, 0 }
 0x3e7   :  { %v363_v13 = vpop.xlane.xlu0 %362 }
 0x3e8   :  { %vm364_vm15 = vcmp.le.f32.partialorder %v360_v27, %v363_v13 }
 0x3e9   :  { %v365_v44 = vsel %vm364_vm15, %v2026_v42, 16.0 }
 0x3ea   :  { %v366_v45 = vsel %vm318_vm4, %v365_v44, inf }
 0x3eb   :  { %367 = vmin.xlane.f32.xlu2 %v366_v45 }
 0x3ee   :  { %v967_v19 = vpop.xlane.xlu1 %966 }
 0x3ef   :  { %vm968_vm2 = vcmp.le.f32.partialorder %v964_v58, %v967_v19 }
 0x3f0   :  { %v969_v37 = vsel %vm968_vm2, %v2026_v42, 16.0  ;;  %vm405_vm2 = vcmask 125952  }
 0x3f1   :  { %v970_v40 = vsel %vm318_vm4, %v969_v37, inf  ;;  %v2418_v37 = vcvt.s32.f32 %v1682_v21 }
 0x3f2   :  { %971 = vmin.xlane.f32.xlu0 %v970_v40 }
 0x45e   :  { %v368_v23 = vpop.xlane.xlu2 %367 }
 0x45f   :  { %vm369_vm9 = vcmp.eq.f32.partialorder %v2026_v42, %v368_v23 }
 0x460   :  { %vm370_vm7 = vmor %vm2054_vm12, %vm369_vm9  ;;  %v1350_v24 = vsel %vm369_vm9, 1.0, %v2434_v6  ;;  %vm477_vm9 = vcmp.lt.s32.totalorder %v2078_v31, 7 }
 0x461   :  { %v376_v55 = vperm.slane %v1350_v24, 0  ;;  %v381_v14 = vsel %vm370_vm7, 1e+30, %v379_v26  ;;  %v2436_v26 = vperm.slane %v1744_v59, 1  ;;  %vm1028_vm7 = vweird.f32 %v1764_v11 }
 0x462   :  { %v382_v5 = vsel %vm318_vm4, %v381_v14, inf }
 0x463   :  { %v377_v30 = vmul.f32 %v1349_v16, %v376_v55  ;;  %383 = vmin.xlane.f32.xlu1 %v382_v5 }
 0x465   :  { %v378_v56 = vadd.f32 %v377_v30, %v357_v32  ;;  %v972_v50 = vpop.xlane.xlu0 %971  ;;  %v2437_v30 = vperm.slane %v1744_v59, 2 }
 0x466   :  { %vm973_vm10 = vcmp.eq.f32.partialorder %v2026_v42, %v972_v50 }
 0x467   :  { %vm974_vm11 = vmor %vm2067_vm14, %vm973_vm10  ;;  %v1369_v22 = vsel %vm973_vm10, 1.0, %v2434_v6  ;;  %vm1029_vm10 = vweird.f32 %v1795_v39 }
 0x468   :  { %v977_v27 = vperm.slane %v1369_v22, 0  ;;  %v982_v28 = vsel %vm974_vm11, 1e+30, %v980_v47  ;;  %v2438_v47 = vperm.slane %v1744_v59, 0  ;;  %v1066_v59 = vsel %vm458_vm3, %v1736_v53, -inf  ;;  %vm2289_vm11 = vmor %vm1028_vm7, %vm1029_vm10 }
 0x469   :  { %v983_v25 = vsel %vm318_vm4, %v982_v28, inf  ;;  %v1067_v62 = vrot.slane %v1066_v59, 4 }
 0x46a   :  { %v978_v58 = vmul.f32 %v1349_v16, %v977_v27  ;;  %984 = vmin.xlane.f32.xlu2 %v983_v25  ;;  %v470_v25 = vsel %vm458_vm3, %v1731_v49, -inf }
 0x46c   :  { %v979_v29 = vadd.f32 %v978_v58, %v961_v48  ;;  %v471_v48 = vrot.slane %v470_v25, 4 }
 0x4d6   :  { %v384_v13 = vpop.xlane.xlu1 %383 }
 0x4d7   :  { %vm385_vm8 = vcmp.le.f32.partialorder %v381_v14, %v384_v13 }
 0x4d8   :  { %v386_v44 = vsel %vm385_vm8, %v2026_v42, 16.0 }
 0x4d9   :  { %v387_v18 = vsel %vm318_vm4, %v386_v44, inf  ;;  %v1068_v44 = vmax.f32 %v1066_v59, %v1067_v62 }
 0x4da   :  { %388 = vmin.xlane.f32.xlu0 %v387_v18 }
 0x4dd   :  { %v985_v9 = vpop.xlane.xlu2 %984 }
 0x4de   :  { %vm986_vm12 = vcmp.le.f32.partialorder %v982_v28, %v985_v9 }
 0x4df   :  { %v987_v45 = vsel %vm986_vm12, %v2026_v42, 16.0 }
 0x4e0   :  { %v988_v19 = vsel %vm318_vm4, %v987_v45, inf }
 0x4e1   :  { %989 = vmin.xlane.f32.xlu1 %v988_v19 }
 0x4fa   :  { %999 = vperm.xlu1 %1472, %v2418_v37  }
 0x54d   :  { %v389_v40 = vpop.xlane.xlu0 %388 }
 0x54e   :  { %vm390_vm14 = vcmp.eq.f32.partialorder %v2026_v42, %v389_v40 }
 0x54f   :  { %v1352_v1 = vsel %vm390_vm14, 1.0, %v2434_v6 }
 0x550   :  { %v396_v61 = vperm.slane %v1352_v1, 0 }
 0x552   :  { %v397_v57 = vmul.f32 %v1351_v2, %v396_v61 }
 0x554   :  { %v2121_v35 = vadd.f32 %v397_v57, %v378_v56  ;;  %v990_v51 = vpop.xlane.xlu1 %989 }
 0x555   :  { %vm991_vm15 = vcmp.eq.f32.partialorder %v2026_v42, %v990_v51 }
 0x556   :  { %v1370_v23 = vsel %vm991_vm15, 1.0, %v2434_v6  ;;  %v542_v34 = vmul.f32 %v2121_v35, %v2435_v15  ;;  %v534_v16 = vmul.f32 %v2121_v35, %v2436_v26  ;;  %v538_v4 = vmul.f32 %v2121_v35, %v2437_v30 }
 0x557   :  { %v994_v24 = vperm.slane %v1370_v23, 0  ;;  %v530_v22 = vmul.f32 %v2121_v35, %v2438_v47 }
 0x558   :  { %v543_v20 = vsel %vm405_vm2, %v542_v34, 0.0  ;;  %v535_v38 = vsel %vm405_vm2, %v534_v16, 0.0 }
 0x559   :  { %v995_v55 = vmul.f32 %v1351_v2, %v994_v24  ;;  %544 = vadd.xlane.f32.xlu2 %v543_v20  ;;  %536 = vadd.xlane.f32.xlu0 %v535_v38  ;;  %v531_v27 = vsel %vm405_vm2, %v530_v22, 0.0  ;;  %v1069_v2 = vrot.slane %v1068_v44, 2 }
 0x55b   :  { %v2133_v42 = vadd.f32 %v995_v55, %v979_v29  ;;  %v472_v29 = vmax.f32 %v470_v25, %v471_v48  ;;  %v1070_v55 = vmax.f32 %v1068_v44, %v1069_v2  ;;  %v2222_v2 = vcvt.s32.f32 %v2078_v31 }
 0x55d   :  { %v1136_v14 = vmul.f32 %v2133_v42, %v813_v63  ;;  %v1128_v54 = vmul.f32 %v2133_v42, %v797_v46  ;;  %v1132_v56 = vmul.f32 %v2133_v42, %v805_v52  ;;  %v539_v63 = vsel %vm405_vm2, %v538_v4, 0.0  ;;  %v2154_v46 = vld [vmem:[%s2406_s2] sm:$0xf]  ;;  %s1589_s2 = smov 125  }
 0x55e   :  { %v2419_v3 = vcvt.s32.f32 %v2154_v46  ;;  %v1124_v52 = vmul.f32 %v2133_v42, %v2439_v43  ;;  %v473_v40 = vrot.slane %v472_v29, 2  ;;  %v1010_v16 = vsel %vm405_vm2, %v2133_v42, 0.0  ;;  %v2210_v43 = vld [vmem:[#allocation5] sm:$0xf] }
 0x55f   :  { %v1137_v5 = vsel %vm405_vm2, %v1136_v14, 0.0  ;;  %v1129_v32 = vsel %vm405_vm2, %v1128_v54, 0.0  ;;  %v1133_v50 = vsel %vm405_vm2, %v1132_v56, 0.0  ;;  %v1011_v4 = vrot.slane %v1010_v16, 4 }
 0x560   :  { %1138 = vadd.xlane.f32.xlu1 %v1137_v5  ;;  %v1125_v28 = vsel %vm405_vm2, %v1124_v52, 0.0  ;;  %v474_v26 = vmax.f32 %v472_v29, %v473_v40  ;;  %v1071_v22 = vrot.slane %v1070_v55, 1 }
 0x561   :  { %1130 = vadd.xlane.f32.xlu2 %v1129_v32  ;;  %v1012_v25 = vadd.f32 %v1011_v4, %v1010_v16 }
 0x562   :  { %v475_v56 = vrot.slane %v474_v26, 1  ;;  %v2219_v44 = vmax.f32 %v1070_v55, %v1071_v22  ;;  %v1024_v55 = vmul.f32 %v1795_v39, %v1764_v11 }
 0x564   :  { %v2214_v48 = vmax.f32 %v474_v26, %v475_v56 }
 0x568   :  { %540 = vadd.xlane.f32.xlu1 %v539_v63 }
 0x569   :  { %1134 = vadd.xlane.f32.xlu2 %v1133_v50 }
 0x56c   :  { %v1000_v58 = vpop.permute.xlu1 %999 }
 0x56d   :  { %401 = vperm.xlu0 %1471, %v2419_v3   ;;  %v1002_v54 = vmul.f32 %v1000_v58, %v2133_v42 }
 0x570   :  { %532 = vadd.xlane.f32.xlu1 %v531_v27  ;;  %v1003_v27 = vsel %vm405_vm2, %v1002_v54, 0.0 }
 0x571   :  { %1126 = vadd.xlane.f32.xlu2 %v1125_v28 }
 0x5cc   :  { %v2171_v13 = vpop.xlane.xlu2 %544  ;;  %v537_v9 = vpop.xlane.xlu0 %536 }
 0x5cd   :  { %v582_v18 = vmul.f32 0.5, %v2171_v13  ;;  %v548_v52 = vsub.f32 %v537_v9, %v2210_v43 }
 0x5cf   :  { %v2174_v45 = vsub.f32 %v537_v9, %v582_v18  ;;  %v2176_v19 = vadd.f32 %v582_v18, %v537_v9  ;;  %v1004_v18 = vrot.slane %v1003_v27, 4  ;;  %v549_v40 = vand.u32 2147483647, %v548_v52 }
 0x5d1   :  { %v587_v1 = vsub.f32 %v2176_v19, %v2174_v45  ;;  %v624_v61 = vmax.f32 %v2176_v19, %v1640_v8  ;;  %v625_v57 = vmin.f32 %v2174_v45, %v1637_v7  ;;  %v593_v51 = vmin.f32 %v2176_v19, %v1640_v8 }
 0x5d2   :  { %v594_v23 = vmax.f32 %v2174_v45, %v1637_v7  ;;  %v1005_v26 = vadd.f32 %v1004_v18, %v1003_v27 }
 0x5d3   :  { %v2188_v15 = vpop.xlane.xlu1 %1138  ;;  %v626_v34 = vsub.f32 %v624_v61, %v625_v57 }
 0x5d4   :  { %v1176_v24 = vmul.f32 0.5, %v2188_v15  ;;  %v2193_v20 = vpop.xlane.xlu2 %1130  ;;  %v595_v38 = vsub.f32 %v593_v51, %v594_v23  ;;  %v1013_v51 = vrot.slane %v1012_v25, 2  ;;  %v2229_v23 = vld [vmem:[#allocation2] sm:$0xff] }
 0x5d5   :  { %v627_v14 = vmax.f32 %v626_v34, 0.0  ;;  %vm502_vm5 = vcmp.ge.f32.partialorder %v2229_v23, %v2214_v48  ;;  %v2235_v34 = vld [vmem:[#allocation2 + $0x8] sm:$0xff] }
 0x5d6   :  { %v2197_v5 = vsub.f32 %v2193_v20, %v1176_v24  ;;  %v2200_v32 = vadd.f32 %v1176_v24, %v2193_v20  ;;  %v596_v30 = vmax.f32 %v595_v38, 0.0  ;;  %vm1097_vm6 = vcmp.ge.f32.partialorder %v2235_v34, %v2219_v44 }
 0x5d7   :  { %629 = vrot.lane.b32.xlu0 %v627_v14, %s1585_s3  ;;  %v503_v38 = vsel %vm502_vm5, %v2222_v2, 8.0  ;;  %v1014_v14 = vadd.f32 %v1013_v51, %v1012_v25  ;;  %v478_v51 = vsel %vm477_vm9, %v2229_v23, -1e+30 }
 0x5d8   :  { %v1181_v63 = vsub.f32 %v2200_v32, %v2197_v5  ;;  %598 = vrot.lane.b32.xlu2 %v596_v30, %s1585_s3  ;;  %v1218_v50 = vmax.f32 %v2200_v32, %v1653_v12  ;;  %v1219_v47 = vmin.f32 %v2197_v5, %v1646_v10  ;;  %v1187_v61 = vmin.f32 %v2200_v32, %v1653_v12 }
 0x5d9   :  { %v1188_v57 = vmax.f32 %v2197_v5, %v1646_v10  ;;  %v1098_v32 = vsel %vm1097_vm6, %v2222_v2, 8.0  ;;  %v504_v52 = vsel %vm458_vm3, %v503_v38, inf }
 0x5da   :  { %v1220_v28 = vsub.f32 %v1218_v50, %v1219_v47  ;;  %v1006_v50 = vrot.slane %v1005_v26, 2  ;;  %v1099_v25 = vsel %vm458_vm3, %v1098_v32, inf  ;;  %v505_v18 = vrot.slane %v504_v52, 4 }
 0x5db   :  { %v541_v59 = vpop.xlane.xlu1 %540  ;;  %v1189_v24 = vsub.f32 %v1187_v61, %v1188_v57  ;;  %v1100_v61 = vrot.slane %v1099_v25, 4  ;;  %v562_v57 = vsub.f32 %v2171_v13, %v2210_v43  ;;  %v1034_v13 = vand.u32 2147483648, %v1764_v11 }
 0x5dc   :  { %v555_v62 = vsub.f32 %v541_v59, %v2210_v43  ;;  %v2217_v58 = vpop.xlane.xlu2 %1134  ;;  %v1221_v29 = vmax.f32 %v1220_v28, 0.0  ;;  %v580_v16 = vmul.f32 0.5, %v541_v59  ;;  %v1025_v59 = vsub.f32 1.0, %v1024_v55 }
 0x5dd   :  { %v1174_v54 = vmul.f32 0.5, %v2217_v58  ;;  %v1190_v28 = vmax.f32 %v1189_v24, 0.0  ;;  %v506_v55 = vmin.f32 %v504_v52, %v505_v18  ;;  %v413_v32 = vsel %vm405_vm2, %v2121_v35, 0.0 }
 0x5de   :  { %v556_v9 = vand.u32 2147483647, %v555_v62  ;;  %v1015_v62 = vrot.slane %v1014_v14, 1  ;;  %v1035_v18 = vor.u32 1.1754944e-38, %v1034_v13 }
 0x5df   :  { %551 = vrot.lane.b32.xlu0 %v549_v40, %s1585_s3  ;;  %v402_v19 = vpop.permute.xlu0 %401 }
 0x5e0   :  { %1223 = vrot.lane.b32.xlu2 %v1221_v29, %s1585_s3  ;;  %558 = vrot.lane.b32.xlu1 %v556_v9, %s1582_s0  ;;  %v1007_v9 = vadd.f32 %v1006_v50, %v1005_v26  ;;  %v1016_v38 = vadd.f32 %v1015_v62, %v1014_v14  ;;  %v479_v26 = vsel %vm458_vm3, %v478_v51, -inf  ;;  %v1032_v14 = vand.u32 2147483647, %v1764_v11 }
 0x5e1   :  { %v414_v62 = vrot.slane %v413_v32, 4 }
 0x5e2   :  { %v1008_v45 = vrot.slane %v1007_v9, 1  ;;  %v1017_v50 = vsub.f32 1.0, %v1016_v38  ;;  %vm1033_vm8 = vcmp.eq.f32.partialorder %v1032_v14, 8.507059e+37 }
 0x5e3   :  { %v2243_v5 = vpop.xlane.xlu1 %532 }
 0x5e4   :  { %v2247_v30 = vsub.f32 %v2243_v5, %v580_v16  ;;  %v2250_v4 = vadd.f32 %v580_v16, %v2243_v5  ;;  %v2252_v56 = vpop.xlane.xlu2 %1126  ;;  %v1026_v16 = vmul.f32 %v1795_v39, %v1025_v59  ;;  %v1009_v59 = vadd.f32 %v1008_v45, %v1007_v9 }
 0x5e5   :  { %2440 = vst [vmem:[#allocation11_spill] sm:$0xff] %v2252_v56  ;;  %v2255_v47 = vsub.f32 %v2252_v56, %v1174_v54  ;;  %v2258_v22 = vadd.f32 %v1174_v54, %v2252_v56  ;;  %v563_v54 = vand.u32 2147483647, %v562_v57  ;;  %v1018_v51 = vmul.f32 8.0, %v1017_v50 }
 0x5e6   :  { %v586_v27 = vsub.f32 %v2250_v4, %v2247_v30  ;;  %v415_v9 = vadd.f32 %v414_v62, %v413_v32  ;;  %v427_v50 = vmul.f32 %v1770_v17, %v1752_v0 }
 0x5e7   :  { %v1180_v29 = vsub.f32 %v2258_v22, %v2255_v47 }
 0x5e8   :  { %1192 = vrot.lane.b32.xlu1 %v1190_v28, %s1585_s3  ;;  %v2271_v40 = vmul.f32 %v587_v1, %v586_v27  ;;  %v1101_v1 = vmin.f32 %v1099_v25, %v1100_v61  ;;  %v404_v27 = vmul.f32 %v402_v19, %v2121_v35  ;;  %v507_v28 = vrot.slane %v506_v55, 2  ;;  %v2295_v61 = vld [vmem:[#allocation5 + $0x4] sm:$0xf] }
 0x5e9   :  { %v2279_v24 = vmul.f32 %v1181_v63, %v1180_v29  ;;  %v1027_v63 = vadd.f32 %v1795_v39, %v1026_v16  ;;  %v480_v25 = vrot.slane %v479_v26, 4  ;;  %v1142_v11 = vsub.f32 %v2193_v20, %v2295_v61 }
 0x5ea   :  { %v1102_v29 = vrot.slane %v1101_v1, 2  ;;  %v406_v16 = vsel %vm405_vm2, %v404_v27, 0.0  ;;  %v508_v38 = vmin.f32 %v506_v55, %v507_v28  ;;  %v416_v52 = vrot.slane %v415_v9, 2 }
 0x5eb   :  { %v1031_v57 = vsel %vm2289_vm11, %v1795_v39, %v1027_v63  ;;  %v481_v19 = vmax.f32 %v479_v26, %v480_v25  ;;  %v1143_v13 = vand.u32 2147483647, %v1142_v11  ;;  %v407_v3 = vrot.slane %v406_v16, 4 }
 0x5ec   :  { %v1103_v45 = vmin.f32 %v1101_v1, %v1102_v29  ;;  %v1036_v37 = vsel %vm1033_vm8, %v1035_v18, %v1031_v57  ;;  %v509_v39 = vrot.slane %v508_v38, 1  ;;  %v1149_v14 = vsub.f32 %v2217_v58, %v2295_v61 }
 0x5ed   :  { %v482_v56 = vrot.slane %v481_v19, 2  ;;  %v1038_v20 = vsub.f32 1.0, %v1036_v37  ;;  %v408_v55 = vadd.f32 %v407_v3, %v406_v16  ;;  %v417_v27 = vadd.f32 %v416_v52, %v415_v9 }
 0x5ee   :  { %v1104_v63 = vrot.slane %v1103_v45, 1  ;;  %v510_v28 = vmin.f32 %v508_v38, %v509_v39  ;;  %v428_v58 = vsub.f32 1.0, %v427_v50  ;;  %v2443_v38 = vmax.f32 %v1736_v53, 0.0 }
 0x5ef   :  { %v483_v26 = vmax.f32 %v481_v19, %v482_v56  ;;  %v1039_v1 = vsel %vm685_vm1, %v1036_v37, %v1038_v20  ;;  %v409_v62 = vrot.slane %v408_v55, 2  ;;  %v418_v56 = vrot.slane %v417_v27, 1 }
 0x5f0   :  { %565 = vrot.lane.b32.xlu1 %v563_v54, %s1589_s2  ;;  %v1019_v54 = vadd.f32 %v1018_v51, %v1009_v59  ;;  %v1105_v25 = vmin.f32 %v1103_v45, %v1104_v63  ;;  %v1150_v59 = vand.u32 2147483647, %v1149_v14  ;;  %v1044_v18 = vsub.f32 1.0, %v1039_v1 }
 0x5f1   :  { %v484_v3 = vrot.slane %v483_v26, 1  ;;  %v511_v57 = vmul.f32 %v510_v28, %v2121_v35  ;;  %v1156_v51 = vsub.f32 %v2188_v15, %v2295_v61  ;;  %v410_v16 = vadd.f32 %v409_v62, %v408_v55 }
 0x5f2   :  { %vm1020_vm12 = vcmp.eq.f32.partialorder %v2222_v2, %v1019_v54  ;;  %v1106_v37 = vmul.f32 %v1105_v25, %v2133_v42  ;;  %v419_v20 = vadd.f32 %v418_v56, %v417_v27  ;;  %vm431_vm1 = vweird.f32 %v1752_v0 }
 0x5f3   :  { %v1371_v32 = vsel %vm1020_vm12, 1.0, %v2434_v6  ;;  %v485_v9 = vmax.f32 %v483_v26, %v484_v3  ;;  %v512_v52 = vsel %vm405_vm2, %v511_v57, 0.0  ;;  %v1157_v63 = vand.u32 2147483647, %v1156_v51  ;;  %vm433_vm15 = vmor %vm431_vm1, %vm432_vm13 }
 0x5f4   :  { %v1040_v29 = vmul.f32 %v2235_v34, %v1371_v32  ;;  %v1045_v11 = vsub.f32 1.0, %v1371_v32  ;;  %v1107_v39 = vsel %vm405_vm2, %v1106_v37, 0.0  ;;  %v1043_v35 = vmul.f32 %v1371_v32, %v1039_v1 }
 0x5f5   :  { %v1049_v42 = vmul.f32 0.25, %v1371_v32  ;;  %v411_v15 = vrot.slane %v410_v16, 1  ;;  %v437_v55 = vand.u32 2147483648, %v1752_v0  ;;  %vm486_vm14 = vcmp.ge.f32.partialorder %v485_v9, %v2214_v48 }
 0x5f6   :  { %v1041_v19 = vsub.f32 %v2443_v38, %v1040_v29  ;;  %v1046_v54 = vmul.f32 %v1045_v11, %v1044_v18  ;;  %v1050_v45 = vmul.f32 0.75, %v1045_v11  ;;  %v435_v1 = vand.u32 2147483647, %v1752_v0 }
 0x5f7   :  { %v420_v32 = vsub.f32 1.0, %v419_v20  ;;  %v412_v27 = vadd.f32 %v411_v15, %v410_v16  ;;  %v1354_v28 = vsel %vm486_vm14, 1.0, %v2434_v6  ;;  %v2444_v38 = vmax.f32 %v1731_v49, 0.0 }
 0x5f8   :  { %1145 = vrot.lane.b32.xlu1 %v1143_v13, %s1585_s3  ;;  %v429_v13 = vmul.f32 %v1770_v17, %v428_v58  ;;  %v1042_v53 = vadd.f32 %v1041_v19, %v1829_v33  ;;  %v1047_v14 = vadd.f32 %v1046_v54, %v1043_v35  ;;  %v1051_v26 = vadd.f32 %v1050_v45, %v1049_v42 }
 0x5f9   :  { %v438_v33 = vor.u32 1.1754944e-38, %v437_v55  ;;  %vm436_vm2 = vcmp.eq.f32.partialorder %v435_v1, 8.507059e+37  ;;  %v421_v29 = vmul.f32 8.0, %v420_v32  ;;  %v489_v48 = vsel %vm318_vm4, %v1354_v28, 0.0 }
 0x5fa   :  { %v430_v50 = vadd.f32 %v1770_v17, %v429_v13  ;;  %v1048_v25 = vsub.f32 1.0, %v1047_v14  ;;  %v1215_v1 = vmin.f32 %v2255_v47, %v1646_v10 }
 0x5fb   :  { %v422_v18 = vadd.f32 %v421_v29, %v412_v27 }
 0x5fc   :  { %v434_v62 = vsel %vm433_vm15, %v1770_v17, %v430_v50  ;;  %v1214_v50 = vmax.f32 %v2258_v22, %v1653_v12 }
 0x5fd   :  { %v439_v11 = vsel %vm436_vm2, %v438_v33, %v434_v62  ;;  %vm423_vm5 = vcmp.eq.f32.partialorder %v2222_v2, %v422_v18 }
 0x5fe   :  { %v441_v0 = vsub.f32 1.0, %v439_v11  ;;  %v1353_v56 = vsel %vm423_vm5, 1.0, %v2434_v6  ;;  %v1216_v28 = vsub.f32 %v1214_v50, %v1215_v1 }
 0x5ff   :  { %v443_v17 = vmul.f32 %v2229_v23, %v1353_v56  ;;  %v448_v16 = vsub.f32 1.0, %v1353_v56  ;;  %v452_v2 = vmul.f32 0.25, %v1353_v56  ;;  %v590_v23 = vmax.f32 %v2247_v30, %v1637_v7 }
 0x600   :  { %1152 = vrot.lane.b32.xlu1 %v1150_v59, %s1582_s0  ;;  %v1052_v59 = vmul.f32 %v1051_v26, %v1042_v53  ;;  %v442_v57 = vsel %vm74_vm0, %v439_v11, %v441_v0 }
 0x601   :  { %v447_v51 = vsub.f32 1.0, %v442_v57  ;;  %v444_v19 = vsub.f32 %v2444_v38, %v443_v17  ;;  %v453_v9 = vmul.f32 0.75, %v448_v16  ;;  %v446_v45 = vmul.f32 %v1353_v56, %v442_v57 }
 0x602   :  { %v1053_v3 = vmul.f32 %v1052_v59, %v1048_v25 }
 0x603   :  { %v449_v54 = vmul.f32 %v448_v16, %v447_v51  ;;  %v445_v13 = vadd.f32 %v444_v19, %v1804_v60  ;;  %v602_v60 = vadd.f32 %v2271_v40, %v1705_v36  ;;  %v620_v36 = vmax.f32 %v2250_v4, %v1640_v8 }
 0x604   :  { %v1054_v58 = vmul.f32 %v1053_v3, %v1048_v25  ;;  %v1217_v25 = vmax.f32 %v1216_v28, 0.0  ;;  %v621_v40 = vmin.f32 %v2247_v30, %v1637_v7  ;;  %v1073_v28 = vsel %vm477_vm9, %v2235_v34, -1e+30 }
 0x605   :  { %v450_v20 = vadd.f32 %v449_v54, %v446_v45  ;;  %v1183_v54 = vmin.f32 %v2258_v22, %v1653_v12 }
 0x606   :  { %v1055_v37 = vsel %vm458_vm3, %v1054_v58, 0.0  ;;  %v622_v58 = vsub.f32 %v620_v36, %v621_v40 }
 0x608   :  { %1159 = vrot.lane.b32.xlu1 %v1157_v63, %s1589_s2  ;;  %v589_v63 = vmin.f32 %v2250_v4, %v1640_v8  ;;  %v623_v17 = vmax.f32 %v622_v58, 0.0 }
 0x609   :  { %513 = vadd.xlane.f32.xlu2 %v512_v52  ;;  %1108 = vadd.xlane.f32.xlu0 %v1107_v39  ;;  %v454_v52 = vadd.f32 %v453_v9, %v452_v2  ;;  %v451_v39 = vsub.f32 1.0, %v450_v20  ;;  %v1184_v9 = vmax.f32 %v2255_v47, %v1646_v10 }
 0x60a   :  { %v591_v15 = vsub.f32 %v589_v63, %v590_v23 }
 0x60b   :  { %v455_v35 = vmul.f32 %v454_v52, %v445_v13  ;;  %v1185_v52 = vsub.f32 %v1183_v54, %v1184_v9 }
 0x60c   :  { %v592_v53 = vmax.f32 %v591_v15, 0.0 }
 0x60d   :  { %v456_v42 = vmul.f32 %v455_v35, %v451_v39  ;;  %v1186_v15 = vmax.f32 %v1185_v52, 0.0 }
 0x60f   :  { %v457_v49 = vmul.f32 %v456_v42, %v451_v39 }
 0x611   :  { %490 = vadd.xlane.f32.xlu2 %v489_v48  ;;  %v459_v14 = vsel %vm458_vm3, %v457_v49, 0.0  ;;  %v1196_v49 = vadd.f32 %v2279_v24, %v1712_v41 }
 0x619   :  { %1056 = vadd.xlane.f32.xlu2 %v1055_v37 }
 0x632   :  { %v599_v55 = vpop.permute.xlu2 %598  ;;  %460 = vadd.xlane.f32.xlu1 %v459_v14 }
 0x633   :  { %v601_v26 = vmul.f32 %v599_v55, %v592_v53 }
 0x635   :  { %v2354_v32 = vsub.f32 %v602_v60, %v601_v26 }
 0x637   :  { %v604_v27 = vmax.f32 %v2354_v32, 1e-07 }
 0x639   :  { %1493 = vrcp.f32 %v604_v27  ;;  %v616_v11 = vand.u32 2147483648, %v604_v27  ;;  %v614_v0 = vand.u32 2147483647, %v604_v27  ;;  %vm610_vm6 = vweird.f32 %v604_v27 }
 0x63a   :  { %v1224_v33 = vpop.permute.xlu2 %1223 }
 0x63b   :  { %v2357_v59 = vmul.f32 %v1224_v33, %v1217_v25  ;;  %v617_v57 = vor.u32 1.1754944e-38, %v616_v11  ;;  %vm615_vm10 = vcmp.eq.f32.partialorder %v614_v0, 8.507059e+37 }
 0x63d   :  { %v1228_v48 = vmax.f32 %v2357_v59, 1e-07 }
 0x63f   :  { %v1494_v62 = vpop.eup %1493  ;;  %1495 = vrcp.f32 %v1228_v48  ;;  %v1240_v53 = vand.u32 2147483648, %v1228_v48  ;;  %vm1234_vm13 = vweird.f32 %v1228_v48  ;;  %v1238_v55 = vand.u32 2147483647, %v1228_v48 }
 0x640   :  { %v606_v29 = vmul.f32 %v1494_v62, %v604_v27  ;;  %vm611_vm0 = vweird.f32 %v1494_v62 }
 0x641   :  { %vm612_vm7 = vmor %vm610_vm6, %vm611_vm0  ;;  %v1241_v24 = vor.u32 1.1754944e-38, %v1240_v53  ;;  %vm1239_vm2 = vcmp.eq.f32.partialorder %v1238_v55, 8.507059e+37 }
 0x642   :  { %v607_v18 = vsub.f32 1.0, %v606_v29  ;;  %v1074_v29 = vsel %vm458_vm3, %v1073_v28, -inf }
 0x643   :  { %v1075_v40 = vrot.slane %v1074_v29, 4 }
 0x644   :  { %v608_v3 = vmul.f32 %v1494_v62, %v607_v18 }
 0x645   :  { %v1496_v30 = vpop.eup %1495 }
 0x646   :  { %v609_v56 = vadd.f32 %v1494_v62, %v608_v3  ;;  %v1230_v19 = vmul.f32 %v1496_v30, %v1228_v48  ;;  %vm1235_vm8 = vweird.f32 %v1496_v30  ;;  %v1076_v3 = vmax.f32 %v1074_v29, %v1075_v40 }
 0x647   :  { %vm1236_vm15 = vmor %vm1234_vm13, %vm1235_vm8 }
 0x648   :  { %v613_v37 = vsel %vm612_vm7, %v1494_v62, %v609_v56  ;;  %v1231_v45 = vsub.f32 1.0, %v1230_v19  ;;  %v1077_v34 = vrot.slane %v1076_v3, 2 }
 0x649   :  { %v618_v8 = vsel %vm615_vm10, %v617_v57, %v613_v37  ;;  %v630_v4 = vpop.permute.xlu0 %629  ;;  %vm518_vm10 = vcmask 3072  }
 0x64a   :  { %v2364_v51 = vmul.f32 %v618_v8, %v601_v26  ;;  %v632_v7 = vmul.f32 %v630_v4, %v623_v17  ;;  %v1232_v39 = vmul.f32 %v1496_v30, %v1231_v45  ;;  %v1078_v8 = vmax.f32 %v1076_v3, %v1077_v34 }
 0x64c   :  { %v633_v16 = vsub.f32 %v632_v7, %v2354_v32  ;;  %v634_v38 = vmax.f32 %v632_v7, 1e-07  ;;  %v1233_v22 = vadd.f32 %v1496_v30, %v1232_v39  ;;  %v546_v7 = vsub.f32 %v2243_v5, %v2210_v43 }
 0x64e   :  { %1497 = vrcp.f32 %v634_v38  ;;  %v646_v63 = vand.u32 2147483648, %v634_v38  ;;  %v644_v42 = vand.u32 2147483647, %v634_v38  ;;  %vm640_vm12 = vweird.f32 %v634_v38 }
 0x64f   :  { %v1237_v1 = vsel %vm1236_vm15, %v1496_v30, %v1233_v22  ;;  %v1079_v30 = vrot.slane %v1078_v8, 1 }
 0x650   :  { %v647_v14 = vor.u32 1.1754944e-38, %v646_v63  ;;  %vm645_vm14 = vcmp.eq.f32.partialorder %v644_v42, 8.507059e+37  ;;  %v1242_v33 = vsel %vm1239_vm2, %v1241_v24, %v1237_v1 }
 0x651   :  { %v552_v4 = vpop.permute.xlu0 %551  ;;  %v1080_v19 = vmax.f32 %v1078_v8, %v1079_v30 }
 0x652   :  { %v2371_v2 = vpop.permute.xlu1 %558 }
 0x654   :  { %v1498_v13 = vpop.eup %1497 }
 0x655   :  { %v636_v20 = vmul.f32 %v1498_v13, %v634_v38  ;;  %vm641_vm11 = vweird.f32 %v1498_v13 }
 0x656   :  { %vm642_vm1 = vmor %vm640_vm12, %vm641_vm11  ;;  %vm1081_vm11 = vcmp.ge.f32.partialorder %v1080_v19, %v2219_v44 }
 0x657   :  { %v637_v35 = vsub.f32 1.0, %v636_v20  ;;  %v2446_v20 = vcvt.s32.f32 %v1682_v21 }
 0x659   :  { %v638_v23 = vmul.f32 %v1498_v13, %v637_v35 }
 0x65a   :  { %v1193_v12 = vpop.permute.xlu1 %1192 }
 0x65b   :  { %v639_v10 = vadd.f32 %v1498_v13, %v638_v23  ;;  %v1195_v47 = vmul.f32 %v1193_v12, %v1186_v15  ;;  %v2447_v15 = vld [vmem:[#allocation11_spill] sm:$0xff] }
 0x65d   :  { %v643_v26 = vsel %vm642_vm1, %v1498_v13, %v639_v10  ;;  %v1197_v60 = vsub.f32 %v1196_v49, %v1195_v47  ;;  %v2445_v13 = vcvt.s32.f32 %v2154_v46  ;;  %v1372_v46 = vsel %vm1081_vm11, 1.0, %v2434_v6 }
 0x65e   :  { %v648_v50 = vsel %vm645_vm14, %v647_v14, %v643_v26  ;;  %v1084_v21 = vsel %vm318_vm4, %v1372_v46, 0.0  ;;  %v1140_v49 = vsub.f32 %v2447_v15, %v2295_v61 }
 0x65f   :  { %v649_v32 = vmul.f32 %v648_v50, %v633_v16  ;;  %v1198_v27 = vmax.f32 %v1197_v60, 1e-07  ;;  %v1227_v41 = vsub.f32 %v2357_v59, %v1197_v60  ;;  %v547_v16 = vand.u32 2147483647, %v546_v7 }
 0x660   :  { %v1141_v44 = vand.u32 2147483647, %v1140_v49  ;;  %v1592_v7 = vmov 2.0  }
 0x661   :  { %1499 = vrcp.f32 %v1198_v27  ;;  %v650_v25 = vsub.f32 %v2364_v51, %v649_v32  ;;  %v1243_v62 = vmul.f32 %v1242_v33, %v1227_v41  ;;  %v1210_v11 = vand.u32 2147483648, %v1198_v27 }
 0x662   :  { %v1208_v0 = vand.u32 2147483647, %v1198_v27  ;;  %vm1204_vm0 = vweird.f32 %v1198_v27  ;;  %v566_v37 = vpop.permute.xlu1 %565  ;;  %v554_v45 = vadd.f32 %v552_v4, %v547_v16  ;;  %v1591_v4 = vmov 8.0  }
 0x663   :  { %v1211_v31 = vor.u32 1.1754944e-38, %v1210_v11  ;;  %v651_v12 = vsub.f32 1.0, %v650_v25  ;;  %1501 = vrcp.f32 %v1591_v4 }
 0x664   :  { %vm1209_vm9 = vcmp.eq.f32.partialorder %v1208_v0, 8.507059e+37  ;;  %v561_v35 = vadd.f32 %v2371_v2, %v554_v45  ;;  %1503 = vrcp.f32 %v1592_v7 }
 0x666   :  { %v568_v63 = vadd.f32 %v566_v37, %v561_v35 }
 0x667   :  { %v1500_v36 = vpop.eup %1499 }
 0x668   :  { %v1200_v48 = vmul.f32 %v1500_v36, %v1198_v27  ;;  %vm1205_vm5 = vweird.f32 %v1500_v36  ;;  %v569_v42 = vsel %vm518_vm10, %v568_v63, 0.0 }
 0x669   :  { %vm1206_vm6 = vmor %vm1204_vm0, %vm1205_vm5 }
 0x66a   :  { %v1201_v18 = vsub.f32 1.0, %v1200_v48  ;;  %v1146_v38 = vpop.permute.xlu1 %1145 }
 0x66b   :  { %v1148_v10 = vadd.f32 %v1146_v38, %v1141_v44 }
 0x66c   :  { %v1202_v59 = vmul.f32 %v1500_v36, %v1201_v18 }
 0x66e   :  { %v1203_v58 = vadd.f32 %v1500_v36, %v1202_v59 }
 0x670   :  { %v1207_v56 = vsel %vm1206_vm6, %v1500_v36, %v1203_v58 }
 0x671   :  { %v1212_v57 = vsel %vm1209_vm9, %v1211_v31, %v1207_v56 }
 0x672   :  { %v1213_v17 = vmul.f32 %v1212_v57, %v1195_v47  ;;  %v1153_v23 = vpop.permute.xlu1 %1152  ;;  %v652_v47 = vsel %vm518_vm10, %v651_v12, 0.0 }
 0x673   :  { %v1155_v53 = vadd.f32 %v1153_v23, %v1148_v10 }
 0x674   :  { %v1244_v51 = vsub.f32 %v1213_v17, %v1243_v62 }
 0x676   :  { %v1245_v22 = vsub.f32 1.0, %v1244_v51 }
 0x678   :  { %v1246_v2 = vsel %vm518_vm10, %v1245_v22, 0.0 }
 0x67c   :  { %v514_v54 = vpop.xlane.xlu2 %513  ;;  %v1109_v9 = vpop.xlane.xlu0 %1108 }
 0x67d   :  { %vm515_vm3 = vcmp.eq.f32.partialorder %v514_v54, %v2445_v13  ;;  %vm1110_vm7 = vcmp.eq.f32.partialorder %v1109_v9, %v2446_v20  ;;  %v1502_v13 = vpop.eup %1501 }
 0x67e   :  { %v1356_v52 = vsel %vm515_vm3, 1.0, %v2434_v6  ;;  %v1374_v39 = vsel %vm1110_vm7, 1.0, %v2434_v6  ;;  %v1160_v6 = vpop.permute.xlu1 %1159  ;;  %vm1262_vm4 = vweird.f32 %v1502_v13 }
 0x67f   :  { %v519_v43 = vsel %vm518_vm10, %v1356_v52, 0.0  ;;  %v1113_v5 = vsel %vm518_vm10, %v1374_v39, 0.0  ;;  %v1162_v14 = vadd.f32 %v1160_v6, %v1155_v53 }
 0x680   :  { %520 = vadd.xlane.f32.xlu0 %v519_v43  ;;  %1114 = vadd.xlane.f32.xlu2 %v1113_v5  ;;  %v1504_v5 = vpop.eup %1503 }
 0x681   :  { %v1163_v55 = vsel %vm518_vm10, %v1162_v14, 0.0  ;;  %v1282_v12 = vmul.f32 2.0, %v1504_v5  ;;  %vm1286_vm8 = vweird.f32 %v1504_v5 }
 0x684   :  { %v491_v41 = vpop.xlane.xlu2 %490 }
 0x685   :  { %v492_v24 = vrot.slane %v491_v41, 4 }
 0x687   :  { %v493_v28 = vadd.f32 %v492_v24, %v491_v41 }
 0x688   :  { %1085 = vadd.xlane.f32.xlu0 %v1084_v21  ;;  %570 = vadd.xlane.f32.xlu2 %v569_v42  ;;  %v1258_v42 = vmul.f32 8.0, %v1502_v13 }
 0x689   :  { %v494_v33 = vrot.slane %v493_v28, 2 }
 0x68a   :  { %v1259_v6 = vsub.f32 1.0, %v1258_v42 }
 0x68b   :  { %v495_v25 = vadd.f32 %v494_v33, %v493_v28 }
 0x68c   :  { %v1057_v36 = vpop.xlane.xlu2 %1056 }
 0x68d   :  { %v496_v62 = vrot.slane %v495_v25, 1  ;;  %v1058_v0 = vrot.slane %v1057_v36, 4 }
 0x68f   :  { %v497_v29 = vadd.f32 %v496_v62, %v495_v25  ;;  %v1059_v51 = vadd.f32 %v1058_v0, %v1057_v36 }
 0x690   :  { %653 = vadd.xlane.f32.xlu0 %v652_v47  ;;  %1247 = vadd.xlane.f32.xlu2 %v1246_v2 }
 0x691   :  { %v1060_v54 = vrot.slane %v1059_v51, 2 }
 0x693   :  { %v1061_v23 = vadd.f32 %v1060_v54, %v1059_v51 }
 0x695   :  { %v1062_v2 = vrot.slane %v1061_v23, 1 }
 0x698   :  { %1164 = vadd.xlane.f32.xlu0 %v1163_v55 }
 0x6a5   :  { %v461_v26 = vpop.xlane.xlu1 %460 }
 0x6a6   :  { %v462_v60 = vrot.slane %v461_v26, 4 }
 0x6a8   :  { %v463_v50 = vadd.f32 %v462_v60, %v461_v26  ;;  %v1283_v26 = vsub.f32 1.0, %v1282_v12 }
 0x6aa   :  { %v464_v61 = vrot.slane %v463_v50, 2  ;;  %v1284_v28 = vmul.f32 %v1504_v5, %v1283_v26 }
 0x6ac   :  { %v465_v1 = vadd.f32 %v464_v61, %v463_v50 }
 0x6ae   :  { %v466_v32 = vrot.slane %v465_v1, 1 }
 0x6b0   :  { %v467_v27 = vadd.f32 %v466_v32, %v465_v1  ;;  %v1063_v32 = vadd.f32 %v1062_v2, %v1061_v23 }
 0x6b2   :  { %1375 = vpush %v467_v27  ;;  %v1260_v27 = vmul.f32 %v1502_v13, %v1259_v6 }
 0x6b3   :  { %1377 = vpush %v497_v29 }
 0x6b4   :  { %v1261_v29 = vadd.f32 %v1502_v13, %v1260_v27 }
 0x6e3   :  { %s1376_s13 = spop %1375 }
 0x6e4   :  { %s1378_s14 = spop %1377 }
 0x6e5   :  { %s1355_s22 = sadd.f32 -4.0, %s1378_s14 }
 0x6e7   :  { %s500_s27 = sand.u32 2147483647, %s1355_s22 }
 0x6f3   :  { %v521_v40 = vpop.xlane.xlu0 %520  ;;  %v1115_v48 = vpop.xlane.xlu2 %1114 }
 0x6f4   :  { %v522_v18 = vrot.slane %v521_v40, 4  ;;  %v1116_v37 = vrot.slane %v1115_v48, 4 }
 0x6f6   :  { %v523_v11 = vadd.f32 %v522_v18, %v521_v40  ;;  %v1117_v38 = vadd.f32 %v1116_v37, %v1115_v48  ;;  %v1285_v40 = vadd.f32 %v1504_v5, %v1284_v28 }
 0x6f8   :  { %v524_v3 = vrot.slane %v523_v11, 2  ;;  %v1118_v35 = vrot.slane %v1117_v38, 2 }
 0x6fa   :  { %v525_v59 = vadd.f32 %v524_v3, %v523_v11  ;;  %v1119_v22 = vadd.f32 %v1118_v35, %v1117_v38  ;;  %v1263_v11 = vsel %vm1262_vm4, %v1502_v13, %v1261_v29  ;;  %v1287_v3 = vsel %vm1286_vm8, %v1504_v5, %v1285_v40 }
 0x6fb   :  { %v1086_v58 = vpop.xlane.xlu0 %1085  ;;  %v571_v31 = vpop.xlane.xlu2 %570 }
 0x6fc   :  { %v1087_v34 = vrot.slane %v1086_v58, 4  ;;  %v572_v56 = vrot.slane %v571_v31, 4  ;;  %v526_v57 = vrot.slane %v525_v59, 1  ;;  %v1120_v60 = vrot.slane %v1119_v22, 1 }
 0x6fe   :  { %v573_v17 = vadd.f32 %v572_v56, %v571_v31  ;;  %v527_v8 = vadd.f32 %v526_v57, %v525_v59  ;;  %v1088_v30 = vadd.f32 %v1087_v34, %v1086_v58  ;;  %v1121_v33 = vadd.f32 %v1120_v60, %v1119_v22 }
 0x700   :  { %v574_v16 = vrot.slane %v573_v17, 2  ;;  %1379 = vpush %v527_v8  ;;  %v1089_v20 = vrot.slane %v1088_v30, 2 }
 0x702   :  { %v575_v19 = vadd.f32 %v574_v16, %v573_v17  ;;  %v1090_v49 = vadd.f32 %v1089_v20, %v1088_v30 }
 0x703   :  { %v654_v9 = vpop.xlane.xlu0 %653  ;;  %v1248_v45 = vpop.xlane.xlu2 %1247 }
 0x704   :  { %v655_v52 = vrot.slane %v654_v9, 4  ;;  %v1249_v39 = vrot.slane %v1248_v45, 4  ;;  %v576_v43 = vrot.slane %v575_v19, 1  ;;  %v1091_v55 = vrot.slane %v1090_v49, 1 }
 0x706   :  { %v656_v46 = vadd.f32 %v655_v52, %v654_v9  ;;  %v577_v63 = vadd.f32 %v576_v43, %v575_v19  ;;  %v1250_v21 = vadd.f32 %v1249_v39, %v1248_v45  ;;  %v1092_v24 = vadd.f32 %v1091_v55, %v1090_v49 }
 0x708   :  { %v657_v15 = vrot.slane %v656_v46, 2  ;;  %1381 = vpush %v577_v63  ;;  %v1251_v10 = vrot.slane %v1250_v21, 2 }
 0x70a   :  { %v658_v44 = vadd.f32 %v657_v15, %v656_v46  ;;  %v1252_v1 = vadd.f32 %v1251_v10, %v1250_v21 }
 0x70b   :  { %v1165_v47 = vpop.xlane.xlu0 %1164 }
 0x70c   :  { %v1166_v53 = vrot.slane %v1165_v47, 4  ;;  %v659_v14 = vrot.slane %v658_v44, 1  ;;  %v1253_v62 = vrot.slane %v1252_v1, 1 }
 0x70e   :  { %v1167_v50 = vadd.f32 %v1166_v53, %v1165_v47  ;;  %v660_v61 = vadd.f32 %v659_v14, %v658_v44  ;;  %v1254_v18 = vadd.f32 %v1253_v62, %v1252_v1 }
 0x710   :  { %v1168_v41 = vrot.slane %v1167_v50, 2  ;;  %1383 = vpush %v660_v61 }
 0x711   :  { %1385 = vpush %v1063_v32 }
 0x712   :  { %v1169_v25 = vadd.f32 %v1168_v41, %v1167_v50  ;;  %1387 = vpush %v1092_v24 }
 0x713   :  { %1389 = vpush %v1121_v33 }
 0x714   :  { %v1170_v36 = vrot.slane %v1169_v25, 1 }
 0x716   :  { %v1171_v48 = vadd.f32 %v1170_v36, %v1169_v25 }
 0x718   :  { %1391 = vpush %v1171_v48 }
 0x719   :  { %1393 = vpush %v1254_v18 }
 0x71a   :  { %1395 = vpush %v1263_v11 }
 0x71b   :  { %1397 = vpush %v1287_v3 }
 0x731   :  { %s1380_s15 = spop %1379 }
 0x739   :  { %s1382_s16 = spop %1381 }
 0x741   :  { %s1384_s17 = spop %1383 }
 0x742   :  { %s1386_s18 = spop %1385 }
 0x743   :  { %s1388_s23 = spop %1387  ;;  %s1065_s28 = sadd.f32 %s1386_s18, %s1376_s13 }
 0x744   :  { %s1373_s24 = sadd.f32 -4.0, %s1388_s23  ;;  %s1390_s25 = spop %1389 }
 0x745   :  { %s1123_s26 = sadd.f32 %s1390_s25, %s1380_s15  ;;  %s1593_s13 = smov [#allocation7]  }
 0x746   :  { %s1095_s0 = sand.u32 2147483647, %s1373_s24 }
 0x747   :  { %s1268_s3 = smul.f32 100.0, %s1123_s26  ;;  %s1096_s8 = sadd.f32 %s1095_s0, %s500_s27 }
 0x749   :  { %s1392_s29 = spop %1391 }
 0x74a   :  { %s1173_s30 = sadd.f32 %s1392_s29, %s1382_s16  ;;  %s1394_s5 = spop %1393 }
 0x74b   :  { %s1256_s6 = sadd.f32 %s1394_s5, %s1384_s17  ;;  %s1396_s7 = spop %1395 }
 0x74c   :  { %s1265_s9 = smul.f32 %s1396_s7, %s1065_s28  ;;  %s1398_s1 = spop %1397 }
 0x74d   :  { %s1277_s10 = smul.f32 %s1396_s7, %s1268_s3 }
 0x74e   :  { %1267 = sst [smem:[#allocation7]] %s1265_s9  ;;  %s1300_s4 = smul.f32 %s1396_s7, %s1173_s30 }
 0x74f   :  { %s1278_s11 = ssub.f32 100.0, %s1277_s10  ;;  %s1311_s2 = smul.f32 %s1396_s7, %s1256_s6 }
 0x750   :  { %1302 = sst [smem:[#allocation7 + $0x3]] %s1300_s4  ;;  %s1289_s12 = smul.f32 %s1398_s1, %s1096_s8 }
 0x751   :  { %1280 = sst [smem:[#allocation7 + $0x1]] %s1278_s11 }
 0x752   :  { %1313 = sst [smem:[#allocation7 + $0x4]] %s1311_s2 }
 0x753   :  { %1291 = sst [smem:[#allocation7 + $0x2]] %s1289_s12 }
 0x754   :  { %1328 = dma.smem_to_vmem %s1593_s13, 16, %s1326_s21, [#allocation4]  }
 0x755   :  { %1574 = dma.done.wait [#allocation4], 16  }
 0x756   :  { %1575 = vsyncadd [#allocation4], 4294967280 }
 0x757   :  { %1333 = sfence }
 0x758   :  { %1334 = vsyncpa [#allocation3], 1 }
 0x759   :  { %1335 = vsyncpa [#allocation6], 1 }
 0x75a   :  { %1336 = vsyncpa [#allocation4], 1 }

</bundles_post_ra>
